<compile_context>
chip_gen: v5e
topology: v5e:2x2
jax: 0.10.0
libtpu: 0.0.40
codegen_flags: <defaults>
</compile_context>

<pallas_src>
import functools
import math

import jax
import jax.numpy as jnp
from jax.experimental import pallas as pl
from jax.experimental.pallas import tpu as pltpu


# ----------------------------- kernel ---------------------------------------


def _layer_norm_f32(x, gamma, beta, eps=1e-5):
    # fp32 LayerNorm (matches the LayerNorm subclass that upcasts to fp32).
    mu = jnp.mean(x, axis=-1, keepdims=True)
    var = jnp.mean(jnp.square(x - mu), axis=-1, keepdims=True)
    return (x - mu) * jax.lax.rsqrt(var + eps) * gamma + beta


def _resblock_kernel(
    x_ref,                       # (Lp, D)  f32   full (padded) sequence, one batch elem
    mask_ref,                    # (1, Lp)  f32   additive key mask (0 / -1e30)
    ln1_g_ref, ln1_b_ref,        # (1, D)   f32
    wqkv_ref, bqkv_ref,          # (D, 3D)  bf16 / (1, 3D) f32
    wo_ref, bo_ref,              # (D, D)   bf16 / (1, D)  f32
    ln2_g_ref, ln2_b_ref,        # (1, D)   f32
    wfc_ref, bfc_ref,            # (D, 4D)  bf16 / (1, 4D) f32
    wpr_ref, bpr_ref,            # (4D, D)  bf16 / (1, D)  f32
    y_ref,                       # (TQ, D)  f32   output tile
    aw_ref,                      # (TQ, Lp) f32   head-averaged attn weights
    qkv_ref,                     # scratch  (Lp, 3D) bf16  -- fused QKV
    attn_o_ref,                  # scratch  (TQ, D)  bf16  -- per-head outputs
    *, n_head, heads_per_group,
):
    Lp, D = x_ref.shape
    tq = y_ref.shape[0]
    hd = D // n_head
    t = pl.program_id(1)
    row0 = pl.multiple_of(t * tq, tq)            # first query row of this tile

    # ---- ln_1 + fused QKV projection: once per batch element ----------------
    # qkv_ref (scratch) persists across the query-tile grid axis, which is
    # therefore declared "arbitrary" in dimension_semantics.
    @pl.when(t == 0)
    def _():
        xn = _layer_norm_f32(x_ref[...], ln1_g_ref[0], ln1_b_ref[0])
        qkv_ref[...] = (
            jnp.dot(xn.astype(jnp.bfloat16), wqkv_ref[...],
                    preferred_element_type=jnp.float32)
            + bqkv_ref[0]
        ).astype(jnp.bfloat16)

    # ---- multi-head self-attention for this query tile ----------------------
    # 1/sqrt(hd) is already folded into the Q weights/bias at param-prep time.
    key_mask = mask_ref[0]                        # (Lp,)
    n_grp = n_head // heads_per_group
    # TODO(synk): on v5e with H=16 convert this unrolled Python loop to a
    # lax.fori_loop over head groups if the bundle dump shows vreg spills.
    for gi in range(n_grp):
        pv_parts = []
        for hj in range(heads_per_group):
            h = gi * heads_per_group + hj
            lo = h * hd
            qh = qkv_ref[pl.ds(row0, tq), lo:lo + hd]             # (TQ, hd) bf16
            kh = qkv_ref[:, D + lo:D + lo + hd]                   # (Lp, hd) bf16
            vh = qkv_ref[:, 2 * D + lo:2 * D + lo + hd]           # (Lp, hd) bf16

            # q @ k^T (contract hd); padded key columns masked out additively.
            s = jnp.einsum("qd,kd->qk", qh, kh,
                           preferred_element_type=jnp.float32)    # (TQ, Lp) f32
            s = s + key_mask
            s = s - jnp.max(s, axis=-1, keepdims=True)
            p = jnp.exp(s)
            p = p * pl.reciprocal(jnp.sum(p, axis=-1, keepdims=True), approx=True)

            # sum raw attention maps; scale by 1/H once after the loop.
            if h == 0:
                aw_ref[...] = p
            else:
                aw_ref[...] += p

            pv_parts.append(jnp.dot(p.astype(jnp.bfloat16), vh,
                                    preferred_element_type=jnp.float32))

        # One lane-dense (heads_per_group*hd wide) store per head group.
        g0 = gi * heads_per_group * hd
        gw = heads_per_group * hd
        grp = pv_parts[0] if heads_per_group == 1 else jnp.concatenate(pv_parts, axis=-1)
        attn_o_ref[:, g0:g0 + gw] = grp.astype(jnp.bfloat16)

    aw_ref[...] *= 1.0 / n_head

    attn_out = (jnp.dot(attn_o_ref[...], wo_ref[...],
                        preferred_element_type=jnp.float32) + bo_ref[0])
    x1 = x_ref[pl.ds(row0, tq), :] + attn_out               # residual, f32

    # ---- ln_2 + MLP (c_fc -> QuickGELU -> c_proj) ----------------------------
    xn2 = _layer_norm_f32(x1, ln2_g_ref[0], ln2_b_ref[0])
    hfc = (jnp.dot(xn2.astype(jnp.bfloat16), wfc_ref[...],
                   preferred_element_type=jnp.float32) + bfc_ref[0])
    hfc = hfc * jax.nn.sigmoid(1.702 * hfc)                 # QuickGELU
    m = (jnp.dot(hfc.astype(jnp.bfloat16), wpr_ref[...],
                 preferred_element_type=jnp.float32) + bpr_ref[0])
    y_ref[...] = x1 + m                                     # residual


# ----------------------------- wrappers --------------------------------------


_SINGLE_BUFFER_WEIGHTS_OK = True   # falls back if pl.Buffered(1) is rejected


@functools.lru_cache(maxsize=1)
def _vmem_capacity_bytes():
    try:
        cap = int(getattr(pltpu.get_tpu_info(), "vmem_capacity_bytes", 0))
        if cap > 0:
            return cap
    except Exception:
        pass
    return 64 * 1024 * 1024        # conservative default (v7x per-core VMEM)


def _pad_len(L):
    if L <= 128:
        return ((L + 7) // 8) * 8          # sublane-align, single query tile
    return ((L + 127) // 128) * 128        # lane-dense 128-wide query tiles


def _choose_tq(L_pad):
    if L_pad <= 128:
        return L_pad
    # v5e / v6e (128 MiB VMEM): bigger M per MXU pass, fewer grid steps.
    if L_pad % 256 == 0 and _vmem_capacity_bytes() >= 100 * 1024 * 1024:
        return 256
    return 128


def _heads_per_group(n_head, hd):
    g = max(1, 128 // hd) if hd < 128 else 1
    g = min(g, n_head)
    while n_head % g:
        g -= 1
    return g


def _vmem_limit_bytes(weight_args, L_pad, D, tq, single_buffer_weights):
    wbuf = 1 if single_buffer_weights else 2
    weight_bytes = wbuf * sum(int(w.size) * w.dtype.itemsize for w in weight_args)
    block_bytes = 2 * (L_pad * D + tq * D + tq * L_pad) * 4   # x, y, aw (dbl-buffered)
    scratch_bytes = (L_pad * 3 * D + tq * D) * 2              # bf16 qkv + head-outs
    need = weight_bytes + block_bytes + scratch_bytes
    cap = _vmem_capacity_bytes()
    limit = min(int(cap * 0.85), max(int(need * 1.4), 32 * 1024 * 1024))
    if limit < need:                 # never silently under-provision
        limit = min(cap, int(need * 1.1))
    return int(limit)


def residual_attention_block_nld(x_nld, key_mask, p, n_head):
    """One CLIP ResidualAttentionBlock on (N, L_pad, D) float32 activations."""
    global _SINGLE_BUFFER_WEIGHTS_OK
    N, L_pad, D = x_nld.shape
    assert D % n_head == 0
    hd = D // n_head
    tq = _choose_tq(L_pad)
    n_qt = L_pad // tq

    weight_args = (
        p["ln1_g"], p["ln1_b"],
        p["wqkv"], p["bqkv"],
        p["wo"], p["bo"],
        p["ln2_g"], p["ln2_b"],
        p["wfc"], p["bfc"],
        p["wpr"], p["bpr"],
    )

    kernel = functools.partial(
        _resblock_kernel, n_head=n_head,
        heads_per_group=_heads_per_group(n_head, hd))

    def call(single_buffer_weights):
        def resident(w):
            zeros = (0,) * w.ndim
            if single_buffer_weights:
                # Fully-resident operand with constant block index: one buffer
                # is enough; halves weight VMEM (crucial on v7x's 64 MiB).
                return pl.BlockSpec(w.shape, lambda n, t, _z=zeros: _z,
                                    pipeline_mode=pl.Buffered(1))
            return pl.BlockSpec(w.shape, lambda n, t, _z=zeros: _z)

        in_specs = [pl.BlockSpec((None, L_pad, D), lambda n, t: (n, 0, 0))]
        in_specs += [resident(key_mask)]
        in_specs += [resident(w) for w in weight_args]

        out_shape = (
            jax.ShapeDtypeStruct((N, L_pad, D), jnp.float32),
            jax.ShapeDtypeStruct((N, L_pad, L_pad), jnp.float32),
        )
        out_specs = (
            pl.BlockSpec((None, tq, D), lambda n, t: (n, t, 0)),
            pl.BlockSpec((None, tq, L_pad), lambda n, t: (n, t, 0)),
        )

        return pl.pallas_call(
            kernel,
            out_shape=out_shape,
            grid_spec=pltpu.PrefetchScalarGridSpec(
                num_scalar_prefetch=0,
                grid=(N, n_qt),
                in_specs=in_specs,
                out_specs=out_specs,
                scratch_shapes=[
                    pltpu.VMEM((L_pad, 3 * D), jnp.bfloat16),   # fused QKV
                    pltpu.VMEM((tq, D), jnp.bfloat16),          # per-head outputs
                ],
            ),
            compiler_params=pltpu.CompilerParams(
                # The query-tile axis carries the qkv scratch across steps, so
                # it must be "arbitrary"; the batch axis stays "parallel".
                dimension_semantics=("parallel", "arbitrary"),
                vmem_limit_bytes=_vmem_limit_bytes(
                    weight_args + (key_mask,), L_pad, D, tq,
                    single_buffer_weights),
            ),
        )(x_nld, key_mask, *weight_args)

    if _SINGLE_BUFFER_WEIGHTS_OK:
        try:
            return call(True)
        except Exception:
            _SINGLE_BUFFER_WEIGHTS_OK = False
    return call(False)


def transformer_forward(x_lnd, layer_params, n_head):
    """x_lnd: (L, N, D).  Returns (y: (L, N, D), [attn_weight: (N, L, L)])."""
    orig_dtype = x_lnd.dtype
    L, N, D = x_lnd.shape
    L_pad = _pad_len(L)

    x = jnp.transpose(x_lnd, (1, 0, 2)).astype(jnp.float32)   # (N, L, D), once
    if L_pad != L:
        x = jnp.pad(x, ((0, 0), (0, L_pad - L), (0, 0)))
    # Additive key mask: 0 for real tokens, -1e30 for padded key columns.
    key_mask = jnp.where(jnp.arange(L_pad) < L, 0.0, -1e30)
    key_mask = key_mask.reshape(1, L_pad).astype(jnp.float32)

    aw_list = []
    for lp in layer_params:
        x, aw = residual_attention_block_nld(x, key_mask, lp, n_head)
        aw_list.append(aw[:, :L, :L])
    y = jnp.transpose(x[:, :L, :], (1, 0, 2)).astype(orig_dtype)
    return y, aw_list


# ----------------------------- params -----------------------------------------


def make_pytorch_params(key, d_model):
    """Deterministic synthetic parameters in PyTorch layout / f32."""
    D = d_model
    ks = jax.random.split(key, 12)
    w, b = 0.05, 0.02
    return {
        "in_proj_weight": jax.random.normal(ks[0], (3 * D, D), jnp.float32) * w,
        "in_proj_bias": jax.random.normal(ks[1], (3 * D,), jnp.float32) * b,
        "out_proj_weight": jax.random.normal(ks[2], (D, D), jnp.float32) * w,
        "out_proj_bias": jax.random.normal(ks[3], (D,), jnp.float32) * b,
        "ln_1_weight": 1.0 + jax.random.normal(ks[4], (D,), jnp.float32) * b,
        "ln_1_bias": jax.random.normal(ks[5], (D,), jnp.float32) * b,
        "c_fc_weight": jax.random.normal(ks[6], (4 * D, D), jnp.float32) * w,
        "c_fc_bias": jax.random.normal(ks[7], (4 * D,), jnp.float32) * b,
        "c_proj_weight": jax.random.normal(ks[8], (D, 4 * D), jnp.float32) * w,
        "c_proj_bias": jax.random.normal(ks[9], (D,), jnp.float32) * b,
        "ln_2_weight": 1.0 + jax.random.normal(ks[10], (D,), jnp.float32) * b,
        "ln_2_bias": jax.random.normal(ks[11], (D,), jnp.float32) * b,
    }


def prep_kernel_params(pt, n_head):
    """PyTorch layout -> kernel layout: fused QKV, folded scale, bf16 weights."""
    D = pt["out_proj_weight"].shape[0]
    hd = D // n_head
    scale = 1.0 / math.sqrt(hd)
    ipw, ipb = pt["in_proj_weight"], pt["in_proj_bias"]
    wq, wk, wv = ipw[:D] * scale, ipw[D:2 * D], ipw[2 * D:]
    bq, bk, bv = ipb[:D] * scale, ipb[D:2 * D], ipb[2 * D:]

    row = lambda v: v.reshape(1, -1).astype(jnp.float32)
    bf = lambda m: m.astype(jnp.bfloat16)
    return {
        "ln1_g": row(pt["ln_1_weight"]), "ln1_b": row(pt["ln_1_bias"]),
        "wqkv": bf(jnp.concatenate([wq, wk, wv], axis=0).T),   # (D, 3D)
        "bqkv": row(jnp.concatenate([bq, bk, bv])),            # (1, 3D)
        "wo": bf(pt["out_proj_weight"].T), "bo": row(pt["out_proj_bias"]),
        "ln2_g": row(pt["ln_2_weight"]), "ln2_b": row(pt["ln_2_bias"]),
        "wfc": bf(pt["c_fc_weight"].T), "bfc": row(pt["c_fc_bias"]),
        "wpr": bf(pt["c_proj_weight"].T), "bpr": row(pt["c_proj_bias"]),
    }


# ----------------------------- pure-JAX reference ------------------------------


def reference_block(x_lnd, pt, n_head):
    L, N, D = x_lnd.shape
    hd = D // n_head

    def ln(v, g, b):
        mu = v.mean(-1, keepdims=True)
        var = ((v - mu) ** 2).mean(-1, keepdims=True)
        return (v - mu) * jax.lax.rsqrt(var + 1e-5) * g + b

    x = x_lnd.astype(jnp.float32)
    xn = ln(x, pt["ln_1_weight"], pt["ln_1_bias"])
    qkv = xn @ pt["in_proj_weight"].T + pt["in_proj_bias"]       # (L, N, 3D)
    q, k, v = jnp.split(qkv, 3, axis=-1)

    def heads(t):
        return t.reshape(L, N, n_head, hd).transpose(1, 2, 0, 3)  # (N,H,L,hd)

    qh, kh, vh = heads(q) / math.sqrt(hd), heads(k), heads(v)
    s = jnp.einsum("nhqd,nhkd->nhqk", qh, kh)
    p = jax.nn.softmax(s, axis=-1)
    o = jnp.einsum("nhqk,nhkd->nhqd", p, vh)
    o = o.transpose(2, 0, 1, 3).reshape(L, N, D)
    attn_out = o @ pt["out_proj_weight"].T + pt["out_proj_bias"]
    aw = p.mean(axis=1)                                           # (N, L, L)

    x1 = x + attn_out
    xn2 = ln(x1, pt["ln_2_weight"], pt["ln_2_bias"])
    h = xn2 @ pt["c_fc_weight"].T + pt["c_fc_bias"]
    h = h * jax.nn.sigmoid(1.702 * h)
    y = x1 + h @ pt["c_proj_weight"].T + pt["c_proj_bias"]
    return y, aw


def reference_transformer(x, pt_layers, n_head):
    aws = []
    for pt in pt_layers:
        x, aw = reference_block(x, pt, n_head)
        aws.append(aw)
    return x, aws


# ----------------------------- main --------------------------------------------


def _run_case(key, L, N, D, H, layers):
    kx, kp = jax.random.split(key)
    x = jax.random.normal(kx, (L, N, D), jnp.float32)
    pt_layers = [make_pytorch_params(k, D) for k in jax.random.split(kp, layers)]
    kern_layers = [prep_kernel_params(pt, H) for pt in pt_layers]

    y, aw_list = transformer_forward(x, kern_layers, H)
    y = jax.block_until_ready(y)
    aw_list = [jax.block_until_ready(a) for a in aw_list]

    y_ref, aw_ref_list = reference_transformer(x, pt_layers, H)

    assert y.shape == (L, N, D)
    assert len(aw_list) == layers and all(a.shape == (N, L, L) for a in aw_list)
    err_y = float(jnp.max(jnp.abs(y - y_ref)))
    assert jnp.allclose(y, y_ref, atol=5e-2, rtol=5e-2), err_y
    for a, ar in zip(aw_list, aw_ref_list):
        err_a = float(jnp.max(jnp.abs(a - ar)))
        assert jnp.allclose(a, ar, atol=1e-2, rtol=5e-2), err_a


if __name__ == "__main__":
    key = jax.random.PRNGKey(0)
    k1, k2 = jax.random.split(key)
    # Aligned case: L=16 (single query tile, no padding), width=128, 4 heads.
    _run_case(k1, L=16, N=2, D=128, H=4, layers=2)
    # Ragged case: L=260 -> padded to 384, 128-row query tiles + key mask.
    _run_case(k2, L=260, N=2, D=128, H=4, layers=1)
    print("KERNEL_OK")
</pallas_src>

<mosaic_0001>
module attributes {stable_mosaic.version = 11 : i64} {
  func.func @_resblock_kernel(%arg0: i32, %arg1: i32, %arg2: memref<1x16x128xf32, #tpu.memory_space<vmem>>, %arg3: memref<1x16xf32, #tpu.memory_space<vmem>>, %arg4: memref<1x128xf32, #tpu.memory_space<vmem>>, %arg5: memref<1x128xf32, #tpu.memory_space<vmem>>, %arg6: memref<128x384xbf16, #tpu.memory_space<vmem>>, %arg7: memref<1x384xf32, #tpu.memory_space<vmem>>, %arg8: memref<128x128xbf16, #tpu.memory_space<vmem>>, %arg9: memref<1x128xf32, #tpu.memory_space<vmem>>, %arg10: memref<1x128xf32, #tpu.memory_space<vmem>>, %arg11: memref<1x128xf32, #tpu.memory_space<vmem>>, %arg12: memref<128x512xbf16, #tpu.memory_space<vmem>>, %arg13: memref<1x512xf32, #tpu.memory_space<vmem>>, %arg14: memref<512x128xbf16, #tpu.memory_space<vmem>>, %arg15: memref<1x128xf32, #tpu.memory_space<vmem>>, %arg16: memref<1x16x128xf32, #tpu.memory_space<vmem>>, %arg17: memref<1x16x16xf32, #tpu.memory_space<vmem>>, %arg18: memref<16x384xbf16, #tpu.memory_space<vmem>>, %arg19: memref<16x128xbf16, #tpu.memory_space<vmem>>) attributes {dimension_semantics = [#tpu.dimension_semantics<parallel>, #tpu.dimension_semantics<arbitrary>], iteration_bounds = array<i64: 2, 1>, scalar_prefetch = 0 : i64, scratch_operands = 2 : i64, tpu.core_type = #tpu.core_type<tc>, window_params = [{transform_indices = @transform_0, window_bounds = array<i64: 1, 16, 128>}, {pipeline_mode = #tpu.pipeline_mode<synchronous>, transform_indices = @transform_1, window_bounds = array<i64: 1, 16>}, {pipeline_mode = #tpu.pipeline_mode<synchronous>, transform_indices = @transform_2, window_bounds = array<i64: 1, 128>}, {pipeline_mode = #tpu.pipeline_mode<synchronous>, transform_indices = @transform_3, window_bounds = array<i64: 1, 128>}, {pipeline_mode = #tpu.pipeline_mode<synchronous>, transform_indices = @transform_4, window_bounds = array<i64: 128, 384>}, {pipeline_mode = #tpu.pipeline_mode<synchronous>, transform_indices = @transform_5, window_bounds = array<i64: 1, 384>}, {pipeline_mode = #tpu.pipeline_mode<synchronous>, transform_indices = @transform_6, window_bounds = array<i64: 128, 128>}, {pipeline_mode = #tpu.pipeline_mode<synchronous>, transform_indices = @transform_7, window_bounds = array<i64: 1, 128>}, {pipeline_mode = #tpu.pipeline_mode<synchronous>, transform_indices = @transform_8, window_bounds = array<i64: 1, 128>}, {pipeline_mode = #tpu.pipeline_mode<synchronous>, transform_indices = @transform_9, window_bounds = array<i64: 1, 128>}, {pipeline_mode = #tpu.pipeline_mode<synchronous>, transform_indices = @transform_10, window_bounds = array<i64: 128, 512>}, {pipeline_mode = #tpu.pipeline_mode<synchronous>, transform_indices = @transform_11, window_bounds = array<i64: 1, 512>}, {pipeline_mode = #tpu.pipeline_mode<synchronous>, transform_indices = @transform_12, window_bounds = array<i64: 512, 128>}, {pipeline_mode = #tpu.pipeline_mode<synchronous>, transform_indices = @transform_13, window_bounds = array<i64: 1, 128>}, {transform_indices = @transform_14, window_bounds = array<i64: 1, 16, 128>}, {transform_indices = @transform_15, window_bounds = array<i64: 1, 16, 16>}]} {
    %c16_i32 = arith.constant 16 : i32
    %0 = arith.muli %arg1, %c16_i32 : i32
    %1 = tpu.assume_multiple %0, 16 : i32
    %c0_i32 = arith.constant 0 : i32
    %2 = arith.cmpi eq, %arg1, %c0_i32 : i32
    %3 = arith.extui %2 : i1 to i32
    %c0_i32_0 = arith.constant 0 : i32
    %4 = arith.cmpi ne, %3, %c0_i32_0 : i32
    scf.if %4 {
      %c0_89 = arith.constant 0 : index
      %c0_90 = arith.constant 0 : index
      %c0_91 = arith.constant 0 : index
      %186 = vector.load %arg2[%c0_89, %c0_90, %c0_91] : memref<1x16x128xf32, #tpu.memory_space<vmem>>, vector<1x16x128xf32>
      %187 = vector.shape_cast %186 : vector<1x16x128xf32> to vector<16x128xf32>
      %c0_92 = arith.constant 0 : index
      %c0_93 = arith.constant 0 : index
      %188 = vector.load %arg4[%c0_92, %c0_93] : memref<1x128xf32, #tpu.memory_space<vmem>>, vector<1x128xf32>
      %189 = vector.shape_cast %188 : vector<1x128xf32> to vector<128xf32>
      %c0_94 = arith.constant 0 : index
      %c0_95 = arith.constant 0 : index
      %190 = vector.load %arg5[%c0_94, %c0_95] : memref<1x128xf32, #tpu.memory_space<vmem>>, vector<1x128xf32>
      %191 = vector.shape_cast %190 : vector<1x128xf32> to vector<128xf32>
      %cst_96 = arith.constant dense<0.000000e+00> : vector<16xf32>
      %192 = vector.multi_reduction <add>, %187, %cst_96 [1] : vector<16x128xf32> to vector<16xf32>
      %193 = vector.shape_cast %192 : vector<16xf32> to vector<16x1xf32>
      %cst_97 = arith.constant 1.280000e+02 : f32
      %194 = vector.broadcast %cst_97 : f32 to vector<16x1xf32>
      %195 = arith.divf %193, %194 : vector<16x1xf32>
      %196 = vector.broadcast %195 : vector<16x1xf32> to vector<16x128xf32>
      %197 = arith.subf %187, %196 : vector<16x128xf32>
      %198 = arith.mulf %197, %197 : vector<16x128xf32>
      %cst_98 = arith.constant dense<0.000000e+00> : vector<16xf32>
      %199 = vector.multi_reduction <add>, %198, %cst_98 [1] : vector<16x128xf32> to vector<16xf32>
      %200 = vector.shape_cast %199 : vector<16xf32> to vector<16x1xf32>
      %cst_99 = arith.constant 1.280000e+02 : f32
      %201 = vector.broadcast %cst_99 : f32 to vector<16x1xf32>
      %202 = arith.divf %200, %201 : vector<16x1xf32>
      %203 = vector.broadcast %195 : vector<16x1xf32> to vector<16x128xf32>
      %204 = arith.subf %187, %203 : vector<16x128xf32>
      %cst_100 = arith.constant 9.99999974E-6 : f32
      %205 = vector.broadcast %cst_100 : f32 to vector<16x1xf32>
      %206 = arith.addf %202, %205 : vector<16x1xf32>
      %207 = math.rsqrt %206 : vector<16x1xf32>
      %208 = vector.broadcast %207 : vector<16x1xf32> to vector<16x128xf32>
      %209 = arith.mulf %204, %208 : vector<16x128xf32>
      %210 = vector.shape_cast %189 : vector<128xf32> to vector<1x128xf32>
      %211 = vector.broadcast %210 : vector<1x128xf32> to vector<16x128xf32>
      %212 = arith.mulf %209, %211 : vector<16x128xf32>
      %213 = vector.shape_cast %191 : vector<128xf32> to vector<1x128xf32>
      %214 = vector.broadcast %213 : vector<1x128xf32> to vector<16x128xf32>
      %215 = arith.addf %212, %214 : vector<16x128xf32>
      %216 = arith.truncf %215 : vector<16x128xf32> to vector<16x128xbf16>
      %c0_101 = arith.constant 0 : index
      %c0_102 = arith.constant 0 : index
      %217 = vector.load %arg6[%c0_101, %c0_102] : memref<128x384xbf16, #tpu.memory_space<vmem>>, vector<128x384xbf16>
      %cst_103 = arith.constant dense<0.000000e+00> : vector<16x384xf32>
      %218 = tpu.matmul %216, %217, %cst_103 {dimension_numbers = #tpu.dot_dimension_numbers<[1], [0], [0], [1], [0, 0, 1, 1], [], []>} : vector<16x128xbf16>, vector<128x384xbf16>, vector<16x384xf32> -> vector<16x384xf32>
      %c0_104 = arith.constant 0 : index
      %c0_105 = arith.constant 0 : index
      %219 = vector.load %arg7[%c0_104, %c0_105] : memref<1x384xf32, #tpu.memory_space<vmem>>, vector<1x384xf32>
      %220 = vector.shape_cast %219 : vector<1x384xf32> to vector<384xf32>
      %221 = vector.shape_cast %220 : vector<384xf32> to vector<1x384xf32>
      %222 = vector.broadcast %221 : vector<1x384xf32> to vector<16x384xf32>
      %223 = arith.addf %218, %222 : vector<16x384xf32>
      %224 = arith.truncf %223 : vector<16x384xf32> to vector<16x384xbf16>
      %c0_106 = arith.constant 0 : index
      %c0_107 = arith.constant 0 : index
      %225 = vector.load %arg18[%c0_106, %c0_107] : memref<16x384xbf16, #tpu.memory_space<vmem>>, vector<16x384xbf16>
      tpu.vector_store %arg18[%c0_106, %c0_107], %224 {strides = array<i32>} : memref<16x384xbf16, #tpu.memory_space<vmem>>, vector<16x384xbf16>,
    } else {
    }
    %c0 = arith.constant 0 : index
    %c0_1 = arith.constant 0 : index
    %5 = vector.load %arg3[%c0, %c0_1] : memref<1x16xf32, #tpu.memory_space<vmem>>, vector<1x16xf32>
    %6 = vector.shape_cast %5 : vector<1x16xf32> to vector<16xf32>
    %7 = arith.index_cast %1 : i32 to index
    %c0_2 = arith.constant 0 : index
    %8 = vector.load %arg18[%7, %c0_2] : memref<16x384xbf16, #tpu.memory_space<vmem>>, vector<16x32xbf16>
    %c0_3 = arith.constant 0 : index
    %c128 = arith.constant 128 : index
    %9 = vector.load %arg18[%c0_3, %c128] : memref<16x384xbf16, #tpu.memory_space<vmem>>, vector<16x32xbf16>
    %c0_4 = arith.constant 0 : index
    %c256 = arith.constant 256 : index
    %10 = vector.load %arg18[%c0_4, %c256] : memref<16x384xbf16, #tpu.memory_space<vmem>>, vector<16x32xbf16>
    "tpu.trace_start"() <{level = 10 : i32, message = "qd,kd->qk"}> : () -> ()
    %cst = arith.constant dense<0.000000e+00> : vector<16x16xf32>
    %11 = tpu.matmul %8, %9, %cst {dimension_numbers = #tpu.dot_dimension_numbers<[1], [1], [0], [0], [0, 0, 1, 0], [], []>} : vector<16x32xbf16>, vector<16x32xbf16>, vector<16x16xf32> -> vector<16x16xf32>
    "tpu.trace_stop"() : () -> ()
    %12 = vector.shape_cast %6 : vector<16xf32> to vector<1x16xf32>
    %13 = vector.broadcast %12 : vector<1x16xf32> to vector<16x16xf32>
    %14 = arith.addf %11, %13 : vector<16x16xf32>
    %cst_5 = arith.constant dense<0xFF800000> : vector<16xf32>
    %15 = vector.multi_reduction <maximumf>, %14, %cst_5 [1] : vector<16x16xf32> to vector<16xf32>
    %16 = vector.shape_cast %15 : vector<16xf32> to vector<16x1xf32>
    %17 = vector.broadcast %16 : vector<16x1xf32> to vector<16x16xf32>
    %18 = arith.subf %14, %17 : vector<16x16xf32>
    %19 = math.exp %18 : vector<16x16xf32>
    %cst_6 = arith.constant dense<0.000000e+00> : vector<16xf32>
    %20 = vector.multi_reduction <add>, %19, %cst_6 [1] : vector<16x16xf32> to vector<16xf32>
    %21 = vector.shape_cast %20 : vector<16xf32> to vector<16x1xf32>
    %22 = tpu.reciprocal %21 {approx = true} : vector<16x1xf32> -> vector<16x1xf32>
    %23 = vector.broadcast %22 : vector<16x1xf32> to vector<16x16xf32>
    %24 = arith.mulf %19, %23 : vector<16x16xf32>
    %c0_7 = arith.constant 0 : index
    %c0_8 = arith.constant 0 : index
    %c0_9 = arith.constant 0 : index
    %25 = vector.load %arg17[%c0_7, %c0_8, %c0_9] : memref<1x16x16xf32, #tpu.memory_space<vmem>>, vector<1x16x16xf32>
    %26 = vector.shape_cast %25 : vector<1x16x16xf32> to vector<16x16xf32>
    %27 = vector.shape_cast %24 : vector<16x16xf32> to vector<1x16x16xf32>
    tpu.vector_store %arg17[%c0_7, %c0_8, %c0_9], %27 {strides = array<i32>} : memref<1x16x16xf32, #tpu.memory_space<vmem>>, vector<1x16x16xf32>,
    %28 = arith.truncf %24 : vector<16x16xf32> to vector<16x16xbf16>
    %cst_10 = arith.constant dense<0.000000e+00> : vector<16x32xf32>
    %29 = tpu.matmul %28, %10, %cst_10 {dimension_numbers = #tpu.dot_dimension_numbers<[1], [0], [0], [1], [0, 0, 1, 1], [], []>} : vector<16x16xbf16>, vector<16x32xbf16>, vector<16x32xf32> -> vector<16x32xf32>
    %30 = arith.index_cast %1 : i32 to index
    %c32 = arith.constant 32 : index
    %31 = vector.load %arg18[%30, %c32] : memref<16x384xbf16, #tpu.memory_space<vmem>>, vector<16x32xbf16>
    %c0_11 = arith.constant 0 : index
    %c160 = arith.constant 160 : index
    %32 = vector.load %arg18[%c0_11, %c160] : memref<16x384xbf16, #tpu.memory_space<vmem>>, vector<16x32xbf16>
    %c0_12 = arith.constant 0 : index
    %c288 = arith.constant 288 : index
    %33 = vector.load %arg18[%c0_12, %c288] : memref<16x384xbf16, #tpu.memory_space<vmem>>, vector<16x32xbf16>
    "tpu.trace_start"() <{level = 10 : i32, message = "qd,kd->qk"}> : () -> ()
    %cst_13 = arith.constant dense<0.000000e+00> : vector<16x16xf32>
    %34 = tpu.matmul %31, %32, %cst_13 {dimension_numbers = #tpu.dot_dimension_numbers<[1], [1], [0], [0], [0, 0, 1, 0], [], []>} : vector<16x32xbf16>, vector<16x32xbf16>, vector<16x16xf32> -> vector<16x16xf32>
    "tpu.trace_stop"() : () -> ()
    %35 = vector.shape_cast %6 : vector<16xf32> to vector<1x16xf32>
    %36 = vector.broadcast %35 : vector<1x16xf32> to vector<16x16xf32>
    %37 = arith.addf %34, %36 : vector<16x16xf32>
    %cst_14 = arith.constant dense<0xFF800000> : vector<16xf32>
    %38 = vector.multi_reduction <maximumf>, %37, %cst_14 [1] : vector<16x16xf32> to vector<16xf32>
    %39 = vector.shape_cast %38 : vector<16xf32> to vector<16x1xf32>
    %40 = vector.broadcast %39 : vector<16x1xf32> to vector<16x16xf32>
    %41 = arith.subf %37, %40 : vector<16x16xf32>
    %42 = math.exp %41 : vector<16x16xf32>
    %cst_15 = arith.constant dense<0.000000e+00> : vector<16xf32>
    %43 = vector.multi_reduction <add>, %42, %cst_15 [1] : vector<16x16xf32> to vector<16xf32>
    %44 = vector.shape_cast %43 : vector<16xf32> to vector<16x1xf32>
    %45 = tpu.reciprocal %44 {approx = true} : vector<16x1xf32> -> vector<16x1xf32>
    %46 = vector.broadcast %45 : vector<16x1xf32> to vector<16x16xf32>
    %47 = arith.mulf %42, %46 : vector<16x16xf32>
    %c0_16 = arith.constant 0 : index
    %c0_17 = arith.constant 0 : index
    %c0_18 = arith.constant 0 : index
    %48 = vector.load %arg17[%c0_16, %c0_17, %c0_18] : memref<1x16x16xf32, #tpu.memory_space<vmem>>, vector<1x16x16xf32>
    %49 = vector.shape_cast %48 : vector<1x16x16xf32> to vector<16x16xf32>
    %50 = arith.addf %49, %47 : vector<16x16xf32>
    %c0_19 = arith.constant 0 : index
    %c0_20 = arith.constant 0 : index
    %c0_21 = arith.constant 0 : index
    %51 = vector.load %arg17[%c0_19, %c0_20, %c0_21] : memref<1x16x16xf32, #tpu.memory_space<vmem>>, vector<1x16x16xf32>
    %52 = vector.shape_cast %51 : vector<1x16x16xf32> to vector<16x16xf32>
    %53 = vector.shape_cast %50 : vector<16x16xf32> to vector<1x16x16xf32>
    tpu.vector_store %arg17[%c0_19, %c0_20, %c0_21], %53 {strides = array<i32>} : memref<1x16x16xf32, #tpu.memory_space<vmem>>, vector<1x16x16xf32>,
    %54 = arith.truncf %47 : vector<16x16xf32> to vector<16x16xbf16>
    %cst_22 = arith.constant dense<0.000000e+00> : vector<16x32xf32>
    %55 = tpu.matmul %54, %33, %cst_22 {dimension_numbers = #tpu.dot_dimension_numbers<[1], [0], [0], [1], [0, 0, 1, 1], [], []>} : vector<16x16xbf16>, vector<16x32xbf16>, vector<16x32xf32> -> vector<16x32xf32>
    %56 = arith.index_cast %1 : i32 to index
    %c64 = arith.constant 64 : index
    %57 = vector.load %arg18[%56, %c64] : memref<16x384xbf16, #tpu.memory_space<vmem>>, vector<16x32xbf16>
    %c0_23 = arith.constant 0 : index
    %c192 = arith.constant 192 : index
    %58 = vector.load %arg18[%c0_23, %c192] : memref<16x384xbf16, #tpu.memory_space<vmem>>, vector<16x32xbf16>
    %c0_24 = arith.constant 0 : index
    %c320 = arith.constant 320 : index
    %59 = vector.load %arg18[%c0_24, %c320] : memref<16x384xbf16, #tpu.memory_space<vmem>>, vector<16x32xbf16>
    "tpu.trace_start"() <{level = 10 : i32, message = "qd,kd->qk"}> : () -> ()
    %cst_25 = arith.constant dense<0.000000e+00> : vector<16x16xf32>
    %60 = tpu.matmul %57, %58, %cst_25 {dimension_numbers = #tpu.dot_dimension_numbers<[1], [1], [0], [0], [0, 0, 1, 0], [], []>} : vector<16x32xbf16>, vector<16x32xbf16>, vector<16x16xf32> -> vector<16x16xf32>
    "tpu.trace_stop"() : () -> ()
    %61 = vector.shape_cast %6 : vector<16xf32> to vector<1x16xf32>
    %62 = vector.broadcast %61 : vector<1x16xf32> to vector<16x16xf32>
    %63 = arith.addf %60, %62 : vector<16x16xf32>
    %cst_26 = arith.constant dense<0xFF800000> : vector<16xf32>
    %64 = vector.multi_reduction <maximumf>, %63, %cst_26 [1] : vector<16x16xf32> to vector<16xf32>
    %65 = vector.shape_cast %64 : vector<16xf32> to vector<16x1xf32>
    %66 = vector.broadcast %65 : vector<16x1xf32> to vector<16x16xf32>
    %67 = arith.subf %63, %66 : vector<16x16xf32>
    %68 = math.exp %67 : vector<16x16xf32>
    %cst_27 = arith.constant dense<0.000000e+00> : vector<16xf32>
    %69 = vector.multi_reduction <add>, %68, %cst_27 [1] : vector<16x16xf32> to vector<16xf32>
    %70 = vector.shape_cast %69 : vector<16xf32> to vector<16x1xf32>
    %71 = tpu.reciprocal %70 {approx = true} : vector<16x1xf32> -> vector<16x1xf32>
    %72 = vector.broadcast %71 : vector<16x1xf32> to vector<16x16xf32>
    %73 = arith.mulf %68, %72 : vector<16x16xf32>
    %c0_28 = arith.constant 0 : index
    %c0_29 = arith.constant 0 : index
    %c0_30 = arith.constant 0 : index
    %74 = vector.load %arg17[%c0_28, %c0_29, %c0_30] : memref<1x16x16xf32, #tpu.memory_space<vmem>>, vector<1x16x16xf32>
    %75 = vector.shape_cast %74 : vector<1x16x16xf32> to vector<16x16xf32>
    %76 = arith.addf %75, %73 : vector<16x16xf32>
    %c0_31 = arith.constant 0 : index
    %c0_32 = arith.constant 0 : index
    %c0_33 = arith.constant 0 : index
    %77 = vector.load %arg17[%c0_31, %c0_32, %c0_33] : memref<1x16x16xf32, #tpu.memory_space<vmem>>, vector<1x16x16xf32>
    %78 = vector.shape_cast %77 : vector<1x16x16xf32> to vector<16x16xf32>
    %79 = vector.shape_cast %76 : vector<16x16xf32> to vector<1x16x16xf32>
    tpu.vector_store %arg17[%c0_31, %c0_32, %c0_33], %79 {strides = array<i32>} : memref<1x16x16xf32, #tpu.memory_space<vmem>>, vector<1x16x16xf32>,
    %80 = arith.truncf %73 : vector<16x16xf32> to vector<16x16xbf16>
    %cst_34 = arith.constant dense<0.000000e+00> : vector<16x32xf32>
    %81 = tpu.matmul %80, %59, %cst_34 {dimension_numbers = #tpu.dot_dimension_numbers<[1], [0], [0], [1], [0, 0, 1, 1], [], []>} : vector<16x16xbf16>, vector<16x32xbf16>, vector<16x32xf32> -> vector<16x32xf32>
    %82 = arith.index_cast %1 : i32 to index
    %c96 = arith.constant 96 : index
    %83 = vector.load %arg18[%82, %c96] : memref<16x384xbf16, #tpu.memory_space<vmem>>, vector<16x32xbf16>
    %c0_35 = arith.constant 0 : index
    %c224 = arith.constant 224 : index
    %84 = vector.load %arg18[%c0_35, %c224] : memref<16x384xbf16, #tpu.memory_space<vmem>>, vector<16x32xbf16>
    %c0_36 = arith.constant 0 : index
    %c352 = arith.constant 352 : index
    %85 = vector.load %arg18[%c0_36, %c352] : memref<16x384xbf16, #tpu.memory_space<vmem>>, vector<16x32xbf16>
    "tpu.trace_start"() <{level = 10 : i32, message = "qd,kd->qk"}> : () -> ()
    %cst_37 = arith.constant dense<0.000000e+00> : vector<16x16xf32>
    %86 = tpu.matmul %83, %84, %cst_37 {dimension_numbers = #tpu.dot_dimension_numbers<[1], [1], [0], [0], [0, 0, 1, 0], [], []>} : vector<16x32xbf16>, vector<16x32xbf16>, vector<16x16xf32> -> vector<16x16xf32>
    "tpu.trace_stop"() : () -> ()
    %87 = vector.shape_cast %6 : vector<16xf32> to vector<1x16xf32>
    %88 = vector.broadcast %87 : vector<1x16xf32> to vector<16x16xf32>
    %89 = arith.addf %86, %88 : vector<16x16xf32>
    %cst_38 = arith.constant dense<0xFF800000> : vector<16xf32>
    %90 = vector.multi_reduction <maximumf>, %89, %cst_38 [1] : vector<16x16xf32> to vector<16xf32>
    %91 = vector.shape_cast %90 : vector<16xf32> to vector<16x1xf32>
    %92 = vector.broadcast %91 : vector<16x1xf32> to vector<16x16xf32>
    %93 = arith.subf %89, %92 : vector<16x16xf32>
    %94 = math.exp %93 : vector<16x16xf32>
    %cst_39 = arith.constant dense<0.000000e+00> : vector<16xf32>
    %95 = vector.multi_reduction <add>, %94, %cst_39 [1] : vector<16x16xf32> to vector<16xf32>
    %96 = vector.shape_cast %95 : vector<16xf32> to vector<16x1xf32>
    %97 = tpu.reciprocal %96 {approx = true} : vector<16x1xf32> -> vector<16x1xf32>
    %98 = vector.broadcast %97 : vector<16x1xf32> to vector<16x16xf32>
    %99 = arith.mulf %94, %98 : vector<16x16xf32>
    %c0_40 = arith.constant 0 : index
    %c0_41 = arith.constant 0 : index
    %c0_42 = arith.constant 0 : index
    %100 = vector.load %arg17[%c0_40, %c0_41, %c0_42] : memref<1x16x16xf32, #tpu.memory_space<vmem>>, vector<1x16x16xf32>
    %101 = vector.shape_cast %100 : vector<1x16x16xf32> to vector<16x16xf32>
    %102 = arith.addf %101, %99 : vector<16x16xf32>
    %c0_43 = arith.constant 0 : index
    %c0_44 = arith.constant 0 : index
    %c0_45 = arith.constant 0 : index
    %103 = vector.load %arg17[%c0_43, %c0_44, %c0_45] : memref<1x16x16xf32, #tpu.memory_space<vmem>>, vector<1x16x16xf32>
    %104 = vector.shape_cast %103 : vector<1x16x16xf32> to vector<16x16xf32>
    %105 = vector.shape_cast %102 : vector<16x16xf32> to vector<1x16x16xf32>
    tpu.vector_store %arg17[%c0_43, %c0_44, %c0_45], %105 {strides = array<i32>} : memref<1x16x16xf32, #tpu.memory_space<vmem>>, vector<1x16x16xf32>,
    %106 = arith.truncf %99 : vector<16x16xf32> to vector<16x16xbf16>
    %cst_46 = arith.constant dense<0.000000e+00> : vector<16x32xf32>
    %107 = tpu.matmul %106, %85, %cst_46 {dimension_numbers = #tpu.dot_dimension_numbers<[1], [0], [0], [1], [0, 0, 1, 1], [], []>} : vector<16x16xbf16>, vector<16x32xbf16>, vector<16x32xf32> -> vector<16x32xf32>
    %108 = tpu.concatenate %29, %55, %81, %107 in 1 : vector<16x32xf32>, vector<16x32xf32>, vector<16x32xf32>, vector<16x32xf32> -> vector<16x128xf32>
    %109 = arith.truncf %108 : vector<16x128xf32> to vector<16x128xbf16>
    %c0_47 = arith.constant 0 : index
    %c0_48 = arith.constant 0 : index
    %110 = vector.load %arg19[%c0_47, %c0_48] : memref<16x128xbf16, #tpu.memory_space<vmem>>, vector<16x128xbf16>
    tpu.vector_store %arg19[%c0_47, %c0_48], %109 {strides = array<i32>} : memref<16x128xbf16, #tpu.memory_space<vmem>>, vector<16x128xbf16>,
    %c0_49 = arith.constant 0 : index
    %c0_50 = arith.constant 0 : index
    %c0_51 = arith.constant 0 : index
    %111 = vector.load %arg17[%c0_49, %c0_50, %c0_51] : memref<1x16x16xf32, #tpu.memory_space<vmem>>, vector<1x16x16xf32>
    %112 = vector.shape_cast %111 : vector<1x16x16xf32> to vector<16x16xf32>
    %cst_52 = arith.constant 2.500000e-01 : f32
    %113 = vector.broadcast %cst_52 : f32 to vector<16x16xf32>
    %114 = arith.mulf %112, %113 : vector<16x16xf32>
    %c0_53 = arith.constant 0 : index
    %c0_54 = arith.constant 0 : index
    %c0_55 = arith.constant 0 : index
    %115 = vector.load %arg17[%c0_53, %c0_54, %c0_55] : memref<1x16x16xf32, #tpu.memory_space<vmem>>, vector<1x16x16xf32>
    %116 = vector.shape_cast %115 : vector<1x16x16xf32> to vector<16x16xf32>
    %117 = vector.shape_cast %114 : vector<16x16xf32> to vector<1x16x16xf32>
    tpu.vector_store %arg17[%c0_53, %c0_54, %c0_55], %117 {strides = array<i32>} : memref<1x16x16xf32, #tpu.memory_space<vmem>>, vector<1x16x16xf32>,
    %c0_56 = arith.constant 0 : index
    %c0_57 = arith.constant 0 : index
    %118 = vector.load %arg19[%c0_56, %c0_57] : memref<16x128xbf16, #tpu.memory_space<vmem>>, vector<16x128xbf16>
    %c0_58 = arith.constant 0 : index
    %c0_59 = arith.constant 0 : index
    %119 = vector.load %arg8[%c0_58, %c0_59] : memref<128x128xbf16, #tpu.memory_space<vmem>>, vector<128x128xbf16>
    %cst_60 = arith.constant dense<0.000000e+00> : vector<16x128xf32>
    %120 = tpu.matmul %118, %119, %cst_60 {dimension_numbers = #tpu.dot_dimension_numbers<[1], [0], [0], [1], [0, 0, 1, 1], [], []>} : vector<16x128xbf16>, vector<128x128xbf16>, vector<16x128xf32> -> vector<16x128xf32>
    %c0_61 = arith.constant 0 : index
    %c0_62 = arith.constant 0 : index
    %121 = vector.load %arg9[%c0_61, %c0_62] : memref<1x128xf32, #tpu.memory_space<vmem>>, vector<1x128xf32>
    %122 = vector.shape_cast %121 : vector<1x128xf32> to vector<128xf32>
    %123 = vector.shape_cast %122 : vector<128xf32> to vector<1x128xf32>
    %124 = vector.broadcast %123 : vector<1x128xf32> to vector<16x128xf32>
    %125 = arith.addf %120, %124 : vector<16x128xf32>
    %c0_63 = arith.constant 0 : index
    %126 = arith.index_cast %1 : i32 to index
    %c0_64 = arith.constant 0 : index
    %127 = vector.load %arg2[%c0_63, %126, %c0_64] : memref<1x16x128xf32, #tpu.memory_space<vmem>>, vector<1x16x128xf32>
    %128 = vector.shape_cast %127 : vector<1x16x128xf32> to vector<16x128xf32>
    %129 = arith.addf %128, %125 : vector<16x128xf32>
    %c0_65 = arith.constant 0 : index
    %c0_66 = arith.constant 0 : index
    %130 = vector.load %arg10[%c0_65, %c0_66] : memref<1x128xf32, #tpu.memory_space<vmem>>, vector<1x128xf32>
    %131 = vector.shape_cast %130 : vector<1x128xf32> to vector<128xf32>
    %c0_67 = arith.constant 0 : index
    %c0_68 = arith.constant 0 : index
    %132 = vector.load %arg11[%c0_67, %c0_68] : memref<1x128xf32, #tpu.memory_space<vmem>>, vector<1x128xf32>
    %133 = vector.shape_cast %132 : vector<1x128xf32> to vector<128xf32>
    %cst_69 = arith.constant dense<0.000000e+00> : vector<16xf32>
    %134 = vector.multi_reduction <add>, %129, %cst_69 [1] : vector<16x128xf32> to vector<16xf32>
    %135 = vector.shape_cast %134 : vector<16xf32> to vector<16x1xf32>
    %cst_70 = arith.constant 1.280000e+02 : f32
    %136 = vector.broadcast %cst_70 : f32 to vector<16x1xf32>
    %137 = arith.divf %135, %136 : vector<16x1xf32>
    %138 = vector.broadcast %137 : vector<16x1xf32> to vector<16x128xf32>
    %139 = arith.subf %129, %138 : vector<16x128xf32>
    %140 = arith.mulf %139, %139 : vector<16x128xf32>
    %cst_71 = arith.constant dense<0.000000e+00> : vector<16xf32>
    %141 = vector.multi_reduction <add>, %140, %cst_71 [1] : vector<16x128xf32> to vector<16xf32>
    %142 = vector.shape_cast %141 : vector<16xf32> to vector<16x1xf32>
    %cst_72 = arith.constant 1.280000e+02 : f32
    %143 = vector.broadcast %cst_72 : f32 to vector<16x1xf32>
    %144 = arith.divf %142, %143 : vector<16x1xf32>
    %145 = vector.broadcast %137 : vector<16x1xf32> to vector<16x128xf32>
    %146 = arith.subf %129, %145 : vector<16x128xf32>
    %cst_73 = arith.constant 9.99999974E-6 : f32
    %147 = vector.broadcast %cst_73 : f32 to vector<16x1xf32>
    %148 = arith.addf %144, %147 : vector<16x1xf32>
    %149 = math.rsqrt %148 : vector<16x1xf32>
    %150 = vector.broadcast %149 : vector<16x1xf32> to vector<16x128xf32>
    %151 = arith.mulf %146, %150 : vector<16x128xf32>
    %152 = vector.shape_cast %131 : vector<128xf32> to vector<1x128xf32>
    %153 = vector.broadcast %152 : vector<1x128xf32> to vector<16x128xf32>
    %154 = arith.mulf %151, %153 : vector<16x128xf32>
    %155 = vector.shape_cast %133 : vector<128xf32> to vector<1x128xf32>
    %156 = vector.broadcast %155 : vector<1x128xf32> to vector<16x128xf32>
    %157 = arith.addf %154, %156 : vector<16x128xf32>
    %158 = arith.truncf %157 : vector<16x128xf32> to vector<16x128xbf16>
    %c0_74 = arith.constant 0 : index
    %c0_75 = arith.constant 0 : index
    %159 = vector.load %arg12[%c0_74, %c0_75] : memref<128x512xbf16, #tpu.memory_space<vmem>>, vector<128x512xbf16>
    %cst_76 = arith.constant dense<0.000000e+00> : vector<16x512xf32>
    %160 = tpu.matmul %158, %159, %cst_76 {dimension_numbers = #tpu.dot_dimension_numbers<[1], [0], [0], [1], [0, 0, 1, 1], [], []>} : vector<16x128xbf16>, vector<128x512xbf16>, vector<16x512xf32> -> vector<16x512xf32>
    %c0_77 = arith.constant 0 : index
    %c0_78 = arith.constant 0 : index
    %161 = vector.load %arg13[%c0_77, %c0_78] : memref<1x512xf32, #tpu.memory_space<vmem>>, vector<1x512xf32>
    %162 = vector.shape_cast %161 : vector<1x512xf32> to vector<512xf32>
    %163 = vector.shape_cast %162 : vector<512xf32> to vector<1x512xf32>
    %164 = vector.broadcast %163 : vector<1x512xf32> to vector<16x512xf32>
    %165 = arith.addf %160, %164 : vector<16x512xf32>
    %cst_79 = arith.constant 1.702000e+00 : f32
    %166 = vector.broadcast %cst_79 : f32 to vector<16x512xf32>
    %167 = arith.mulf %166, %165 : vector<16x512xf32>
    %168 = arith.negf %167 : vector<16x512xf32>
    %169 = math.exp %168 : vector<16x512xf32>
    %cst_80 = arith.constant 1.000000e+00 : f32
    %170 = vector.broadcast %cst_80 : f32 to vector<16x512xf32>
    %171 = arith.addf %170, %169 : vector<16x512xf32>
    %172 = arith.divf %170, %171 : vector<16x512xf32>
    %173 = arith.mulf %165, %172 : vector<16x512xf32>
    %174 = arith.truncf %173 : vector<16x512xf32> to vector<16x512xbf16>
    %c0_81 = arith.constant 0 : index
    %c0_82 = arith.constant 0 : index
    %175 = vector.load %arg14[%c0_81, %c0_82] : memref<512x128xbf16, #tpu.memory_space<vmem>>, vector<512x128xbf16>
    %cst_83 = arith.constant dense<0.000000e+00> : vector<16x128xf32>
    %176 = tpu.matmul %174, %175, %cst_83 {dimension_numbers = #tpu.dot_dimension_numbers<[1], [0], [0], [1], [0, 0, 1, 1], [], []>} : vector<16x512xbf16>, vector<512x128xbf16>, vector<16x128xf32> -> vector<16x128xf32>
    %c0_84 = arith.constant 0 : index
    %c0_85 = arith.constant 0 : index
    %177 = vector.load %arg15[%c0_84, %c0_85] : memref<1x128xf32, #tpu.memory_space<vmem>>, vector<1x128xf32>
    %178 = vector.shape_cast %177 : vector<1x128xf32> to vector<128xf32>
    %179 = vector.shape_cast %178 : vector<128xf32> to vector<1x128xf32>
    %180 = vector.broadcast %179 : vector<1x128xf32> to vector<16x128xf32>
    %181 = arith.addf %176, %180 : vector<16x128xf32>
    %182 = arith.addf %129, %181 : vector<16x128xf32>
    %c0_86 = arith.constant 0 : index
    %c0_87 = arith.constant 0 : index
    %c0_88 = arith.constant 0 : index
    %183 = vector.load %arg16[%c0_86, %c0_87, %c0_88] : memref<1x16x128xf32, #tpu.memory_space<vmem>>, vector<1x16x128xf32>
    %184 = vector.shape_cast %183 : vector<1x16x128xf32> to vector<16x128xf32>
    %185 = vector.shape_cast %182 : vector<16x128xf32> to vector<1x16x128xf32>
    tpu.vector_store %arg16[%c0_86, %c0_87, %c0_88], %185 {strides = array<i32>} : memref<1x16x128xf32, #tpu.memory_space<vmem>>, vector<1x16x128xf32>,
    return
  }
  func.func @transform_0(%arg0: i32, %arg1: i32) -> (i32, i32, i32) {
    %c0_i32 = arith.constant 0 : i32
    %c0_i32_0 = arith.constant 0 : i32
    %c0_i32_1 = arith.constant 0 : i32
    return %arg0, %c0_i32, %c0_i32_0 : i32, i32, i32
  }
  func.func @transform_1(%arg0: i32, %arg1: i32) -> (i32, i32) {
    %c0_i32 = arith.constant 0 : i32
    %c0_i32_0 = arith.constant 0 : i32
    %c0_i32_1 = arith.constant 0 : i32
    return %c0_i32, %c0_i32_0 : i32, i32
  }
  func.func @transform_2(%arg0: i32, %arg1: i32) -> (i32, i32) {
    %c0_i32 = arith.constant 0 : i32
    %c0_i32_0 = arith.constant 0 : i32
    %c0_i32_1 = arith.constant 0 : i32
    return %c0_i32, %c0_i32_0 : i32, i32
  }
  func.func @transform_3(%arg0: i32, %arg1: i32) -> (i32, i32) {
    %c0_i32 = arith.constant 0 : i32
    %c0_i32_0 = arith.constant 0 : i32
    %c0_i32_1 = arith.constant 0 : i32
    return %c0_i32, %c0_i32_0 : i32, i32
  }
  func.func @transform_4(%arg0: i32, %arg1: i32) -> (i32, i32) {
    %c0_i32 = arith.constant 0 : i32
    %c0_i32_0 = arith.constant 0 : i32
    %c0_i32_1 = arith.constant 0 : i32
    return %c0_i32, %c0_i32_0 : i32, i32
  }
  func.func @transform_5(%arg0: i32, %arg1: i32) -> (i32, i32) {
    %c0_i32 = arith.constant 0 : i32
    %c0_i32_0 = arith.constant 0 : i32
    %c0_i32_1 = arith.constant 0 : i32
    return %c0_i32, %c0_i32_0 : i32, i32
  }
  func.func @transform_6(%arg0: i32, %arg1: i32) -> (i32, i32) {
    %c0_i32 = arith.constant 0 : i32
    %c0_i32_0 = arith.constant 0 : i32
    %c0_i32_1 = arith.constant 0 : i32
    return %c0_i32, %c0_i32_0 : i32, i32
  }
  func.func @transform_7(%arg0: i32, %arg1: i32) -> (i32, i32) {
    %c0_i32 = arith.constant 0 : i32
    %c0_i32_0 = arith.constant 0 : i32
    %c0_i32_1 = arith.constant 0 : i32
    return %c0_i32, %c0_i32_0 : i32, i32
  }
  func.func @transform_8(%arg0: i32, %arg1: i32) -> (i32, i32) {
    %c0_i32 = arith.constant 0 : i32
    %c0_i32_0 = arith.constant 0 : i32
    %c0_i32_1 = arith.constant 0 : i32
    return %c0_i32, %c0_i32_0 : i32, i32
  }
  func.func @transform_9(%arg0: i32, %arg1: i32) -> (i32, i32) {
    %c0_i32 = arith.constant 0 : i32
    %c0_i32_0 = arith.constant 0 : i32
    %c0_i32_1 = arith.constant 0 : i32
    return %c0_i32, %c0_i32_0 : i32, i32
  }
  func.func @transform_10(%arg0: i32, %arg1: i32) -> (i32, i32) {
    %c0_i32 = arith.constant 0 : i32
    %c0_i32_0 = arith.constant 0 : i32
    %c0_i32_1 = arith.constant 0 : i32
    return %c0_i32, %c0_i32_0 : i32, i32
  }
  func.func @transform_11(%arg0: i32, %arg1: i32) -> (i32, i32) {
    %c0_i32 = arith.constant 0 : i32
    %c0_i32_0 = arith.constant 0 : i32
    %c0_i32_1 = arith.constant 0 : i32
    return %c0_i32, %c0_i32_0 : i32, i32
  }
  func.func @transform_12(%arg0: i32, %arg1: i32) -> (i32, i32) {
    %c0_i32 = arith.constant 0 : i32
    %c0_i32_0 = arith.constant 0 : i32
    %c0_i32_1 = arith.constant 0 : i32
    return %c0_i32, %c0_i32_0 : i32, i32
  }
  func.func @transform_13(%arg0: i32, %arg1: i32) -> (i32, i32) {
    %c0_i32 = arith.constant 0 : i32
    %c0_i32_0 = arith.constant 0 : i32
    %c0_i32_1 = arith.constant 0 : i32
    return %c0_i32, %c0_i32_0 : i32, i32
  }
  func.func @transform_14(%arg0: i32, %arg1: i32) -> (i32, i32, i32) {
    %c0_i32 = arith.constant 0 : i32
    %c0_i32_0 = arith.constant 0 : i32
    return %arg0, %arg1, %c0_i32 : i32, i32, i32
  }
  func.func @transform_15(%arg0: i32, %arg1: i32) -> (i32, i32, i32) {
    %c0_i32 = arith.constant 0 : i32
    %c0_i32_0 = arith.constant 0 : i32
    return %arg0, %arg1, %c0_i32 : i32, i32, i32
  }
}

module attributes {stable_mosaic.version = 11 : i64} {
  func.func @_resblock_kernel(%arg0: i32, %arg1: i32, %arg2: memref<1x16x128xf32, #tpu.memory_space<vmem>>, %arg3: memref<1x16xf32, #tpu.memory_space<vmem>>, %arg4: memref<1x128xf32, #tpu.memory_space<vmem>>, %arg5: memref<1x128xf32, #tpu.memory_space<vmem>>, %arg6: memref<128x384xbf16, #tpu.memory_space<vmem>>, %arg7: memref<1x384xf32, #tpu.memory_space<vmem>>, %arg8: memref<128x128xbf16, #tpu.memory_space<vmem>>, %arg9: memref<1x128xf32, #tpu.memory_space<vmem>>, %arg10: memref<1x128xf32, #tpu.memory_space<vmem>>, %arg11: memref<1x128xf32, #tpu.memory_space<vmem>>, %arg12: memref<128x512xbf16, #tpu.memory_space<vmem>>, %arg13: memref<1x512xf32, #tpu.memory_space<vmem>>, %arg14: memref<512x128xbf16, #tpu.memory_space<vmem>>, %arg15: memref<1x128xf32, #tpu.memory_space<vmem>>, %arg16: memref<1x16x128xf32, #tpu.memory_space<vmem>>, %arg17: memref<1x16x16xf32, #tpu.memory_space<vmem>>, %arg18: memref<16x384xbf16, #tpu.memory_space<vmem>>, %arg19: memref<16x128xbf16, #tpu.memory_space<vmem>>) attributes {dimension_semantics = [#tpu.dimension_semantics<parallel>, #tpu.dimension_semantics<arbitrary>], iteration_bounds = array<i64: 2, 1>, scalar_prefetch = 0 : i64, scratch_operands = 2 : i64, tpu.core_type = #tpu.core_type<tc>, window_params = [{transform_indices = @transform_0, window_bounds = array<i64: 1, 16, 128>}, {pipeline_mode = #tpu.pipeline_mode<synchronous>, transform_indices = @transform_1, window_bounds = array<i64: 1, 16>}, {pipeline_mode = #tpu.pipeline_mode<synchronous>, transform_indices = @transform_2, window_bounds = array<i64: 1, 128>}, {pipeline_mode = #tpu.pipeline_mode<synchronous>, transform_indices = @transform_3, window_bounds = array<i64: 1, 128>}, {pipeline_mode = #tpu.pipeline_mode<synchronous>, transform_indices = @transform_4, window_bounds = array<i64: 128, 384>}, {pipeline_mode = #tpu.pipeline_mode<synchronous>, transform_indices = @transform_5, window_bounds = array<i64: 1, 384>}, {pipeline_mode = #tpu.pipeline_mode<synchronous>, transform_indices = @transform_6, window_bounds = array<i64: 128, 128>}, {pipeline_mode = #tpu.pipeline_mode<synchronous>, transform_indices = @transform_7, window_bounds = array<i64: 1, 128>}, {pipeline_mode = #tpu.pipeline_mode<synchronous>, transform_indices = @transform_8, window_bounds = array<i64: 1, 128>}, {pipeline_mode = #tpu.pipeline_mode<synchronous>, transform_indices = @transform_9, window_bounds = array<i64: 1, 128>}, {pipeline_mode = #tpu.pipeline_mode<synchronous>, transform_indices = @transform_10, window_bounds = array<i64: 128, 512>}, {pipeline_mode = #tpu.pipeline_mode<synchronous>, transform_indices = @transform_11, window_bounds = array<i64: 1, 512>}, {pipeline_mode = #tpu.pipeline_mode<synchronous>, transform_indices = @transform_12, window_bounds = array<i64: 512, 128>}, {pipeline_mode = #tpu.pipeline_mode<synchronous>, transform_indices = @transform_13, window_bounds = array<i64: 1, 128>}, {transform_indices = @transform_14, window_bounds = array<i64: 1, 16, 128>}, {transform_indices = @transform_15, window_bounds = array<i64: 1, 16, 16>}]} {
    %c16_i32 = arith.constant 16 : i32
    %0 = arith.muli %arg1, %c16_i32 : i32
    %1 = tpu.assume_multiple %0, 16 : i32
    %c0_i32 = arith.constant 0 : i32
    %2 = arith.cmpi eq, %arg1, %c0_i32 : i32
    %3 = arith.extui %2 : i1 to i32
    %c0_i32_0 = arith.constant 0 : i32
    %4 = arith.cmpi ne, %3, %c0_i32_0 : i32
    scf.if %4 {
      %c0_89 = arith.constant 0 : index
      %c0_90 = arith.constant 0 : index
      %c0_91 = arith.constant 0 : index
      %186 = vector.load %arg2[%c0_89, %c0_90, %c0_91] : memref<1x16x128xf32, #tpu.memory_space<vmem>>, vector<1x16x128xf32>
      %187 = vector.shape_cast %186 : vector<1x16x128xf32> to vector<16x128xf32>
      %c0_92 = arith.constant 0 : index
      %c0_93 = arith.constant 0 : index
      %188 = vector.load %arg4[%c0_92, %c0_93] : memref<1x128xf32, #tpu.memory_space<vmem>>, vector<1x128xf32>
      %189 = vector.shape_cast %188 : vector<1x128xf32> to vector<128xf32>
      %c0_94 = arith.constant 0 : index
      %c0_95 = arith.constant 0 : index
      %190 = vector.load %arg5[%c0_94, %c0_95] : memref<1x128xf32, #tpu.memory_space<vmem>>, vector<1x128xf32>
      %191 = vector.shape_cast %190 : vector<1x128xf32> to vector<128xf32>
      %cst_96 = arith.constant dense<0.000000e+00> : vector<16xf32>
      %192 = vector.multi_reduction <add>, %187, %cst_96 [1] : vector<16x128xf32> to vector<16xf32>
      %193 = vector.shape_cast %192 : vector<16xf32> to vector<16x1xf32>
      %cst_97 = arith.constant 1.280000e+02 : f32
      %194 = vector.broadcast %cst_97 : f32 to vector<16x1xf32>
      %195 = arith.divf %193, %194 : vector<16x1xf32>
      %196 = vector.broadcast %195 : vector<16x1xf32> to vector<16x128xf32>
      %197 = arith.subf %187, %196 : vector<16x128xf32>
      %198 = arith.mulf %197, %197 : vector<16x128xf32>
      %cst_98 = arith.constant dense<0.000000e+00> : vector<16xf32>
      %199 = vector.multi_reduction <add>, %198, %cst_98 [1] : vector<16x128xf32> to vector<16xf32>
      %200 = vector.shape_cast %199 : vector<16xf32> to vector<16x1xf32>
      %cst_99 = arith.constant 1.280000e+02 : f32
      %201 = vector.broadcast %cst_99 : f32 to vector<16x1xf32>
      %202 = arith.divf %200, %201 : vector<16x1xf32>
      %203 = vector.broadcast %195 : vector<16x1xf32> to vector<16x128xf32>
      %204 = arith.subf %187, %203 : vector<16x128xf32>
      %cst_100 = arith.constant 9.99999974E-6 : f32
      %205 = vector.broadcast %cst_100 : f32 to vector<16x1xf32>
      %206 = arith.addf %202, %205 : vector<16x1xf32>
      %207 = math.rsqrt %206 : vector<16x1xf32>
      %208 = vector.broadcast %207 : vector<16x1xf32> to vector<16x128xf32>
      %209 = arith.mulf %204, %208 : vector<16x128xf32>
      %210 = vector.shape_cast %189 : vector<128xf32> to vector<1x128xf32>
      %211 = vector.broadcast %210 : vector<1x128xf32> to vector<16x128xf32>
      %212 = arith.mulf %209, %211 : vector<16x128xf32>
      %213 = vector.shape_cast %191 : vector<128xf32> to vector<1x128xf32>
      %214 = vector.broadcast %213 : vector<1x128xf32> to vector<16x128xf32>
      %215 = arith.addf %212, %214 : vector<16x128xf32>
      %216 = arith.truncf %215 : vector<16x128xf32> to vector<16x128xbf16>
      %c0_101 = arith.constant 0 : index
      %c0_102 = arith.constant 0 : index
      %217 = vector.load %arg6[%c0_101, %c0_102] : memref<128x384xbf16, #tpu.memory_space<vmem>>, vector<128x384xbf16>
      %cst_103 = arith.constant dense<0.000000e+00> : vector<16x384xf32>
      %218 = tpu.matmul %216, %217, %cst_103 {dimension_numbers = #tpu.dot_dimension_numbers<[1], [0], [0], [1], [0, 0, 1, 1], [], []>} : vector<16x128xbf16>, vector<128x384xbf16>, vector<16x384xf32> -> vector<16x384xf32>
      %c0_104 = arith.constant 0 : index
      %c0_105 = arith.constant 0 : index
      %219 = vector.load %arg7[%c0_104, %c0_105] : memref<1x384xf32, #tpu.memory_space<vmem>>, vector<1x384xf32>
      %220 = vector.shape_cast %219 : vector<1x384xf32> to vector<384xf32>
      %221 = vector.shape_cast %220 : vector<384xf32> to vector<1x384xf32>
      %222 = vector.broadcast %221 : vector<1x384xf32> to vector<16x384xf32>
      %223 = arith.addf %218, %222 : vector<16x384xf32>
      %224 = arith.truncf %223 : vector<16x384xf32> to vector<16x384xbf16>
      %c0_106 = arith.constant 0 : index
      %c0_107 = arith.constant 0 : index
      %225 = vector.load %arg18[%c0_106, %c0_107] : memref<16x384xbf16, #tpu.memory_space<vmem>>, vector<16x384xbf16>
      tpu.vector_store %arg18[%c0_106, %c0_107], %224 {strides = array<i32>} : memref<16x384xbf16, #tpu.memory_space<vmem>>, vector<16x384xbf16>,
    } else {
    }
    %c0 = arith.constant 0 : index
    %c0_1 = arith.constant 0 : index
    %5 = vector.load %arg3[%c0, %c0_1] : memref<1x16xf32, #tpu.memory_space<vmem>>, vector<1x16xf32>
    %6 = vector.shape_cast %5 : vector<1x16xf32> to vector<16xf32>
    %7 = arith.index_cast %1 : i32 to index
    %c0_2 = arith.constant 0 : index
    %8 = vector.load %arg18[%7, %c0_2] : memref<16x384xbf16, #tpu.memory_space<vmem>>, vector<16x32xbf16>
    %c0_3 = arith.constant 0 : index
    %c128 = arith.constant 128 : index
    %9 = vector.load %arg18[%c0_3, %c128] : memref<16x384xbf16, #tpu.memory_space<vmem>>, vector<16x32xbf16>
    %c0_4 = arith.constant 0 : index
    %c256 = arith.constant 256 : index
    %10 = vector.load %arg18[%c0_4, %c256] : memref<16x384xbf16, #tpu.memory_space<vmem>>, vector<16x32xbf16>
    "tpu.trace_start"() <{level = 10 : i32, message = "qd,kd->qk"}> : () -> ()
    %cst = arith.constant dense<0.000000e+00> : vector<16x16xf32>
    %11 = tpu.matmul %8, %9, %cst {dimension_numbers = #tpu.dot_dimension_numbers<[1], [1], [0], [0], [0, 0, 1, 0], [], []>} : vector<16x32xbf16>, vector<16x32xbf16>, vector<16x16xf32> -> vector<16x16xf32>
    "tpu.trace_stop"() : () -> ()
    %12 = vector.shape_cast %6 : vector<16xf32> to vector<1x16xf32>
    %13 = vector.broadcast %12 : vector<1x16xf32> to vector<16x16xf32>
    %14 = arith.addf %11, %13 : vector<16x16xf32>
    %cst_5 = arith.constant dense<0xFF800000> : vector<16xf32>
    %15 = vector.multi_reduction <maximumf>, %14, %cst_5 [1] : vector<16x16xf32> to vector<16xf32>
    %16 = vector.shape_cast %15 : vector<16xf32> to vector<16x1xf32>
    %17 = vector.broadcast %16 : vector<16x1xf32> to vector<16x16xf32>
    %18 = arith.subf %14, %17 : vector<16x16xf32>
    %19 = math.exp %18 : vector<16x16xf32>
    %cst_6 = arith.constant dense<0.000000e+00> : vector<16xf32>
    %20 = vector.multi_reduction <add>, %19, %cst_6 [1] : vector<16x16xf32> to vector<16xf32>
    %21 = vector.shape_cast %20 : vector<16xf32> to vector<16x1xf32>
    %22 = tpu.reciprocal %21 {approx = true} : vector<16x1xf32> -> vector<16x1xf32>
    %23 = vector.broadcast %22 : vector<16x1xf32> to vector<16x16xf32>
    %24 = arith.mulf %19, %23 : vector<16x16xf32>
    %c0_7 = arith.constant 0 : index
    %c0_8 = arith.constant 0 : index
    %c0_9 = arith.constant 0 : index
    %25 = vector.load %arg17[%c0_7, %c0_8, %c0_9] : memref<1x16x16xf32, #tpu.memory_space<vmem>>, vector<1x16x16xf32>
    %26 = vector.shape_cast %25 : vector<1x16x16xf32> to vector<16x16xf32>
    %27 = vector.shape_cast %24 : vector<16x16xf32> to vector<1x16x16xf32>
    tpu.vector_store %arg17[%c0_7, %c0_8, %c0_9], %27 {strides = array<i32>} : memref<1x16x16xf32, #tpu.memory_space<vmem>>, vector<1x16x16xf32>,
    %28 = arith.truncf %24 : vector<16x16xf32> to vector<16x16xbf16>
    %cst_10 = arith.constant dense<0.000000e+00> : vector<16x32xf32>
    %29 = tpu.matmul %28, %10, %cst_10 {dimension_numbers = #tpu.dot_dimension_numbers<[1], [0], [0], [1], [0, 0, 1, 1], [], []>} : vector<16x16xbf16>, vector<16x32xbf16>, vector<16x32xf32> -> vector<16x32xf32>
    %30 = arith.index_cast %1 : i32 to index
    %c32 = arith.constant 32 : index
    %31 = vector.load %arg18[%30, %c32] : memref<16x384xbf16, #tpu.memory_space<vmem>>, vector<16x32xbf16>
    %c0_11 = arith.constant 0 : index
    %c160 = arith.constant 160 : index
    %32 = vector.load %arg18[%c0_11, %c160] : memref<16x384xbf16, #tpu.memory_space<vmem>>, vector<16x32xbf16>
    %c0_12 = arith.constant 0 : index
    %c288 = arith.constant 288 : index
    %33 = vector.load %arg18[%c0_12, %c288] : memref<16x384xbf16, #tpu.memory_space<vmem>>, vector<16x32xbf16>
    "tpu.trace_start"() <{level = 10 : i32, message = "qd,kd->qk"}> : () -> ()
    %cst_13 = arith.constant dense<0.000000e+00> : vector<16x16xf32>
    %34 = tpu.matmul %31, %32, %cst_13 {dimension_numbers = #tpu.dot_dimension_numbers<[1], [1], [0], [0], [0, 0, 1, 0], [], []>} : vector<16x32xbf16>, vector<16x32xbf16>, vector<16x16xf32> -> vector<16x16xf32>
    "tpu.trace_stop"() : () -> ()
    %35 = vector.shape_cast %6 : vector<16xf32> to vector<1x16xf32>
    %36 = vector.broadcast %35 : vector<1x16xf32> to vector<16x16xf32>
    %37 = arith.addf %34, %36 : vector<16x16xf32>
    %cst_14 = arith.constant dense<0xFF800000> : vector<16xf32>
    %38 = vector.multi_reduction <maximumf>, %37, %cst_14 [1] : vector<16x16xf32> to vector<16xf32>
    %39 = vector.shape_cast %38 : vector<16xf32> to vector<16x1xf32>
    %40 = vector.broadcast %39 : vector<16x1xf32> to vector<16x16xf32>
    %41 = arith.subf %37, %40 : vector<16x16xf32>
    %42 = math.exp %41 : vector<16x16xf32>
    %cst_15 = arith.constant dense<0.000000e+00> : vector<16xf32>
    %43 = vector.multi_reduction <add>, %42, %cst_15 [1] : vector<16x16xf32> to vector<16xf32>
    %44 = vector.shape_cast %43 : vector<16xf32> to vector<16x1xf32>
    %45 = tpu.reciprocal %44 {approx = true} : vector<16x1xf32> -> vector<16x1xf32>
    %46 = vector.broadcast %45 : vector<16x1xf32> to vector<16x16xf32>
    %47 = arith.mulf %42, %46 : vector<16x16xf32>
    %c0_16 = arith.constant 0 : index
    %c0_17 = arith.constant 0 : index
    %c0_18 = arith.constant 0 : index
    %48 = vector.load %arg17[%c0_16, %c0_17, %c0_18] : memref<1x16x16xf32, #tpu.memory_space<vmem>>, vector<1x16x16xf32>
    %49 = vector.shape_cast %48 : vector<1x16x16xf32> to vector<16x16xf32>
    %50 = arith.addf %49, %47 : vector<16x16xf32>
    %c0_19 = arith.constant 0 : index
    %c0_20 = arith.constant 0 : index
    %c0_21 = arith.constant 0 : index
    %51 = vector.load %arg17[%c0_19, %c0_20, %c0_21] : memref<1x16x16xf32, #tpu.memory_space<vmem>>, vector<1x16x16xf32>
    %52 = vector.shape_cast %51 : vector<1x16x16xf32> to vector<16x16xf32>
    %53 = vector.shape_cast %50 : vector<16x16xf32> to vector<1x16x16xf32>
    tpu.vector_store %arg17[%c0_19, %c0_20, %c0_21], %53 {strides = array<i32>} : memref<1x16x16xf32, #tpu.memory_space<vmem>>, vector<1x16x16xf32>,
    %54 = arith.truncf %47 : vector<16x16xf32> to vector<16x16xbf16>
    %cst_22 = arith.constant dense<0.000000e+00> : vector<16x32xf32>
    %55 = tpu.matmul %54, %33, %cst_22 {dimension_numbers = #tpu.dot_dimension_numbers<[1], [0], [0], [1], [0, 0, 1, 1], [], []>} : vector<16x16xbf16>, vector<16x32xbf16>, vector<16x32xf32> -> vector<16x32xf32>
    %56 = arith.index_cast %1 : i32 to index
    %c64 = arith.constant 64 : index
    %57 = vector.load %arg18[%56, %c64] : memref<16x384xbf16, #tpu.memory_space<vmem>>, vector<16x32xbf16>
    %c0_23 = arith.constant 0 : index
    %c192 = arith.constant 192 : index
    %58 = vector.load %arg18[%c0_23, %c192] : memref<16x384xbf16, #tpu.memory_space<vmem>>, vector<16x32xbf16>
    %c0_24 = arith.constant 0 : index
    %c320 = arith.constant 320 : index
    %59 = vector.load %arg18[%c0_24, %c320] : memref<16x384xbf16, #tpu.memory_space<vmem>>, vector<16x32xbf16>
    "tpu.trace_start"() <{level = 10 : i32, message = "qd,kd->qk"}> : () -> ()
    %cst_25 = arith.constant dense<0.000000e+00> : vector<16x16xf32>
    %60 = tpu.matmul %57, %58, %cst_25 {dimension_numbers = #tpu.dot_dimension_numbers<[1], [1], [0], [0], [0, 0, 1, 0], [], []>} : vector<16x32xbf16>, vector<16x32xbf16>, vector<16x16xf32> -> vector<16x16xf32>
    "tpu.trace_stop"() : () -> ()
    %61 = vector.shape_cast %6 : vector<16xf32> to vector<1x16xf32>
    %62 = vector.broadcast %61 : vector<1x16xf32> to vector<16x16xf32>
    %63 = arith.addf %60, %62 : vector<16x16xf32>
    %cst_26 = arith.constant dense<0xFF800000> : vector<16xf32>
    %64 = vector.multi_reduction <maximumf>, %63, %cst_26 [1] : vector<16x16xf32> to vector<16xf32>
    %65 = vector.shape_cast %64 : vector<16xf32> to vector<16x1xf32>
    %66 = vector.broadcast %65 : vector<16x1xf32> to vector<16x16xf32>
    %67 = arith.subf %63, %66 : vector<16x16xf32>
    %68 = math.exp %67 : vector<16x16xf32>
    %cst_27 = arith.constant dense<0.000000e+00> : vector<16xf32>
    %69 = vector.multi_reduction <add>, %68, %cst_27 [1] : vector<16x16xf32> to vector<16xf32>
    %70 = vector.shape_cast %69 : vector<16xf32> to vector<16x1xf32>
    %71 = tpu.reciprocal %70 {approx = true} : vector<16x1xf32> -> vector<16x1xf32>
    %72 = vector.broadcast %71 : vector<16x1xf32> to vector<16x16xf32>
    %73 = arith.mulf %68, %72 : vector<16x16xf32>
    %c0_28 = arith.constant 0 : index
    %c0_29 = arith.constant 0 : index
    %c0_30 = arith.constant 0 : index
    %74 = vector.load %arg17[%c0_28, %c0_29, %c0_30] : memref<1x16x16xf32, #tpu.memory_space<vmem>>, vector<1x16x16xf32>
    %75 = vector.shape_cast %74 : vector<1x16x16xf32> to vector<16x16xf32>
    %76 = arith.addf %75, %73 : vector<16x16xf32>
    %c0_31 = arith.constant 0 : index
    %c0_32 = arith.constant 0 : index
    %c0_33 = arith.constant 0 : index
    %77 = vector.load %arg17[%c0_31, %c0_32, %c0_33] : memref<1x16x16xf32, #tpu.memory_space<vmem>>, vector<1x16x16xf32>
    %78 = vector.shape_cast %77 : vector<1x16x16xf32> to vector<16x16xf32>
    %79 = vector.shape_cast %76 : vector<16x16xf32> to vector<1x16x16xf32>
    tpu.vector_store %arg17[%c0_31, %c0_32, %c0_33], %79 {strides = array<i32>} : memref<1x16x16xf32, #tpu.memory_space<vmem>>, vector<1x16x16xf32>,
    %80 = arith.truncf %73 : vector<16x16xf32> to vector<16x16xbf16>
    %cst_34 = arith.constant dense<0.000000e+00> : vector<16x32xf32>
    %81 = tpu.matmul %80, %59, %cst_34 {dimension_numbers = #tpu.dot_dimension_numbers<[1], [0], [0], [1], [0, 0, 1, 1], [], []>} : vector<16x16xbf16>, vector<16x32xbf16>, vector<16x32xf32> -> vector<16x32xf32>
    %82 = arith.index_cast %1 : i32 to index
    %c96 = arith.constant 96 : index
    %83 = vector.load %arg18[%82, %c96] : memref<16x384xbf16, #tpu.memory_space<vmem>>, vector<16x32xbf16>
    %c0_35 = arith.constant 0 : index
    %c224 = arith.constant 224 : index
    %84 = vector.load %arg18[%c0_35, %c224] : memref<16x384xbf16, #tpu.memory_space<vmem>>, vector<16x32xbf16>
    %c0_36 = arith.constant 0 : index
    %c352 = arith.constant 352 : index
    %85 = vector.load %arg18[%c0_36, %c352] : memref<16x384xbf16, #tpu.memory_space<vmem>>, vector<16x32xbf16>
    "tpu.trace_start"() <{level = 10 : i32, message = "qd,kd->qk"}> : () -> ()
    %cst_37 = arith.constant dense<0.000000e+00> : vector<16x16xf32>
    %86 = tpu.matmul %83, %84, %cst_37 {dimension_numbers = #tpu.dot_dimension_numbers<[1], [1], [0], [0], [0, 0, 1, 0], [], []>} : vector<16x32xbf16>, vector<16x32xbf16>, vector<16x16xf32> -> vector<16x16xf32>
    "tpu.trace_stop"() : () -> ()
    %87 = vector.shape_cast %6 : vector<16xf32> to vector<1x16xf32>
    %88 = vector.broadcast %87 : vector<1x16xf32> to vector<16x16xf32>
    %89 = arith.addf %86, %88 : vector<16x16xf32>
    %cst_38 = arith.constant dense<0xFF800000> : vector<16xf32>
    %90 = vector.multi_reduction <maximumf>, %89, %cst_38 [1] : vector<16x16xf32> to vector<16xf32>
    %91 = vector.shape_cast %90 : vector<16xf32> to vector<16x1xf32>
    %92 = vector.broadcast %91 : vector<16x1xf32> to vector<16x16xf32>
    %93 = arith.subf %89, %92 : vector<16x16xf32>
    %94 = math.exp %93 : vector<16x16xf32>
    %cst_39 = arith.constant dense<0.000000e+00> : vector<16xf32>
    %95 = vector.multi_reduction <add>, %94, %cst_39 [1] : vector<16x16xf32> to vector<16xf32>
    %96 = vector.shape_cast %95 : vector<16xf32> to vector<16x1xf32>
    %97 = tpu.reciprocal %96 {approx = true} : vector<16x1xf32> -> vector<16x1xf32>
    %98 = vector.broadcast %97 : vector<16x1xf32> to vector<16x16xf32>
    %99 = arith.mulf %94, %98 : vector<16x16xf32>
    %c0_40 = arith.constant 0 : index
    %c0_41 = arith.constant 0 : index
    %c0_42 = arith.constant 0 : index
    %100 = vector.load %arg17[%c0_40, %c0_41, %c0_42] : memref<1x16x16xf32, #tpu.memory_space<vmem>>, vector<1x16x16xf32>
    %101 = vector.shape_cast %100 : vector<1x16x16xf32> to vector<16x16xf32>
    %102 = arith.addf %101, %99 : vector<16x16xf32>
    %c0_43 = arith.constant 0 : index
    %c0_44 = arith.constant 0 : index
    %c0_45 = arith.constant 0 : index
    %103 = vector.load %arg17[%c0_43, %c0_44, %c0_45] : memref<1x16x16xf32, #tpu.memory_space<vmem>>, vector<1x16x16xf32>
    %104 = vector.shape_cast %103 : vector<1x16x16xf32> to vector<16x16xf32>
    %105 = vector.shape_cast %102 : vector<16x16xf32> to vector<1x16x16xf32>
    tpu.vector_store %arg17[%c0_43, %c0_44, %c0_45], %105 {strides = array<i32>} : memref<1x16x16xf32, #tpu.memory_space<vmem>>, vector<1x16x16xf32>,
    %106 = arith.truncf %99 : vector<16x16xf32> to vector<16x16xbf16>
    %cst_46 = arith.constant dense<0.000000e+00> : vector<16x32xf32>
    %107 = tpu.matmul %106, %85, %cst_46 {dimension_numbers = #tpu.dot_dimension_numbers<[1], [0], [0], [1], [0, 0, 1, 1], [], []>} : vector<16x16xbf16>, vector<16x32xbf16>, vector<16x32xf32> -> vector<16x32xf32>
    %108 = tpu.concatenate %29, %55, %81, %107 in 1 : vector<16x32xf32>, vector<16x32xf32>, vector<16x32xf32>, vector<16x32xf32> -> vector<16x128xf32>
    %109 = arith.truncf %108 : vector<16x128xf32> to vector<16x128xbf16>
    %c0_47 = arith.constant 0 : index
    %c0_48 = arith.constant 0 : index
    %110 = vector.load %arg19[%c0_47, %c0_48] : memref<16x128xbf16, #tpu.memory_space<vmem>>, vector<16x128xbf16>
    tpu.vector_store %arg19[%c0_47, %c0_48], %109 {strides = array<i32>} : memref<16x128xbf16, #tpu.memory_space<vmem>>, vector<16x128xbf16>,
    %c0_49 = arith.constant 0 : index
    %c0_50 = arith.constant 0 : index
    %c0_51 = arith.constant 0 : index
    %111 = vector.load %arg17[%c0_49, %c0_50, %c0_51] : memref<1x16x16xf32, #tpu.memory_space<vmem>>, vector<1x16x16xf32>
    %112 = vector.shape_cast %111 : vector<1x16x16xf32> to vector<16x16xf32>
    %cst_52 = arith.constant 2.500000e-01 : f32
    %113 = vector.broadcast %cst_52 : f32 to vector<16x16xf32>
    %114 = arith.mulf %112, %113 : vector<16x16xf32>
    %c0_53 = arith.constant 0 : index
    %c0_54 = arith.constant 0 : index
    %c0_55 = arith.constant 0 : index
    %115 = vector.load %arg17[%c0_53, %c0_54, %c0_55] : memref<1x16x16xf32, #tpu.memory_space<vmem>>, vector<1x16x16xf32>
    %116 = vector.shape_cast %115 : vector<1x16x16xf32> to vector<16x16xf32>
    %117 = vector.shape_cast %114 : vector<16x16xf32> to vector<1x16x16xf32>
    tpu.vector_store %arg17[%c0_53, %c0_54, %c0_55], %117 {strides = array<i32>} : memref<1x16x16xf32, #tpu.memory_space<vmem>>, vector<1x16x16xf32>,
    %c0_56 = arith.constant 0 : index
    %c0_57 = arith.constant 0 : index
    %118 = vector.load %arg19[%c0_56, %c0_57] : memref<16x128xbf16, #tpu.memory_space<vmem>>, vector<16x128xbf16>
    %c0_58 = arith.constant 0 : index
    %c0_59 = arith.constant 0 : index
    %119 = vector.load %arg8[%c0_58, %c0_59] : memref<128x128xbf16, #tpu.memory_space<vmem>>, vector<128x128xbf16>
    %cst_60 = arith.constant dense<0.000000e+00> : vector<16x128xf32>
    %120 = tpu.matmul %118, %119, %cst_60 {dimension_numbers = #tpu.dot_dimension_numbers<[1], [0], [0], [1], [0, 0, 1, 1], [], []>} : vector<16x128xbf16>, vector<128x128xbf16>, vector<16x128xf32> -> vector<16x128xf32>
    %c0_61 = arith.constant 0 : index
    %c0_62 = arith.constant 0 : index
    %121 = vector.load %arg9[%c0_61, %c0_62] : memref<1x128xf32, #tpu.memory_space<vmem>>, vector<1x128xf32>
    %122 = vector.shape_cast %121 : vector<1x128xf32> to vector<128xf32>
    %123 = vector.shape_cast %122 : vector<128xf32> to vector<1x128xf32>
    %124 = vector.broadcast %123 : vector<1x128xf32> to vector<16x128xf32>
    %125 = arith.addf %120, %124 : vector<16x128xf32>
    %c0_63 = arith.constant 0 : index
    %126 = arith.index_cast %1 : i32 to index
    %c0_64 = arith.constant 0 : index
    %127 = vector.load %arg2[%c0_63, %126, %c0_64] : memref<1x16x128xf32, #tpu.memory_space<vmem>>, vector<1x16x128xf32>
    %128 = vector.shape_cast %127 : vector<1x16x128xf32> to vector<16x128xf32>
    %129 = arith.addf %128, %125 : vector<16x128xf32>
    %c0_65 = arith.constant 0 : index
    %c0_66 = arith.constant 0 : index
    %130 = vector.load %arg10[%c0_65, %c0_66] : memref<1x128xf32, #tpu.memory_space<vmem>>, vector<1x128xf32>
    %131 = vector.shape_cast %130 : vector<1x128xf32> to vector<128xf32>
    %c0_67 = arith.constant 0 : index
    %c0_68 = arith.constant 0 : index
    %132 = vector.load %arg11[%c0_67, %c0_68] : memref<1x128xf32, #tpu.memory_space<vmem>>, vector<1x128xf32>
    %133 = vector.shape_cast %132 : vector<1x128xf32> to vector<128xf32>
    %cst_69 = arith.constant dense<0.000000e+00> : vector<16xf32>
    %134 = vector.multi_reduction <add>, %129, %cst_69 [1] : vector<16x128xf32> to vector<16xf32>
    %135 = vector.shape_cast %134 : vector<16xf32> to vector<16x1xf32>
    %cst_70 = arith.constant 1.280000e+02 : f32
    %136 = vector.broadcast %cst_70 : f32 to vector<16x1xf32>
    %137 = arith.divf %135, %136 : vector<16x1xf32>
    %138 = vector.broadcast %137 : vector<16x1xf32> to vector<16x128xf32>
    %139 = arith.subf %129, %138 : vector<16x128xf32>
    %140 = arith.mulf %139, %139 : vector<16x128xf32>
    %cst_71 = arith.constant dense<0.000000e+00> : vector<16xf32>
    %141 = vector.multi_reduction <add>, %140, %cst_71 [1] : vector<16x128xf32> to vector<16xf32>
    %142 = vector.shape_cast %141 : vector<16xf32> to vector<16x1xf32>
    %cst_72 = arith.constant 1.280000e+02 : f32
    %143 = vector.broadcast %cst_72 : f32 to vector<16x1xf32>
    %144 = arith.divf %142, %143 : vector<16x1xf32>
    %145 = vector.broadcast %137 : vector<16x1xf32> to vector<16x128xf32>
    %146 = arith.subf %129, %145 : vector<16x128xf32>
    %cst_73 = arith.constant 9.99999974E-6 : f32
    %147 = vector.broadcast %cst_73 : f32 to vector<16x1xf32>
    %148 = arith.addf %144, %147 : vector<16x1xf32>
    %149 = math.rsqrt %148 : vector<16x1xf32>
    %150 = vector.broadcast %149 : vector<16x1xf32> to vector<16x128xf32>
    %151 = arith.mulf %146, %150 : vector<16x128xf32>
    %152 = vector.shape_cast %131 : vector<128xf32> to vector<1x128xf32>
    %153 = vector.broadcast %152 : vector<1x128xf32> to vector<16x128xf32>
    %154 = arith.mulf %151, %153 : vector<16x128xf32>
    %155 = vector.shape_cast %133 : vector<128xf32> to vector<1x128xf32>
    %156 = vector.broadcast %155 : vector<1x128xf32> to vector<16x128xf32>
    %157 = arith.addf %154, %156 : vector<16x128xf32>
    %158 = arith.truncf %157 : vector<16x128xf32> to vector<16x128xbf16>
    %c0_74 = arith.constant 0 : index
    %c0_75 = arith.constant 0 : index
    %159 = vector.load %arg12[%c0_74, %c0_75] : memref<128x512xbf16, #tpu.memory_space<vmem>>, vector<128x512xbf16>
    %cst_76 = arith.constant dense<0.000000e+00> : vector<16x512xf32>
    %160 = tpu.matmul %158, %159, %cst_76 {dimension_numbers = #tpu.dot_dimension_numbers<[1], [0], [0], [1], [0, 0, 1, 1], [], []>} : vector<16x128xbf16>, vector<128x512xbf16>, vector<16x512xf32> -> vector<16x512xf32>
    %c0_77 = arith.constant 0 : index
    %c0_78 = arith.constant 0 : index
    %161 = vector.load %arg13[%c0_77, %c0_78] : memref<1x512xf32, #tpu.memory_space<vmem>>, vector<1x512xf32>
    %162 = vector.shape_cast %161 : vector<1x512xf32> to vector<512xf32>
    %163 = vector.shape_cast %162 : vector<512xf32> to vector<1x512xf32>
    %164 = vector.broadcast %163 : vector<1x512xf32> to vector<16x512xf32>
    %165 = arith.addf %160, %164 : vector<16x512xf32>
    %cst_79 = arith.constant 1.702000e+00 : f32
    %166 = vector.broadcast %cst_79 : f32 to vector<16x512xf32>
    %167 = arith.mulf %166, %165 : vector<16x512xf32>
    %168 = arith.negf %167 : vector<16x512xf32>
    %169 = math.exp %168 : vector<16x512xf32>
    %cst_80 = arith.constant 1.000000e+00 : f32
    %170 = vector.broadcast %cst_80 : f32 to vector<16x512xf32>
    %171 = arith.addf %170, %169 : vector<16x512xf32>
    %172 = arith.divf %170, %171 : vector<16x512xf32>
    %173 = arith.mulf %165, %172 : vector<16x512xf32>
    %174 = arith.truncf %173 : vector<16x512xf32> to vector<16x512xbf16>
    %c0_81 = arith.constant 0 : index
    %c0_82 = arith.constant 0 : index
    %175 = vector.load %arg14[%c0_81, %c0_82] : memref<512x128xbf16, #tpu.memory_space<vmem>>, vector<512x128xbf16>
    %cst_83 = arith.constant dense<0.000000e+00> : vector<16x128xf32>
    %176 = tpu.matmul %174, %175, %cst_83 {dimension_numbers = #tpu.dot_dimension_numbers<[1], [0], [0], [1], [0, 0, 1, 1], [], []>} : vector<16x512xbf16>, vector<512x128xbf16>, vector<16x128xf32> -> vector<16x128xf32>
    %c0_84 = arith.constant 0 : index
    %c0_85 = arith.constant 0 : index
    %177 = vector.load %arg15[%c0_84, %c0_85] : memref<1x128xf32, #tpu.memory_space<vmem>>, vector<1x128xf32>
    %178 = vector.shape_cast %177 : vector<1x128xf32> to vector<128xf32>
    %179 = vector.shape_cast %178 : vector<128xf32> to vector<1x128xf32>
    %180 = vector.broadcast %179 : vector<1x128xf32> to vector<16x128xf32>
    %181 = arith.addf %176, %180 : vector<16x128xf32>
    %182 = arith.addf %129, %181 : vector<16x128xf32>
    %c0_86 = arith.constant 0 : index
    %c0_87 = arith.constant 0 : index
    %c0_88 = arith.constant 0 : index
    %183 = vector.load %arg16[%c0_86, %c0_87, %c0_88] : memref<1x16x128xf32, #tpu.memory_space<vmem>>, vector<1x16x128xf32>
    %184 = vector.shape_cast %183 : vector<1x16x128xf32> to vector<16x128xf32>
    %185 = vector.shape_cast %182 : vector<16x128xf32> to vector<1x16x128xf32>
    tpu.vector_store %arg16[%c0_86, %c0_87, %c0_88], %185 {strides = array<i32>} : memref<1x16x128xf32, #tpu.memory_space<vmem>>, vector<1x16x128xf32>,
    return
  }
  func.func @transform_0(%arg0: i32, %arg1: i32) -> (i32, i32, i32) {
    %c0_i32 = arith.constant 0 : i32
    %c0_i32_0 = arith.constant 0 : i32
    %c0_i32_1 = arith.constant 0 : i32
    return %arg0, %c0_i32, %c0_i32_0 : i32, i32, i32
  }
  func.func @transform_1(%arg0: i32, %arg1: i32) -> (i32, i32) {
    %c0_i32 = arith.constant 0 : i32
    %c0_i32_0 = arith.constant 0 : i32
    %c0_i32_1 = arith.constant 0 : i32
    return %c0_i32, %c0_i32_0 : i32, i32
  }
  func.func @transform_2(%arg0: i32, %arg1: i32) -> (i32, i32) {
    %c0_i32 = arith.constant 0 : i32
    %c0_i32_0 = arith.constant 0 : i32
    %c0_i32_1 = arith.constant 0 : i32
    return %c0_i32, %c0_i32_0 : i32, i32
  }
  func.func @transform_3(%arg0: i32, %arg1: i32) -> (i32, i32) {
    %c0_i32 = arith.constant 0 : i32
    %c0_i32_0 = arith.constant 0 : i32
    %c0_i32_1 = arith.constant 0 : i32
    return %c0_i32, %c0_i32_0 : i32, i32
  }
  func.func @transform_4(%arg0: i32, %arg1: i32) -> (i32, i32) {
    %c0_i32 = arith.constant 0 : i32
    %c0_i32_0 = arith.constant 0 : i32
    %c0_i32_1 = arith.constant 0 : i32
    return %c0_i32, %c0_i32_0 : i32, i32
  }
  func.func @transform_5(%arg0: i32, %arg1: i32) -> (i32, i32) {
    %c0_i32 = arith.constant 0 : i32
    %c0_i32_0 = arith.constant 0 : i32
    %c0_i32_1 = arith.constant 0 : i32
    return %c0_i32, %c0_i32_0 : i32, i32
  }
  func.func @transform_6(%arg0: i32, %arg1: i32) -> (i32, i32) {
    %c0_i32 = arith.constant 0 : i32
    %c0_i32_0 = arith.constant 0 : i32
    %c0_i32_1 = arith.constant 0 : i32
    return %c0_i32, %c0_i32_0 : i32, i32
  }
  func.func @transform_7(%arg0: i32, %arg1: i32) -> (i32, i32) {
    %c0_i32 = arith.constant 0 : i32
    %c0_i32_0 = arith.constant 0 : i32
    %c0_i32_1 = arith.constant 0 : i32
    return %c0_i32, %c0_i32_0 : i32, i32
  }
  func.func @transform_8(%arg0: i32, %arg1: i32) -> (i32, i32) {
    %c0_i32 = arith.constant 0 : i32
    %c0_i32_0 = arith.constant 0 : i32
    %c0_i32_1 = arith.constant 0 : i32
    return %c0_i32, %c0_i32_0 : i32, i32
  }
  func.func @transform_9(%arg0: i32, %arg1: i32) -> (i32, i32) {
    %c0_i32 = arith.constant 0 : i32
    %c0_i32_0 = arith.constant 0 : i32
    %c0_i32_1 = arith.constant 0 : i32
    return %c0_i32, %c0_i32_0 : i32, i32
  }
  func.func @transform_10(%arg0: i32, %arg1: i32) -> (i32, i32) {
    %c0_i32 = arith.constant 0 : i32
    %c0_i32_0 = arith.constant 0 : i32
    %c0_i32_1 = arith.constant 0 : i32
    return %c0_i32, %c0_i32_0 : i32, i32
  }
  func.func @transform_11(%arg0: i32, %arg1: i32) -> (i32, i32) {
    %c0_i32 = arith.constant 0 : i32
    %c0_i32_0 = arith.constant 0 : i32
    %c0_i32_1 = arith.constant 0 : i32
    return %c0_i32, %c0_i32_0 : i32, i32
  }
  func.func @transform_12(%arg0: i32, %arg1: i32) -> (i32, i32) {
    %c0_i32 = arith.constant 0 : i32
    %c0_i32_0 = arith.constant 0 : i32
    %c0_i32_1 = arith.constant 0 : i32
    return %c0_i32, %c0_i32_0 : i32, i32
  }
  func.func @transform_13(%arg0: i32, %arg1: i32) -> (i32, i32) {
    %c0_i32 = arith.constant 0 : i32
    %c0_i32_0 = arith.constant 0 : i32
    %c0_i32_1 = arith.constant 0 : i32
    return %c0_i32, %c0_i32_0 : i32, i32
  }
  func.func @transform_14(%arg0: i32, %arg1: i32) -> (i32, i32, i32) {
    %c0_i32 = arith.constant 0 : i32
    %c0_i32_0 = arith.constant 0 : i32
    return %arg0, %arg1, %c0_i32 : i32, i32, i32
  }
  func.func @transform_15(%arg0: i32, %arg1: i32) -> (i32, i32, i32) {
    %c0_i32 = arith.constant 0 : i32
    %c0_i32_0 = arith.constant 0 : i32
    return %arg0, %arg1, %c0_i32 : i32, i32, i32
  }
}

</mosaic_0001>

<bundles_post_ra>
// kernel: tpu_custom_call.1
= control target key start
LH: loop header
LB: loop body
LE: loop exit
PB: predicated region body
PF: predicated region fallthrough
CT: control target
= control target key end

     0   :  { %s4529_s0 = inlined_call_operand.hbm [shape: f32[2,16,128], index: 0, kind: input, shape index: {}]   ;;  %s4530_s1 = inlined_call_operand.hbm [shape: f32[1,16], index: 1, kind: input, shape index: {}]   ;;  %s4531_s2 = inlined_call_operand.hbm [shape: f32[1,128], index: 2, kind: input, shape index: {}]   ;;  %s4532_s3 = inlined_call_operand.hbm [shape: f32[1,128], index: 3, kind: input, shape index: {}]   ;;  %s4533_s4 = inlined_call_operand.hbm [shape: bf16[128,384], index: 4, kind: input, shape index: {}]   ;;  %s4534_s5 = inlined_call_operand.vmem [shape: f32[1,384], index: 5, kind: input, shape index: {}]   ;;  %s4535_s6 = inlined_call_operand.hbm [shape: bf16[128,128], index: 6, kind: input, shape index: {}]   ;;  %s4536_s7 = inlined_call_operand.hbm [shape: f32[1,128], index: 7, kind: input, shape index: {}]   ;;  %s4537_s8 = inlined_call_operand.hbm [shape: f32[1,128], index: 8, kind: input, shape index: {}]   ;;  %s4538_s9 = inlined_call_operand.vmem [shape: f32[1,128], index: 9, kind: input, shape index: {}]   ;;  %s4539_s10 = inlined_call_operand.hbm [shape: bf16[128,512], index: 10, kind: input, shape index: {}]   ;;  %s4540_s11 = inlined_call_operand.vmem [shape: f32[1,512], index: 11, kind: input, shape index: {}]   ;;  %s4541_s12 = inlined_call_operand.hbm [shape: bf16[512,128], index: 12, kind: input, shape index: {}]   ;;  %s4542_s13 = inlined_call_operand.vmem [shape: f32[1,128], index: 13, kind: input, shape index: {}]   ;;  %s4543_s14 = inlined_call_operand.hbm [shape: f32[2,16,128], index: 14, kind: output, shape index: {0}]   ;;  %s4544_s15 = inlined_call_operand.hbm [shape: f32[2,16,16], index: 15, kind: output, shape index: {1}]  }
   0x1   :  { %4550 = sst [smem:[#allocation33_spill]] %s4529_s0 }
   0x2   :  { %4551 = sst [smem:[#allocation34_spill]] %s4530_s1 }
   0x3   :  { %4552 = sst [smem:[#allocation35_spill]] %s4531_s2 }
   0x4   :  { %4553 = sst [smem:[#allocation36_spill]] %s4532_s3 }
   0x5   :  { %4554 = sst [smem:[#allocation37_spill]] %s4533_s4 }
   0x6   :  { %4555 = sst [smem:[#allocation38_spill]] %s4534_s5 }
   0x7   :  { %4556 = sst [smem:[#allocation39_spill]] %s4535_s6 }
   0x8   :  { %4557 = sst [smem:[#allocation40_spill]] %s4536_s7 }
   0x9   :  { %4558 = sst [smem:[#allocation41_spill]] %s4538_s9 }
   0xa   :  { %4559 = sst [smem:[#allocation42_spill]] %s4540_s11 }
   0xb   :  { %4560 = sst [smem:[#allocation43_spill]] %s4542_s13 }
   0xc   :  { %4561 = sst [smem:[#allocation44_spill]] %s4543_s14 }
   0xd   :  { %4562 = sst [smem:[#allocation45_spill]] %s4544_s15 }
   0xe   :  { %21 = vsyncpa [#allocation5], 0 }
   0xf   :  { %23 = vsyncpa [#allocation5 + $0x1], 0 }
  0x10   :  { %24 = vsyncpa [#allocation8], 0 }
  0x11   :  { %25 = vsyncpa [#allocation11], 0 }
  0x12   :  { %26 = vsyncpa [#allocation14], 0 }
  0x13   :  { %27 = vsyncpa [#allocation17], 0 }
  0x14   :  { %28 = vsyncpa [#allocation20], 0 }
  0x15   :  { %29 = vsyncpa [#allocation6], 0 }
  0x16   :  { %31 = vsyncpa [#allocation6 + $0x1], 0 }
  0x17   :  { %32 = vsyncpa [#allocation23], 0 }
  0x18   :  { %34 = vsyncpa [#allocation23 + $0x1], 0  ;;  %s3958_s18 = smov 0   ;;  %s3960_s19 = smov 0  }
  0x19   :  { %s3962_s20 = smov 0   ;;  %s3964_s21 = smov 0  }
  0x1a   :  { %s3966_s22 = smov 0   ;;  %s3968_s23 = smov 0  }
  0x1b LB: > { %4563 = sst [smem:[#allocation32_spill]] %s3845_s21  ;;  %s4545_s24 = sadd.s32 4294967295, %s3853_s23   ;;  %s3853_s23 = sphi %s3968_s23, %s40_s23   ;;  %s3849_s22 = sphi %s3966_s22, %s4606_s22   ;;  %s3845_s21 = sphi %s3964_s21, %s4605_s21   ;;  %s3841_s20 = sphi %s3962_s20, %s4604_s20   ;;  %s3837_s19 = sphi %s3960_s19, %s4603_s19   ;;  %s3833_s18 = sphi %s3958_s18, %s4602_s18  }
  0x1c   : > { %p2547_p0 = scmp.ge.s32.totalorder %s3853_s23, 1  ;;  %p3992_p1 = scmp.eq.s32.totalorder %s4545_s24, 0 }
  0x1d   : > { %p412_p2 = scmp.lt.s32.totalorder %s3853_s23, 3  ;;  %s4565_s1 = sld [smem:[#allocation34_spill]] }
  0x1e   : > { %p2557_p4 = scmp.ge.s32.totalorder %s3853_s23, 2  ;;  %s3855_s30 = smov [#allocation7]  }
  0x1f   : > { %p4000_p3 = pnand %p2547_p0, %p412_p2  ;;  %s426_s16 = sshll.u32 %s3855_s30, 4  ;;  %s427_s16 = int_to_ptr.vmem [resolvable:$true] %s426_s16 }
  0x20   : > { %s4567_s3 = sld [smem:[#allocation36_spill]]  ;;  %s3856_s15 = smov [#allocation10]  }
  0x21   : > { %p3193_p5 = pneg %p4000_p3  ;;  %s4569_s6 = sld [smem:[#allocation39_spill]] }
  0x22   : > { %s450_s30 = sshll.u32 %s3856_s15, 4  ;;  %s3857_s24 = smov [#allocation13]   ;;  %s451_s30 = int_to_ptr.vmem [resolvable:$true] %s450_s30 }
  0x23   : > { %s424_s28 = sshll.u32 %s4565_s1, 4  ;;  %p4012_p6 = pnand %p3193_p5, %p3992_p1  ;;  %s425_s28 = int_to_ptr.hbm [resolvable:$true] %s424_s28 }
  0x24   : > { %s478_s17 = sshll.u32 %s3857_s24, 4  ;;  %s503_s11 = sshll.u32 %s4537_s8, 4  ;;  %s479_s17 = int_to_ptr.vmem [resolvable:$true] %s478_s17  ;;  %s504_s11 = int_to_ptr.hbm [resolvable:$true] %s503_s11 }
  0x25   : > { %3196 = dma.hbm_to_vmem [thread:$0]  (!%p4012_p6), %s425_s28, 16, %s427_s16, [#allocation8]  }
  0x26   : > { %s448_s14 = sshll.u32 %s4567_s3, 4  ;;  %s4549_s9 = smov 64   ;;  %s449_s14 = int_to_ptr.hbm [resolvable:$true] %s448_s14 }
  0x27   : > { %s476_s13 = sshll.u32 %s4569_s6, 4  ;;  %s3859_s1 = smov 4   ;;  %s477_s13 = int_to_ptr.hbm [resolvable:$true] %s476_s13 }
  0x28   : > { %3202 = dma.hbm_to_vmem [thread:$0]  (!%p4012_p6), %s449_s14, 16, %s451_s30, [#allocation11]  }
  0x29   : > { %3208 = dma.hbm_to_vmem [thread:$0]  (!%p4012_p6), %s477_s13, 1024, %s479_s17, [#allocation14], %s4549_s9, %s4549_s9, %s3859_s1  }
  0x2a   : > { %s3860_s15 = smov [#allocation16]   ;;  %s4570_s2 = sld [smem:[#allocation35_spill]] }
  0x2b   : > { %s505_s28 = sshll.u32 %s3860_s15, 4  ;;  %s4571_s4 = sld [smem:[#allocation37_spill]]  ;;  %s506_s28 = int_to_ptr.vmem [resolvable:$true] %s505_s28 }
  0x2c   : > { %3214 = dma.hbm_to_vmem [thread:$0]  (!%p4012_p6), %s504_s11, 16, %s506_s28, [#allocation17]  }
  0x2d   : > { %s3861_s24 = smov [#allocation9]   ;;  %s3862_s13 = smov [#allocation12]  }
  0x2e   : > { %s438_s6 = sshll.u32 %s3861_s24, 4  ;;  %s461_s17 = sshll.u32 %s3862_s13, 4  ;;  %s439_s6 = int_to_ptr.vmem [resolvable:$true] %s438_s6  ;;  %s462_s17 = int_to_ptr.vmem [resolvable:$true] %s461_s17 }
  0x2f   : > { %s3863_s15 = smov 192   ;;  %s3864_s16 = smov 12  }
  0x30   : > { %s436_s27 = sshll.u32 %s4570_s2, 4  ;;  %s4572_s7 = sld [smem:[#allocation40_spill]]  ;;  %s437_s27 = int_to_ptr.hbm [resolvable:$true] %s436_s27 }
  0x31   : > { %s459_s30 = sshll.u32 %s4571_s4, 4  ;;  %s3865_s3 = smov [#allocation15]   ;;  %s460_s30 = int_to_ptr.hbm [resolvable:$true] %s459_s30 }
  0x32   : > { %3199 = dma.hbm_to_vmem [thread:$0]  (!%p4012_p6), %s437_s27, 16, %s439_s6, [#allocation8]  }
  0x33   : > { %3205 = dma.hbm_to_vmem [thread:$0]  (!%p4012_p6), %s460_s30, 3072, %s462_s17, [#allocation11], %s3863_s15, %s3863_s15, %s3864_s16  }
  0x34   : > { %s493_s21 = sshll.u32 %s3865_s3, 4  ;;  %s517_s6 = sshll.u32 %s4539_s10, 4  ;;  %s494_s21 = int_to_ptr.vmem [resolvable:$true] %s493_s21  ;;  %s518_s6 = int_to_ptr.hbm [resolvable:$true] %s517_s6 }
  0x35   : > { %s3866_s27 = smov [#allocation18]   ;;  %s3867_s13 = smov 256  }
  0x36   : > { %s491_s14 = sshll.u32 %s4572_s7, 4  ;;  %s519_s30 = sshll.u32 %s3866_s27, 4  ;;  %s492_s14 = int_to_ptr.hbm [resolvable:$true] %s491_s14  ;;  %s520_s30 = int_to_ptr.vmem [resolvable:$true] %s519_s30 }
  0x37   : > { %3211 = dma.hbm_to_vmem [thread:$0]  (!%p4012_p6), %s492_s14, 16, %s494_s21, [#allocation14]  }
  0x38   : > { %s3868_s17 = smov 16   ;;  %s534_s16 = sshll.u32 %s4541_s12, 4  ;;  %s535_s16 = int_to_ptr.hbm [resolvable:$true] %s534_s16 }
  0x39   : > { %3217 = dma.hbm_to_vmem [thread:$0]  (!%p4012_p6), %s518_s6, 4096, %s520_s30, [#allocation17], %s3867_s13, %s3867_s13, %s3868_s17  }
  0x3a   : > { %s3869_s11 = smov [#allocation19]   ;;  %s4573_s14 = smov 64  }
  0x3b   : > { %s536_s28 = sshll.u32 %s3869_s11, 4  ;;  %s2546_s3 = sadd.s32 4294967294, %s3853_s23   ;;  %s537_s28 = int_to_ptr.vmem [resolvable:$true] %s536_s28 }
  0x3c   : > { %3220 = dma.hbm_to_vmem [thread:$0]  (!%p4012_p6), %s535_s16, 4096, %s537_s28, [#allocation20], %s4573_s14, %s4573_s14, %s3859_s1  }
  0x3d   : > { %s52_s21 = sadd.s32 1, %s3849_s22  ;;  %s59_s24 = sadd.s32 1, %s3841_s20 }
  0x3e   : > { %p54_p7 = scmp.ge.s32.totalorder %s52_s21, 2  ;;  %p66_p8 = scmp.ne.s32.totalorder %s3841_s20, %s3837_s19 }
  0x3f   : > { %p67_p9 = scmp.eq.s32.totalorder %s3853_s23, 0  ;;  %p72_p10 = scmp.ne.s32.totalorder %s3837_s19, %s3833_s18 }
  0x40   : > { %s4608_s21 = smov (%p54_p7, %s52_s21), 0  ;;  %s4576_s27 = sadd.s32 4294967295, %s3853_s23  }
  0x41   : > { %p4071_p11 = por %p67_p9, %p66_p8  ;;  %p4077_p12 = por %p3992_p1, %p72_p10 }
  0x42   : > { %s56_s6 = ssub.s32 %s3849_s22, %s4608_s21  ;;  %p371_p13 = scmp.eq.s32.totalorder %s4576_s27, 1 }
  0x43   : > { %p57_p0 = scmp.eq.s32.totalorder %s56_s6, 0  ;;  %p377_p2 = scmp.eq.s32.totalorder %s2546_s3, 1 }
  0x44   : > { %p4085_p5 = por %p371_p13, %p66_p8  ;;  %p3241_p6 = scmp.lt.s32.totalorder %s3853_s23, 2 }
  0x45   : > { %s4091_s13 = scalar_select %p57_p0, %s3841_s20, %s59_s24  }
  0x46   : > { %p4093_p7 = por %p377_p2, %p72_p10  ;;  %s553_s9 = sand.u32 1, %s3841_s20  }
  0x47   : > { %s2558_s15 = sshll.u32 %s553_s9, 4  ;;  %s3034_s16 = sshll.u32 %s3849_s22, 4 }
  0x48   : > { %s4579_s0 = sld [smem:[#allocation33_spill]]  ;;  %s557_s6 = scalar_lea.vmem [#allocation4], %s2558_s15 }
  0x49   : > { %s565_s3 = sshll.u32 %s557_s6, 4  ;;  %p3222_p8 = pnand %p3241_p6, %p4071_p11  ;;  %s566_s3 = int_to_ptr.vmem [resolvable:$true] %s565_s3 }
  0x4a   : > { %s554_s24 = scalar_lea.sflag [#allocation5], %s553_s9  ;;  %s3870_s2 = smov 128  }
  0x4b   : > { %s3871_s4 = smov 8   ;;  %s4107_s7 = sand.u32 (!%p4000_p3), 1, %s3837_s19  }
  0x4c   : > { %577 = sbr.rel (%p4000_p3) target bundleno = 2369 (0x941), region = 76  ;;  %s4110_s15 = sshll.u32 (!%p4000_p3), %s4107_s7, 4 }
  0x4d   : > { %s583_s11 = scalar_lea.vmem (!%p4000_p3), [#allocation4], %s4110_s15 }
  0x4e   : > { %s562_s14 = scalar_lea.hbm %s4579_s0, %s3034_s16  ;;  %s580_s16 = scalar_lea.sflag (!%p4000_p3), [#allocation5], %s4107_s7 }
  0x4f   : > { %s563_s27 = sshll.u32 %s562_s14, 4  ;;  %s564_s27 = int_to_ptr.hbm [resolvable:$true] %s563_s27 }
  0x50   : > { %3224 = dma.hbm_to_vmem [thread:$0]  (!%p3222_p8), %s564_s27, 256, %s566_s3, %s554_s24, %s3870_s2, %s3870_s2, %s3871_s4  }
  0x51   : > { %3800 = dma.done.wait (%p4077_p12), %s580_s16, 256  }
  0x52   : > { %3802 = vsyncadd (%p4077_p12), %s580_s16, 4294967040 }
  0x53   : > { %3804 = dma.done.wait (%p3992_p1), [#allocation8], 32  }
  0x54   : > { %3806 = vsyncadd (%p3992_p1), [#allocation8], 4294967264 }
  0x55   : > { %3808 = dma.done.wait (%p3992_p1), [#allocation11], 3088  }
  0x56   : > { %3810 = vsyncadd (%p3992_p1), [#allocation11], 4294964208 }
  0x57   : > { %3812 = dma.done.wait (%p3992_p1), [#allocation14], 1040  }
  0x58   : > { %3814 = vsyncadd (%p3992_p1), [#allocation14], 4294966256 }
  0x59   : > { %3816 = dma.done.wait (%p3992_p1), [#allocation17], 4112  }
  0x5a   : > { %3818 = vsyncadd (%p3992_p1), [#allocation17], 4294963184 }
  0x5b   : > { %3820 = dma.done.wait (%p3992_p1), [#allocation20], 4096  }
  0x5c   : > { %3822 = vsyncadd (%p3992_p1), [#allocation20], 4294963200  ;;  %v4138_v0 = vld [vmem:[%s583_s11] sm:$0xff]  ;;  %v4141_v1 = vld [vmem:[%s583_s11 + $0x8] sm:$0xff]  ;;  %v3872_v2 = vmov 128.0   ;;  %s4580_s5 = sld [smem:[#allocation38_spill]] }
  0x5d   : > { %693 = vadd.xlane.f32.xlu0 %v4138_v0  ;;  %3345 = vrcp.f32 %v3872_v2  ;;  %v2660_v17 = vld [vmem:[#allocation12 + $0xa8] sm:$0xf]  ;;  %v3057_v18 = vld [vmem:[#allocation12 + $0xb0] sm:$0xf0]  ;;  %v3056_v19 = vld [vmem:[#allocation12 + $0xac] sm:$0xf] }
  0x5e   : > { %v2661_v20 = vor.u32 %v3057_v18, %v2660_v17  ;;  %v2662_v21 = vld [vmem:[#allocation12 + $0xb4] sm:$0xf0]  ;;  %v2668_v22 = vld [vmem:[#allocation12 + $0xb0] sm:$0xf]  ;;  %v3058_v23 = vld [vmem:[#allocation12 + $0xb8] sm:$0xf0] }
  0x5f   : > { %v2665_v24 = vor.u32 %v3056_v19, %v2662_v21  ;;  %v2669_v25 = vor.u32 %v3058_v23, %v2668_v22  ;;  %v2648_v26 = vld [vmem:[#allocation12 + $0x90] sm:$0xf]  ;;  %v3054_v27 = vld [vmem:[#allocation12 + $0x98] sm:$0xf0]  ;;  %v3053_v28 = vld [vmem:[#allocation12 + $0x94] sm:$0xf] }
  0x60   : > { %919 = vmatpush.bf16.msra.mxu0 %v2661_v20  ;;  %v2649_v29 = vor.u32 %v3054_v27, %v2648_v26  ;;  %v2650_v30 = vld [vmem:[#allocation12 + $0x9c] sm:$0xf0]  ;;  %v2656_v31 = vld [vmem:[#allocation12 + $0x98] sm:$0xf]  ;;  %v3055_v32 = vld [vmem:[#allocation12 + $0xa0] sm:$0xf0] }
  0x61   : > { %933 = vmatpush.bf16.msra.mxu1 %v2665_v24  ;;  %947 = vmatpush.bf16.msra.mxu2 %v2669_v25  ;;  %v2653_v33 = vor.u32 %v3053_v28, %v2650_v30  ;;  %v2657_v34 = vor.u32 %v3055_v32, %v2656_v31  ;;  %v2636_v35 = vld [vmem:[#allocation12 + $0x78] sm:$0xf]  ;;  %v3051_v36 = vld [vmem:[#allocation12 + $0x80] sm:$0xf0]  ;;  %v3050_v37 = vld [vmem:[#allocation12 + $0x7c] sm:$0xf] }
  0x62   : > { %v2637_v38 = vor.u32 %v3051_v36, %v2636_v35  ;;  %v2638_v39 = vld [vmem:[#allocation12 + $0x84] sm:$0xf0]  ;;  %v2644_v40 = vld [vmem:[#allocation12 + $0x80] sm:$0xf]  ;;  %v3052_v41 = vld [vmem:[#allocation12 + $0x88] sm:$0xf0] }
  0x63   : > { %v3346_v3 = vpop.eup %3345  ;;  %v2641_v42 = vor.u32 %v3050_v37, %v2638_v39  ;;  %v2645_v43 = vor.u32 %v3052_v41, %v2644_v40  ;;  %v2624_v44 = vld [vmem:[#allocation12 + $0x60] sm:$0xf]  ;;  %v3048_v45 = vld [vmem:[#allocation12 + $0x68] sm:$0xf0]  ;;  %v3047_v46 = vld [vmem:[#allocation12 + $0x64] sm:$0xf] }
  0x64   : > { %v698_v4 = vmul.f32 128.0, %v3346_v3  ;;  %vm702_vm0 = vweird.f32 %v3346_v3  ;;  %920 = vmatpush.bf16.msra.mxu0 %v2649_v29  ;;  %v2625_v47 = vor.u32 %v3048_v45, %v2624_v44  ;;  %v2626_v48 = vld [vmem:[#allocation12 + $0x6c] sm:$0xf0]  ;;  %v2632_v49 = vld [vmem:[#allocation12 + $0x68] sm:$0xf]  ;;  %vm994_vm7 = vcmask 261120  }
  0x65   : > { %695 = vadd.xlane.f32.xlu0 %v4141_v1  ;;  %934 = vmatpush.bf16.msra.mxu1 %v2653_v33  ;;  %v3049_v50 = vld [vmem:[#allocation12 + $0x70] sm:$0xf0]  ;;  %v2629_v51 = vor.u32 %v3047_v46, %v2626_v48  ;;  %v2612_v53 = vld [vmem:[#allocation12 + $0x48] sm:$0xf]  ;;  %v3044_v55 = vld [vmem:[#allocation12 + $0x4c] sm:$0xf] }
  0x66   : > { %v699_v5 = vsub.f32 1.0, %v698_v4  ;;  %948 = vmatpush.bf16.msra.mxu2 %v2657_v34  ;;  %v2633_v52 = vor.u32 %v3049_v50, %v2632_v49  ;;  %v3045_v54 = vld [vmem:[#allocation12 + $0x50] sm:$0xf0]  ;;  %v2614_v57 = vld [vmem:[#allocation12 + $0x54] sm:$0xf0]  ;;  %s3873_s25 = smov 96  }
  0x67   : > { %v2613_v56 = vor.u32 %v3045_v54, %v2612_v53  ;;  %v2620_v58 = vld [vmem:[#allocation12 + $0x50] sm:$0xf]  ;;  %v3046_v59 = vld [vmem:[#allocation12 + $0x58] sm:$0xf0]  ;;  %v2617_v60 = vor.u32 %v3044_v55, %v2614_v57  ;;  %v3041_v2 = vld [vmem:[#allocation12 + $0x34] sm:$0xf] }
  0x68   : > { %v700_v6 = vmul.f32 %v3346_v3, %v699_v5  ;;  %921 = vmatpush.bf16.msra.mxu0 %v2637_v38  ;;  %v2621_v61 = vor.u32 %v3046_v59, %v2620_v58  ;;  %v2600_v62 = vld [vmem:[#allocation12 + $0x30] sm:$0xf]  ;;  %v3042_v63 = vld [vmem:[#allocation12 + $0x38] sm:$0xf0]  ;;  %v2602_v4 = vld [vmem:[#allocation12 + $0x3c] sm:$0xf0] }
  0x69   : > { %935 = vmatpush.bf16.msra.mxu1 %v2641_v42  ;;  %v2608_v5 = vld [vmem:[#allocation12 + $0x38] sm:$0xf]  ;;  %v2596_v17 = vld [vmem:[#allocation12 + $0x20] sm:$0xf]  ;;  %v3040_v18 = vld [vmem:[#allocation12 + $0x28] sm:$0xf0] }
  0x6a   : > { %v701_v7 = vadd.f32 %v3346_v3, %v700_v6  ;;  %949 = vmatpush.bf16.msra.mxu2 %v2645_v43  ;;  %v3043_v6 = vld [vmem:[#allocation12 + $0x40] sm:$0xf0]  ;;  %v2597_v20 = vor.u32 %v3040_v18, %v2596_v17  ;;  %v2576_v21 = vld [vmem:[#allocation12] sm:$0xf]  ;;  %v3036_v22 = vld [vmem:[#allocation12 + $0x8] sm:$0xf0] }
  0x6b   : > { %v3035_v23 = vld [vmem:[#allocation12 + $0x4] sm:$0xf]  ;;  %v2577_v25 = vor.u32 %v3036_v22, %v2576_v21  ;;  %v2578_v26 = vld [vmem:[#allocation12 + $0xc] sm:$0xf0]  ;;  %v2584_v27 = vld [vmem:[#allocation12 + $0x8] sm:$0xf] }
  0x6c   : > { %v4144_v8 = vsel %vm702_vm0, %v3346_v3, %v701_v7  ;;  %922 = vmatpush.bf16.msra.mxu0 %v2625_v47  ;;  %v2601_v3 = vor.u32 %v3042_v63, %v2600_v62  ;;  %v2605_v7 = vor.u32 %v3041_v2, %v2602_v4  ;;  %v3037_v28 = vld [vmem:[#allocation12 + $0x10] sm:$0xf0]  ;;  %v2581_v30 = vor.u32 %v3035_v23, %v2578_v26  ;;  %v3338_v49 = vld [vmem:[#allocation9] ss:$0 sm:$0xff]  ;;  %v3339_v54 = vld [vmem:[#allocation10] ss:$0 sm:$0xff] }
  0x6d   : > { %936 = vmatpush.bf16.msra.mxu1 %v2629_v51  ;;  %v2585_v31 = vor.u32 %v3037_v28, %v2584_v27  ;;  %vm1015_vm8 = vcmask 130048   ;;  %s3874_s29 = smov 32   ;;  %s3875_s26 = smov 64   ;;  %vm1372_vm9 = vcmask 523264   ;;  %vm1375_vm10 = vcmask 785408  }
  0x6e   : > { %950 = vmatpush.bf16.msra.mxu2 %v2633_v52  ;;  %s4183_s1 = scalar_lea.vmem [#allocation22], %s4110_s15  ;;  %s4581_s14 = sld [smem:[#allocation41_spill]] }
  0x6f   : > { %s4582_s27 = sld [smem:[#allocation42_spill]]  ;;  %s2299_s9 = scalar_lea.sflag [#allocation23], %s4107_s7 }
  0x70   : > { %923 = vmatpush.bf16.msra.mxu0 %v2613_v56  ;;  %s4597_s24 = sld [smem:[#allocation32_spill]] }
  0x71   : > { %937 = vmatpush.bf16.msra.mxu1 %v2617_v60  ;;  %s4598_s4 = sld [smem:[#allocation45_spill]] }
  0x72   : > { %951 = vmatpush.bf16.msra.mxu2 %v2621_v61 }
  0x74   : > { %924 = vmatpush.bf16.msra.mxu0 %v2601_v3 }
  0x75   : > { %938 = vmatpush.bf16.msra.mxu1 %v2605_v7 }
  0x76   : > { %s3144_s16 = sshll.u32 %s4597_s24, 4 }
  0xd0   : > { %v694_v9 = vpop.xlane.xlu0 %693 }
  0xd1   : > { %v704_v10 = vmul.f32 %v4144_v8, %v694_v9  ;;  %v2609_v9 = vor.u32 %v3043_v6, %v2608_v5 }
  0xd3   : > { %v4148_v11 = vsub.f32 %v4138_v0, %v704_v10  ;;  %952 = vmatpush.bf16.msra.mxu2 %v2609_v9  ;;  %v2588_v10 = vld [vmem:[#allocation12 + $0x18] sm:$0xf] }
  0xd5   : > { %v708_v12 = vmul.f32 %v4148_v11, %v4148_v11 }
  0xd7   : > { %710 = vadd.xlane.f32.xlu1 %v708_v12  ;;  %v3039_v12 = vld [vmem:[#allocation12 + $0x20] sm:$0xf0]  ;;  %953 = vmatpush.bf16.msra.mxu2 %v2597_v20 }
  0xd8   : > { %v696_v13 = vpop.xlane.xlu0 %695 }
  0xd9   : > { %v705_v14 = vmul.f32 %v4144_v8, %v696_v13  ;;  %v3038_v13 = vld [vmem:[#allocation12 + $0x1c] sm:$0xf] }
  0xdb   : > { %v4154_v15 = vsub.f32 %v4141_v1, %v705_v14  ;;  %v2589_v14 = vor.u32 %v3039_v12, %v2588_v10  ;;  %954 = vmatpush.bf16.msra.mxu2 %v2585_v31  ;;  %v4168_v31 = vld [vmem:[#allocation7] ss:$0 sm:$0xff] }
  0xdd   : > { %v709_v16 = vmul.f32 %v4154_v15, %v4154_v15  ;;  %925 = vmatpush.bf16.msra.mxu0 %v2589_v14 }
  0xdf   : > { %712 = vadd.xlane.f32.xlu1 %v709_v16  ;;  %v2590_v16 = vld [vmem:[#allocation12 + $0x24] sm:$0xf0] }
  0xe0   : > { %v2593_v19 = vor.u32 %v3038_v13, %v2590_v16 }
  0xe1   : > { %926 = vmatpush.bf16.msra.mxu0 %v2577_v25 }
  0xe2   : > { %939 = vmatpush.bf16.msra.mxu1 %v2593_v19 }
  0xe6   : > { %940 = vmatpush.bf16.msra.mxu1 %v2581_v30 }
 0x14a   : > { %v711_v24 = vpop.xlane.xlu1 %710 }
 0x14b   : > { %v714_v29 = vmul.f32 %v711_v24, %v4144_v8 }
 0x14d   : > { %v716_v32 = vadd.f32 1e-05, %v714_v29 }
 0x14f   : > { %3347 = vrsqrt.f32 %v716_v32  ;;  %vm724_vm2 = vweird.f32 %v716_v32 }
 0x152   : > { %v713_v33 = vpop.xlane.xlu1 %712 }
 0x153   : > { %v715_v34 = vmul.f32 %v713_v33, %v4144_v8 }
 0x155   : > { %v3348_v35 = vpop.eup %3347  ;;  %v717_v36 = vadd.f32 1e-05, %v715_v34 }
 0x156   : > { %v719_v37 = vmul.f32 %v3348_v35, %v716_v32  ;;  %vm725_vm1 = vweird.f32 %v3348_v35 }
 0x157   : > { %3349 = vrsqrt.f32 %v717_v36  ;;  %vm726_vm3 = vmor %vm724_vm2, %vm725_vm1  ;;  %vm734_vm5 = vweird.f32 %v717_v36 }
 0x158   : > { %v720_v38 = vmul.f32 %v3348_v35, %v719_v37 }
 0x15a   : > { %v721_v39 = vmul.f32 0.5, %v720_v38 }
 0x15c   : > { %v722_v40 = vsub.f32 1.5, %v721_v39 }
 0x15d   : > { %v3350_v41 = vpop.eup %3349 }
 0x15e   : > { %v723_v42 = vmul.f32 %v3348_v35, %v722_v40  ;;  %v729_v43 = vmul.f32 %v3350_v41, %v717_v36  ;;  %vm735_vm4 = vweird.f32 %v3350_v41 }
 0x15f   : > { %vm736_vm6 = vmor %vm734_vm5, %vm735_vm4 }
 0x160   : > { %v730_v44 = vmul.f32 %v3350_v41, %v729_v43  ;;  %v727_v45 = vsel %vm726_vm3, %v3348_v35, %v723_v42 }
 0x161   : > { %v738_v48 = vmul.f32 %v727_v45, %v4148_v11  ;;  %v783_v11 = vld [vmem:[%s4580_s5] sm:$0x7] }
 0x162   : > { %v731_v46 = vmul.f32 0.5, %v730_v44  ;;  %v785_v59 = vperm.slane %v783_v11, 0  ;;  %v786_v60 = vperm.slane %v783_v11, 1  ;;  %v787_v3 = vperm.slane %v783_v11, 2 }
 0x163   : > { %v743_v53 = vmul.f32 %v3338_v49, %v738_v48 }
 0x164   : > { %v732_v47 = vsub.f32 1.5, %v731_v46 }
 0x165   : > { %v748_v56 = vadd.f32 %v3339_v54, %v743_v53 }
 0x166   : > { %v733_v50 = vmul.f32 %v3350_v41, %v732_v47 }
 0x168   : > { %v737_v51 = vsel %vm736_vm6, %v3350_v41, %v733_v50 }
 0x169   : > { %v739_v52 = vmul.f32 %v737_v51, %v4154_v15 }
 0x16b   : > { %v744_v55 = vmul.f32 %v3338_v49, %v739_v52 }
 0x16d   : > { %v749_v57 = vadd.f32 %v3339_v54, %v744_v55 }
 0x16f   : > { %v750_v58 = vpack.c.bf16 %v749_v57, %v748_v56 }
 0x171   : > { %927 = vmatmul.bf16.vlgmr.msra.gmra.mxu0 %v750_v58  ;;  %941 = vmatmul.bf16.vlgmr.msra.gmra.mxu1 %v750_v58 }
 0x172   : > { %955 = vmatmul.bf16.vlgmr.msra.gmra.mxu2 %v750_v58 }
 0x1ee   : > { %v928_v61 = vpop.f32.mrf.mxu0  ;;  %v942_v62 = vpop.f32.mrf.mxu1 }
 0x1ef   : > { %v929_v63 = vadd.f32 %v928_v61, %v785_v59  ;;  %v943_v2 = vadd.f32 %v942_v62, %v786_v60 }
 0x1f1   : > { %v961_v15 = vpack.c.bf16 %v943_v2, %v929_v63 }
 0x1f3   : > { %965 = vst [vmem:[#allocation2] sm:$0xff] %v961_v15 }
 0x1f5   : > { %v956_v4 = vpop.f32.mrf.mxu2 }
 0x1f6   : > { %v957_v5 = vadd.f32 %v956_v4, %v787_v3  ;;  %v930_v6 = vpop.f32.mrf.mxu0  ;;  %v944_v7 = vpop.f32.mrf.mxu1 }
 0x1f7   : > { %v931_v9 = vadd.f32 %v930_v6, %v785_v59  ;;  %v945_v10 = vadd.f32 %v944_v7, %v786_v60 }
 0x1f8   : > { %v962_v12 = vpack.c.bf16 %v957_v5, %v957_v5 }
 0x1f9   : > { %v963_v13 = vpack.c.bf16 %v945_v10, %v931_v9 }
 0x1fa   : > { %966 = vst [vmem:[#allocation2 + $0x8] sm:$0xf] %v962_v12  ;;  %v2686_v18 = vld [vmem:[#allocation2] sm:$0xf]  ;;  %v2676_v19 = vld [vmem:[#allocation2 + $0x4] sm:$0xf] }
 0x1fb   : > { %967 = vst [vmem:[#allocation2 + $0xc] sm:$0xff] %v963_v13  ;;  %v2672_v29 = vld [vmem:[#allocation2] sm:$0xf]  ;;  %v2690_v39 = vld [vmem:[#allocation2 + $0x4] sm:$0xf] }
 0x1fc   : > { %v2718_v42 = vld [vmem:[#allocation2 + $0x4] sm:$0xf]  ;;  %v2714_v45 = vld [vmem:[#allocation2] sm:$0xf] }
 0x1fd   : > { %v958_v14 = vpop.f32.mrf.mxu2  ;;  %v2700_v59 = vld [vmem:[#allocation2] sm:$0xf]  ;;  %v2704_v62 = vld [vmem:[#allocation2 + $0x4] sm:$0xf] }
 0x1fe   : > { %v959_v16 = vadd.f32 %v958_v14, %v787_v3 }
 0x200   : > { %v964_v17 = vpack.c.bf16 %v959_v16, %v959_v16 }
 0x201   : > { %v2681_v26 = vld [vmem:[#allocation2 + $0x8] sm:$0xf] }
 0x202   : > { %968 = vst [vmem:[#allocation2 + $0x14] sm:$0xf] %v964_v17  ;;  %v3062_v20 = vld [vmem:[#allocation2 + $0x8] sm:$0xf0]  ;;  %v3060_v21 = vld [vmem:[#allocation2 + $0xc] sm:$0xf0] }
 0x203   : > { %v2687_v22 = vor.u32 %v3062_v20, %v2686_v18  ;;  %v2677_v23 = vor.u32 %v3060_v21, %v2676_v19  ;;  %v3059_v25 = vld [vmem:[#allocation2 + $0x8] sm:$0xf0]  ;;  %v3063_v38 = vld [vmem:[#allocation2 + $0xc] sm:$0xf0] }
 0x204   : > { %v2673_v30 = vor.u32 %v3059_v25, %v2672_v29  ;;  %v2691_v40 = vor.u32 %v3063_v38, %v2690_v39  ;;  %v3069_v41 = vld [vmem:[#allocation2 + $0xc] sm:$0xf0]  ;;  %v3068_v44 = vld [vmem:[#allocation2 + $0x8] sm:$0xf0] }
 0x205   : > { %1075 = vrot.lane.b32.xlu0 %v2687_v22, %s3873_s25  ;;  %v999_v24 = vsel %vm994_vm7, %v2677_v23, 0  ;;  %v2719_v43 = vor.u32 %v3069_v41, %v2718_v42  ;;  %v2715_v46 = vor.u32 %v3068_v44, %v2714_v45  ;;  %v3065_v11 = vld [vmem:[#allocation2 + $0x8] sm:$0xf0]  ;;  %v3066_v61 = vld [vmem:[#allocation2 + $0xc] sm:$0xf0] }
 0x206   : > { %1008 = vmatpush.bf16.xpose.msra.mxu3 %v999_v24  ;;  %v2701_v60 = vor.u32 %v3065_v11, %v2700_v59  ;;  %v2705_v63 = vor.u32 %v3066_v61, %v2704_v62 }
 0x209   : > { %v3061_v27 = vld [vmem:[#allocation2 + $0x10] sm:$0xf0] }
 0x20a   : > { %v2682_v28 = vor.u32 %v3061_v27, %v2681_v26  ;;  %v3064_v39 = vld [vmem:[#allocation2 + $0x10] sm:$0xf0] }
 0x20d   : > { %2678 = vmatmul.msk.bf16.vlgmr.msra.gmra.mxu3 %vm994_vm7, %v2673_v30 }
 0x20e   : > { %1057 = vmatpush.bf16.msrb.mxu3 %v2682_v28 }
 0x277   : > { %v1076_v2 = vpop.permute.xlu0 %1075 }
 0x290   : > { %v1010_v32 = vpop.f32.mrf.mxu3 }
 0x291   : > { %v1011_v33 = vadd.f32 %v4168_v31, %v1010_v32 }
 0x293   : > { %v1016_v34 = vsel %vm1015_vm8, %v1011_v33, -inf }
 0x294   : > { %1017 = vmax.xlane.f32.xlu2 %v1016_v34 }
 0x298   : > { %v1012_v35 = vpop.f32.mrf.mxu3 }
 0x299   : > { %v1013_v36 = vadd.f32 %v4168_v31, %v1012_v35 }
 0x29b   : > { %v1019_v37 = vsel %vm1015_vm8, %v1013_v36, -inf }
 0x29c   : > { %1020 = vmax.xlane.f32.xlu2 %v1019_v37 }
 0x2b4   : > { %1082 = vrot.lane.b32.xlu2 %v2691_v40, %s3873_s25  ;;  %v2695_v40 = vld [vmem:[#allocation2 + $0x8] sm:$0xf] }
 0x2b5   : > { %v2696_v41 = vor.u32 %v3064_v39, %v2695_v40 }
 0x2bc   : > { %1270 = vrot.lane.b32.xlu2 %v2719_v43, %s3874_s29 }
 0x2c4   : > { %1263 = vrot.lane.b32.xlu2 %v2715_v46, %s3874_s29 }
 0x307   : > { %v1018_v47 = vpop.xlane.xlu2 %1017 }
 0x308   : > { %v1022_v48 = vsub.f32 %v1011_v33, %v1018_v47 }
 0x30a   : > { %v1024_v49 = vmul.f32 1.442695, %v1022_v48 }
 0x30c   : > { %3351 = vpow2.f32 %v1024_v49 }
 0x30f   : > { %v1021_v50 = vpop.xlane.xlu2 %1020 }
 0x310   : > { %v1023_v51 = vsub.f32 %v1013_v36, %v1021_v50 }
 0x312   : > { %v3352_v52 = vpop.eup %3351  ;;  %v1026_v53 = vmul.f32 1.442695, %v1023_v51 }
 0x313   : > { %v1028_v54 = vsel %vm1015_vm8, %v3352_v52, 0.0 }
 0x314   : > { %3353 = vpow2.f32 %v1026_v53  ;;  %1029 = vadd.xlane.f32.xlu0 %v1028_v54 }
 0x317   : > { %v1083_v55 = vpop.permute.xlu2 %1082 }
 0x318   : > { %v1088_v56 = vsel %vm994_vm7, %v1083_v55, 0 }
 0x319   : > { %1097 = vmatpush.bf16.xpose.msra.mxu3 %v1088_v56 }
 0x31a   : > { %v3354_v57 = vpop.eup %3353 }
 0x31b   : > { %v1031_v58 = vsel %vm1015_vm8, %v3354_v57, 0.0 }
 0x31c   : > { %1032 = vadd.xlane.f32.xlu1 %v1031_v58 }
 0x31f   : > { %v1271_v9 = vpop.permute.xlu2 %1270 }
 0x320   : > { %v1276_v12 = vsel %vm994_vm7, %v1271_v9, 0  ;;  %v3067_v9 = vld [vmem:[#allocation2 + $0x10] sm:$0xf0] }
 0x327   : > { %v1264_v17 = vpop.permute.xlu2 %1263 }
 0x328   : > { %1169 = vrot.lane.b32.xlu0 %v2701_v60, %s3875_s26 }
 0x335   : > { %1176 = vrot.lane.b32.xlu1 %v2705_v63, %s3875_s26 }
 0x387   : > { %v1030_v15 = vpop.xlane.xlu0 %1029 }
 0x388   : > { %3355 = vrcp.f32 %v1030_v15 }
 0x38e   : > { %v3356_v3 = vpop.eup %3355 }
 0x38f   : > { %v1036_v4 = vmul.f32 %v3356_v3, %v3352_v52  ;;  %v1033_v5 = vpop.xlane.xlu1 %1032 }
 0x390   : > { %3357 = vrcp.f32 %v1033_v5 }
 0x391   : > { %1038 = vst.msk [vmem:[%s4183_s1] sm:$0xff] %vm1015_vm8, %v1036_v4 }
 0x396   : > { %v3358_v6 = vpop.eup %3357 }
 0x397   : > { %v1037_v7 = vmul.f32 %v3358_v6, %v3354_v57 }
 0x399   : > { %1039 = vst.msk [vmem:[%s4183_s1 + $0x8] sm:$0xff] %vm1015_vm8, %v1037_v7  ;;  %v1040_v10 = vpack.c.bf16 %v1037_v7, %v1036_v4 }
 0x39a   : > { %v1170_v16 = vpop.permute.xlu0 %1169 }
 0x39b   : > { %2683 = vmatmul.msk.bf16.vlgmr.msrb.gmra.mxu3 %vm1015_vm8, %v1040_v10  ;;  %v2709_v10 = vld [vmem:[#allocation2 + $0x8] sm:$0xf] }
 0x39c   : > { %1285 = vmatpush.bf16.xpose.msrb.mxu3 %v1276_v12  ;;  %v2710_v12 = vor.u32 %v3067_v9, %v2709_v10  ;;  %v3074_v9 = vld [vmem:[#allocation13 + $0x10] sm:$0xff]  ;;  %v3073_v10 = vld [vmem:[#allocation13 + $0x8] sm:$0xff] }
 0x3a7   : > { %v1177_v13 = vpop.permute.xlu1 %1176 }
 0x3a8   : > { %v1182_v14 = vsel %vm994_vm7, %v1177_v13, 0  ;;  %v3070_v13 = vld [vmem:[#allocation2 + $0x10] sm:$0xf0] }
 0x3a9   : > { %1191 = vmatpush.bf16.xpose.msrb.mxu2 %v1182_v14  ;;  %v2723_v14 = vld [vmem:[#allocation2 + $0x8] sm:$0xf] }
 0x3ab   : > { %2692 = vmatmul.msk.bf16.vlgmr.msra.gmra.mxu3 %vm994_vm7, %v1076_v2 }
 0x3b0   : > { %2706 = vmatmul.msk.bf16.vlgmr.msrb.gmra.mxu2 %vm994_vm7, %v1170_v16  ;;  %v2724_v16 = vor.u32 %v3070_v13, %v2723_v14 }
 0x3bb   : > { %2720 = vmatmul.msk.bf16.vlgmr.msrb.gmra.mxu3 %vm994_vm7, %v1264_v17 }
 0x41e   : > { %v4195_v18 = vpop.f32.mrf.mxu3 }
 0x426   : > { %v4197_v19 = vpop.f32.mrf.mxu3 }
 0x42e   : > { %v1099_v20 = vpop.f32.mrf.mxu3 }
 0x42f   : > { %v1100_v21 = vadd.f32 %v4168_v31, %v1099_v20 }
 0x431   : > { %v1104_v22 = vsel %vm1015_vm8, %v1100_v21, -inf }
 0x432   : > { %1105 = vmax.xlane.f32.xlu1 %v1104_v22 }
 0x433   : > { %v1193_v23 = vpop.f32.mrf.mxu2 }
 0x434   : > { %v1194_v24 = vadd.f32 %v4168_v31, %v1193_v23 }
 0x436   : > { %v1101_v25 = vpop.f32.mrf.mxu3  ;;  %v1198_v26 = vsel %vm1015_vm8, %v1194_v24, -inf }
 0x437   : > { %v1102_v27 = vadd.f32 %v4168_v31, %v1101_v25  ;;  %1199 = vmax.xlane.f32.xlu2 %v1198_v26  ;;  %v1126_v25 = vld [vmem:[%s4183_s1] sm:$0xff] }
 0x439   : > { %v1107_v28 = vsel %vm1015_vm8, %v1102_v27, -inf }
 0x43a   : > { %1108 = vmax.xlane.f32.xlu0 %v1107_v28 }
 0x43b   : > { %v1195_v29 = vpop.f32.mrf.mxu2 }
 0x43c   : > { %v1196_v30 = vadd.f32 %v4168_v31, %v1195_v29 }
 0x43e   : > { %v1287_v32 = vpop.f32.mrf.mxu3  ;;  %v1201_v33 = vsel %vm1015_vm8, %v1196_v30, -inf }
 0x43f   : > { %v1288_v34 = vadd.f32 %v4168_v31, %v1287_v32  ;;  %1202 = vmax.xlane.f32.xlu1 %v1201_v33 }
 0x441   : > { %v1292_v35 = vsel %vm1015_vm8, %v1288_v34, -inf }
 0x442   : > { %1293 = vmax.xlane.f32.xlu0 %v1292_v35 }
 0x446   : > { %v1289_v36 = vpop.f32.mrf.mxu3 }
 0x447   : > { %v1290_v37 = vadd.f32 %v4168_v31, %v1289_v36 }
 0x449   : > { %v1295_v38 = vsel %vm1015_vm8, %v1290_v37, -inf }
 0x44a   : > { %1296 = vmax.xlane.f32.xlu2 %v1295_v38 }
 0x462   : > { %1138 = vrot.lane.b32.xlu2 %v2696_v41, %s3873_s25 }
 0x4a5   : > { %v1106_v42 = vpop.xlane.xlu1 %1105 }
 0x4a6   : > { %v1110_v45 = vsub.f32 %v1100_v21, %v1106_v42 }
 0x4a8   : > { %v1112_v48 = vmul.f32 1.442695, %v1110_v45 }
 0x4aa   : > { %v1200_v43 = vpop.xlane.xlu2 %1199 }
 0x4ab   : > { %v1204_v44 = vsub.f32 %v1194_v24, %v1200_v43 }
 0x4ad   : > { %v1206_v46 = vmul.f32 1.442695, %v1204_v44  ;;  %v1109_v47 = vpop.xlane.xlu0 %1108 }
 0x4ae   : > { %v1111_v51 = vsub.f32 %v1102_v27, %v1109_v47 }
 0x4af   : > { %3359 = vpow2.f32 %v1206_v46 }
 0x4b0   : > { %3361 = vpow2.f32 %v1112_v48  ;;  %v1114_v56 = vmul.f32 1.442695, %v1111_v51 }
 0x4b2   : > { %v1203_v49 = vpop.xlane.xlu1 %1202 }
 0x4b3   : > { %v1205_v50 = vsub.f32 %v1196_v30, %v1203_v49  ;;  %v1127_v30 = vld [vmem:[%s4183_s1 + $0x8] sm:$0xff] }
 0x4b5   : > { %v3360_v31 = vpop.eup %3359  ;;  %v1208_v52 = vmul.f32 1.442695, %v1205_v50  ;;  %v1294_v53 = vpop.xlane.xlu0 %1293 }
 0x4b6   : > { %v1298_v54 = vsub.f32 %v1288_v34, %v1294_v53  ;;  %v1210_v55 = vsel %vm1015_vm8, %v3360_v31, 0.0  ;;  %v3362_v58 = vpop.eup %3361 }
 0x4b7   : > { %3363 = vpow2.f32 %v1208_v52  ;;  %1211 = vadd.xlane.f32.xlu1 %v1210_v55  ;;  %v1116_v62 = vsel %vm1015_vm8, %v3362_v58, 0.0 }
 0x4b8   : > { %v1300_v57 = vmul.f32 1.442695, %v1298_v54  ;;  %3365 = vpow2.f32 %v1114_v56 }
 0x4ba   : > { %3367 = vpow2.f32 %v1300_v57 }
 0x4bd   : > { %v3364_v11 = vpop.eup %3363  ;;  %v1297_v59 = vpop.xlane.xlu2 %1296 }
 0x4be   : > { %v1299_v60 = vsub.f32 %v1290_v37, %v1297_v59  ;;  %v1213_v61 = vsel %vm1015_vm8, %v3364_v11, 0.0  ;;  %v3366_v2 = vpop.eup %3365 }
 0x4bf   : > { %1214 = vadd.xlane.f32.xlu0 %v1213_v61  ;;  %1117 = vadd.xlane.f32.xlu1 %v1116_v62  ;;  %v1119_v4 = vsel %vm1015_vm8, %v3366_v2, 0.0 }
 0x4c0   : > { %v1302_v63 = vmul.f32 1.442695, %v1299_v60  ;;  %v3368_v15 = vpop.eup %3367 }
 0x4c1   : > { %v1304_v5 = vsel %vm1015_vm8, %v3368_v15, 0.0 }
 0x4c2   : > { %3369 = vpow2.f32 %v1302_v63 }
 0x4c5   : > { %v1139_v3 = vpop.permute.xlu2 %1138 }
 0x4c6   : > { %1151 = vmatpush.bf16.msrb.mxu0 %v1139_v3  ;;  %v3079_v3 = vld [vmem:[#allocation13 + $0x38] sm:$0xff] }
 0x4c7   : > { %1120 = vadd.xlane.f32.xlu0 %v1119_v4  ;;  %1305 = vadd.xlane.f32.xlu1 %v1304_v5  ;;  %v3078_v4 = vld [vmem:[#allocation13 + $0x30] sm:$0xff]  ;;  %v3077_v5 = vld [vmem:[#allocation13 + $0x28] sm:$0xff] }
 0x4c8   : > { %v3370_v6 = vpop.eup %3369  ;;  %1464 = vmatpush.bf16.msrb.mxu1 %v3079_v3 }
 0x4c9   : > { %v1307_v7 = vsel %vm1015_vm8, %v3370_v6, 0.0 }
 0x4cc   : > { %1465 = vmatpush.bf16.msrb.mxu1 %v3078_v4  ;;  %v2844_v4 = vld [vmem:[#allocation18 + $0xa0] sm:$0xf] }
 0x4cf   : > { %1308 = vadd.xlane.f32.xlu0 %v1307_v7  ;;  %v3075_v7 = vld [vmem:[#allocation13 + $0x18] sm:$0xff] }
 0x4d0   : > { %1466 = vmatpush.bf16.msrb.mxu1 %v3077_v5  ;;  %v3102_v5 = vld [vmem:[#allocation18 + $0xac] sm:$0xf0] }
 0x4e0   : > { %1232 = vrot.lane.b32.xlu1 %v2710_v12, %s3875_s26  ;;  %v3072_v12 = vld [vmem:[#allocation13] sm:$0xff] }
 0x4e3   : > { %1326 = vrot.lane.b32.xlu0 %v2724_v16, %s3874_s29 }
 0x52a   : > { %v1212_v17 = vpop.xlane.xlu1 %1211 }
 0x532   : > { %v1215_v20 = vpop.xlane.xlu0 %1214  ;;  %v1118_v21 = vpop.xlane.xlu1 %1117 }
 0x533   : > { %3371 = vrcp.f32 %v1118_v21 }
 0x539   : > { %v3372_v22 = vpop.eup %3371 }
 0x53a   : > { %v1121_v23 = vpop.xlane.xlu0 %1120  ;;  %v1124_v24 = vmul.f32 %v3372_v22, %v3362_v58  ;;  %v1306_v32 = vpop.xlane.xlu1 %1305 }
 0x53b   : > { %3373 = vrcp.f32 %v1121_v23 }
 0x53c   : > { %3375 = vrcp.f32 %v1212_v17  ;;  %v1128_v26 = vadd.f32 %v1126_v25, %v1124_v24 }
 0x53d   : > { %3377 = vrcp.f32 %v1215_v20 }
 0x53e   : > { %1130 = vst.msk [vmem:[%s4183_s1] sm:$0xff] %vm1015_vm8, %v1128_v26  ;;  %3379 = vrcp.f32 %v1306_v32 }
 0x541   : > { %v3374_v27 = vpop.eup %3373 }
 0x542   : > { %v3376_v28 = vpop.eup %3375  ;;  %v1125_v29 = vmul.f32 %v3374_v27, %v3366_v2  ;;  %v1309_v38 = vpop.xlane.xlu0 %1308 }
 0x543   : > { %v1218_v35 = vmul.f32 %v3376_v28, %v3360_v31  ;;  %v3378_v39 = vpop.eup %3377  ;;  %3381 = vrcp.f32 %v1309_v38 }
 0x544   : > { %v1129_v33 = vadd.f32 %v1127_v30, %v1125_v29  ;;  %v1132_v34 = vpack.c.bf16 %v1125_v29, %v1124_v24  ;;  %v3380_v40 = vpop.eup %3379  ;;  %v1219_v41 = vmul.f32 %v3378_v39, %v3364_v11 }
 0x545   : > { %v1220_v36 = vld [vmem:[%s4183_s1] sm:$0xff]  ;;  %v1312_v44 = vmul.f32 %v3380_v40, %v3368_v15 }
 0x546   : > { %1131 = vst.msk [vmem:[%s4183_s1 + $0x8] sm:$0xff] %vm1015_vm8, %v1129_v33  ;;  %2697 = vmatmul.msk.bf16.vlgmr.msrb.gmra.mxu0 %vm1015_vm8, %v1132_v34  ;;  %v1222_v37 = vadd.f32 %v1220_v36, %v1218_v35  ;;  %v1226_v50 = vpack.c.bf16 %v1219_v41, %v1218_v35  ;;  %v3341_v34 = vld [vmem:[#allocation15] ss:$0 sm:$0xff] }
 0x548   : > { %1224 = vst.msk [vmem:[%s4183_s1] sm:$0xff] %vm1015_vm8, %v1222_v37 }
 0x549   : > { %v3382_v45 = vpop.eup %3381 }
 0x54a   : > { %v1313_v49 = vmul.f32 %v3382_v45, %v3370_v6  ;;  %v3076_v6 = vld [vmem:[#allocation13 + $0x20] sm:$0xff] }
 0x54b   : > { %1467 = vmatpush.bf16.msrb.mxu1 %v3076_v6  ;;  %v2876_v45 = vld [vmem:[#allocation18 + $0xe0] sm:$0xf]  ;;  %v3100_v6 = vld [vmem:[#allocation18 + $0xa4] sm:$0xf] }
 0x54c   : > { %v1320_v52 = vpack.c.bf16 %v1313_v49, %v1312_v44 }
 0x54d   : > { %v1221_v42 = vld [vmem:[%s4183_s1 + $0x8] sm:$0xff] }
 0x54e   : > { %v1223_v43 = vadd.f32 %v1221_v42, %v1219_v41 }
 0x54f   : > { %v1314_v46 = vld [vmem:[%s4183_s1] sm:$0xff]  ;;  %1468 = vmatpush.bf16.msrb.mxu1 %v3075_v7  ;;  %v2845_v7 = vor.u32 %v3102_v5, %v2844_v4 }
 0x550   : > { %1225 = vst.msk [vmem:[%s4183_s1 + $0x8] sm:$0xff] %vm1015_vm8, %v1223_v43  ;;  %v1316_v47 = vadd.f32 %v1314_v46, %v1312_v44  ;;  %v3110_v46 = vld [vmem:[#allocation18 + $0xec] sm:$0xf0] }
 0x552   : > { %v1233_v48 = vpop.permute.xlu1 %1232  ;;  %1318 = vst.msk [vmem:[%s4183_s1] sm:$0xff] %vm1015_vm8, %v1316_v47  ;;  %v3108_v47 = vld [vmem:[#allocation18 + $0xe4] sm:$0xf] }
 0x553   : > { %1245 = vmatpush.bf16.msra.mxu2 %v1233_v48  ;;  %1469 = vmatpush.bf16.msrb.mxu1 %v3074_v9  ;;  %v2877_v48 = vor.u32 %v3110_v46, %v2876_v45  ;;  %v2846_v9 = vld [vmem:[#allocation18 + $0xb0] sm:$0xf0]  ;;  %v2796_v46 = vld [vmem:[#allocation18 + $0x40] sm:$0xf] }
 0x555   : > { %v1327_v51 = vpop.permute.xlu0 %1326 }
 0x556   : > { %2711 = vmatmul.msk.bf16.vlgmr.msra.gmra.mxu2 %vm1015_vm8, %v1226_v50  ;;  %1339 = vmatpush.bf16.msra.mxu0 %v1327_v51  ;;  %v2884_v50 = vld [vmem:[#allocation18 + $0xe8] sm:$0xf]  ;;  %v3111_v51 = vld [vmem:[#allocation18 + $0xf4] sm:$0xf0] }
 0x557   : > { %v1315_v31 = vld [vmem:[%s4183_s1 + $0x8] sm:$0xff]  ;;  %1470 = vmatpush.bf16.msrb.mxu1 %v3073_v10  ;;  %1745 = vmatpush.bf16.msrb.mxu2 %v2877_v48  ;;  %v3088_v48 = vld [vmem:[#allocation18 + $0x44] sm:$0xf] }
 0x558   : > { %v1317_v53 = vadd.f32 %v1315_v31, %v1313_v49  ;;  %v2878_v49 = vld [vmem:[#allocation18 + $0xf0] sm:$0xf0]  ;;  %v2852_v10 = vld [vmem:[#allocation18 + $0xa8] sm:$0xf] }
 0x559   : > { %2725 = vmatmul.msk.bf16.vlgmr.msra.gmra.mxu0 %vm1015_vm8, %v1320_v52  ;;  %v1382_v54 = vld [vmem:[%s4183_s1] sm:$0xff]  ;;  %v2881_v31 = vor.u32 %v3108_v47, %v2878_v49  ;;  %v2885_v52 = vor.u32 %v3111_v51, %v2884_v50  ;;  %v2804_v51 = vld [vmem:[#allocation18 + $0x48] sm:$0xf] }
 0x55a   : > { %1319 = vst.msk [vmem:[%s4183_s1 + $0x8] sm:$0xff] %vm1015_vm8, %v1317_v53  ;;  %v1384_v55 = vmul.f32 0.25, %v1382_v54  ;;  %v3109_v53 = vld [vmem:[#allocation18 + $0xec] sm:$0xf]  ;;  %v2886_v54 = vld [vmem:[#allocation18 + $0xf8] sm:$0xf0] }
 0x55b   : > { %1471 = vmatpush.bf16.msrb.mxu1 %v3072_v12  ;;  %1759 = vmatpush.bf16.msra.mxu3 %v2881_v31  ;;  %v3103_v12 = vld [vmem:[#allocation18 + $0xb4] sm:$0xf0]  ;;  %v3090_v47 = vld [vmem:[#allocation18 + $0x4c] sm:$0xf0]  ;;  %v2798_v50 = vld [vmem:[#allocation18 + $0x50] sm:$0xf0] }
 0x55c   : > { %1386 = vst.msk [vmem:[%s4183_s1] sm:$0xff] %vm1015_vm8, %v1384_v55  ;;  %v2889_v55 = vor.u32 %v3109_v53, %v2886_v54  ;;  %1773 = vmatpush.bf16.msrb.mxu0 %v2885_v52  ;;  %v2797_v49 = vor.u32 %v3090_v47, %v2796_v46  ;;  %v3091_v31 = vld [vmem:[#allocation18 + $0x54] sm:$0xf0]  ;;  %v2801_v53 = vor.u32 %v3088_v48, %v2798_v50  ;;  %v3343_v46 = vld [vmem:[%s4581_s14] ss:$0 sm:$0xff] }
 0x55d   : > { %v2805_v54 = vor.u32 %v3091_v31, %v2804_v51  ;;  %v3135_v51 = vld [vmem:[#allocation19 + $0xb8] sm:$0xff] }
 0x55f   : > { %1787 = vmatpush.bf16.msra.mxu1 %v2889_v55  ;;  %v3089_v55 = vld [vmem:[#allocation18 + $0x4c] sm:$0xf] }
 0x561   : > { %v1383_v56 = vld [vmem:[%s4183_s1 + $0x8] sm:$0xff] }
 0x562   : > { %v1385_v57 = vmul.f32 0.25, %v1383_v56  ;;  %v2860_v56 = vld [vmem:[#allocation18 + $0xc0] sm:$0xf] }
 0x564   : > { %1387 = vst.msk [vmem:[%s4183_s1 + $0x8] sm:$0xff] %vm1015_vm8, %v1385_v57  ;;  %v3106_v57 = vld [vmem:[#allocation18 + $0xcc] sm:$0xf0] }
 0x5c3   : > { %v1153_v58 = vpop.f32.mrf.mxu0 }
 0x5cb   : > { %v1155_v59 = vpop.f32.mrf.mxu0 }
 0x5cc   : > { %v3328_v63 = vpack.i.bf16 %v1155_v59, %v1153_v58  ;;  %v3104_v58 = vld [vmem:[#allocation18 + $0xc4] sm:$0xf]  ;;  %v2862_v59 = vld [vmem:[#allocation18 + $0xd0] sm:$0xf0] }
 0x5d6   : > { %v1341_v62 = vpop.f32.mrf.mxu0 }
 0x5d9   : > { %v1247_v11 = vpop.f32.mrf.mxu2 }
 0x5de   : > { %v1343_v2 = vpop.f32.mrf.mxu0 }
 0x5df   : > { %v3333_v15 = vpack.i.bf16 %v1343_v2, %v1341_v62  ;;  %v2865_v62 = vor.u32 %v3104_v58, %v2862_v59  ;;  %v3105_v2 = vld [vmem:[#allocation18 + $0xcc] sm:$0xf]  ;;  %v3086_v59 = vld [vmem:[#allocation18 + $0x2c] sm:$0xf0] }
 0x5e1   : > { %v1249_v60 = vpop.f32.mrf.mxu2  ;;  %1760 = vmatpush.bf16.msra.mxu3 %v2865_v62 }
 0x5e2   : > { %v3323_v61 = vpack.i.bf16 %v1249_v60, %v1247_v11  ;;  %v2861_v11 = vor.u32 %v3106_v57, %v2860_v56  ;;  %v2868_v60 = vld [vmem:[#allocation18 + $0xc8] sm:$0xf]  ;;  %v2806_v56 = vld [vmem:[#allocation18 + $0x58] sm:$0xf0]  ;;  %v2780_v57 = vld [vmem:[#allocation18 + $0x20] sm:$0xf] }
 0x5e3   : > { %v2781_v62 = vor.u32 %v3086_v59, %v2780_v57  ;;  %v3127_v59 = vld [vmem:[#allocation19 + $0x78] sm:$0xff] }
 0x5e4   : > { %3324 = vrot.lane.b32.xlu2 %v3323_v61, %s3875_s26  ;;  %v3107_v61 = vld [vmem:[#allocation18 + $0xd4] sm:$0xf0]  ;;  %1746 = vmatpush.bf16.msrb.mxu2 %v2861_v11  ;;  %v2809_v11 = vor.u32 %v3089_v55, %v2806_v56 }
 0x5e8   : > { %1747 = vmatpush.bf16.msrb.mxu2 %v2845_v7  ;;  %v2764_v7 = vld [vmem:[#allocation18] sm:$0xf] }
 0x5ec   : > { %3329 = vrot.lane.b32.xlu2 %v3328_v63, %s3874_s29  ;;  %v2869_v63 = vor.u32 %v3107_v61, %v2868_v60  ;;  %v3084_v60 = vld [vmem:[#allocation18 + $0x24] sm:$0xf]  ;;  %v2782_v61 = vld [vmem:[#allocation18 + $0x30] sm:$0xf0]  ;;  %s2332_s29 = sshll.u32 %s4183_s1, 4  ;;  %s2333_s29 = int_to_ptr.vmem [resolvable:$true] %s2332_s29 }
 0x5ee   : > { %1774 = vmatpush.bf16.msrb.mxu0 %v2869_v63  ;;  %v2785_v63 = vor.u32 %v3084_v60, %v2782_v61 }
 0x5f4   : > { %3334 = vrot.lane.b32.xlu2 %v3333_v15, %s3873_s25  ;;  %v2870_v15 = vld [vmem:[#allocation18 + $0xd8] sm:$0xf0]  ;;  %s2331_s25 = scalar_lea.hbm %s4598_s4, %s3144_s16 }
 0x5f5   : > { %v2873_v3 = vor.u32 %v3105_v2, %v2870_v15  ;;  %v2788_v2 = vld [vmem:[#allocation18 + $0x28] sm:$0xf]  ;;  %v3087_v15 = vld [vmem:[#allocation18 + $0x34] sm:$0xf0]  ;;  %s2334_s26 = sshll.u32 %s2331_s25, 4  ;;  %s2335_s26 = int_to_ptr.hbm [resolvable:$true] %s2334_s26 }
 0x5f6   : > { %v2789_v5 = vor.u32 %v3087_v15, %v2788_v2  ;;  %v3133_v2 = vld [vmem:[#allocation19 + $0xa8] sm:$0xff]  ;;  %s3733_s28 = sshra.s32 %s2335_s26, 4  ;;  %s3734_s28 = int_to_ptr.hbm [resolvable:$true] %s3733_s28 }
 0x5f7   : > { %1788 = vmatpush.bf16.msra.mxu1 %v2873_v3  ;;  %v3085_v3 = vld [vmem:[#allocation18 + $0x2c] sm:$0xf]  ;;  %s3735_s14 = scalar_lea.hbm %s3734_s28, 16  ;;  %p3740_p10 = scmp.lt.s32.totalorder %s3734_s28, %s4598_s4 }
 0x5f8   : > { %v3141_v15 = vld [vmem:[#allocation19 + $0xe8] sm:$0xff]  ;;  %p3736_p1 = scmp.ne.s32.totalorder %s3734_s28, %s3735_s14 }
 0x5fa   : > { %p3737_p3 = pnand %p3736_p1, %p4085_p5 }
 0x5fc   : > { %p3738_p9 = pneg %p3737_p3 }
 0x63e   : > { %v3325_v13 = vpop.permute.xlu2 %3324 }
 0x63f   : > { %v3327_v22 = vunpack.i.h.bf16 %v3325_v13  ;;  %v3326_v23 = vunpack.i.l.bf16 %v3325_v13  ;;  %v2849_v13 = vor.u32 %v3100_v6, %v2846_v9  ;;  %v2790_v6 = vld [vmem:[#allocation18 + $0x38] sm:$0xf0] }
 0x640   : > { %v2793_v9 = vor.u32 %v3085_v3, %v2790_v6 }
 0x641   : > { %1761 = vmatpush.bf16.msra.mxu3 %v2849_v13  ;;  %v2766_v13 = vld [vmem:[#allocation18 + $0x10] sm:$0xf0] }
 0x646   : > { %v3330_v14 = vpop.permute.xlu2 %3329 }
 0x647   : > { %v3332_v16 = vunpack.i.h.bf16 %v3330_v14  ;;  %v3331_v17 = vunpack.i.l.bf16 %v3330_v14  ;;  %v2853_v14 = vor.u32 %v3103_v12, %v2852_v10  ;;  %v3082_v10 = vld [vmem:[#allocation18 + $0xc] sm:$0xf0]  ;;  %v3080_v12 = vld [vmem:[#allocation18 + $0x4] sm:$0xf] }
 0x649   : > { %v1371_v20 = vsel %vm994_vm7, %v4197_v19, %v3332_v16  ;;  %v1370_v21 = vsel %vm994_vm7, %v4195_v18, %v3331_v17  ;;  %v3101_v16 = vld [vmem:[#allocation18 + $0xac] sm:$0xf]  ;;  %v2854_v17 = vld [vmem:[#allocation18 + $0xb8] sm:$0xf0]  ;;  %1775 = vmatpush.bf16.msrb.mxu0 %v2853_v14  ;;  %v2765_v14 = vor.u32 %v3082_v10, %v2764_v7  ;;  %v3118_v7 = vld [vmem:[#allocation19 + $0x30] sm:$0xff] }
 0x64a   : > { %v1373_v27 = vsel %vm1372_vm9, %v1370_v21, %v3326_v23  ;;  %v1374_v28 = vsel %vm1372_vm9, %v1371_v20, %v3327_v22  ;;  %v2857_v20 = vor.u32 %v3101_v16, %v2854_v17  ;;  %v2828_v21 = vld [vmem:[#allocation18 + $0x80] sm:$0xf]  ;;  %v3098_v22 = vld [vmem:[#allocation18 + $0x8c] sm:$0xf0]  ;;  %v3096_v23 = vld [vmem:[#allocation18 + $0x84] sm:$0xf] }
 0x64b   : > { %v2772_v16 = vld [vmem:[#allocation18 + $0x8] sm:$0xf]  ;;  %v3083_v17 = vld [vmem:[#allocation18 + $0x14] sm:$0xf0] }
 0x64c   : > { %1789 = vmatpush.bf16.msra.mxu1 %v2857_v20  ;;  %v3081_v20 = vld [vmem:[#allocation18 + $0xc] sm:$0xf] }
 0x64e   : > { %v3335_v24 = vpop.permute.xlu2 %3334 }
 0x64f   : > { %v3337_v25 = vunpack.i.h.bf16 %v3335_v24  ;;  %v3336_v26 = vunpack.i.l.bf16 %v3335_v24  ;;  %v2829_v24 = vor.u32 %v3098_v22, %v2828_v21  ;;  %v2769_v21 = vor.u32 %v3080_v12, %v2766_v13  ;;  %v3132_v13 = vld [vmem:[#allocation19 + $0xa0] sm:$0xff] }
 0x650   : > { %v2773_v22 = vor.u32 %v3083_v17, %v2772_v16 }
 0x651   : > { %v1376_v29 = vsel %vm1375_vm10, %v1373_v27, %v3336_v26  ;;  %v1377_v30 = vsel %vm1375_vm10, %v1374_v28, %v3337_v25  ;;  %v2830_v25 = vld [vmem:[#allocation18 + $0x90] sm:$0xf0]  ;;  %v2836_v26 = vld [vmem:[#allocation18 + $0x88] sm:$0xf]  ;;  %v3099_v27 = vld [vmem:[#allocation18 + $0x94] sm:$0xf0]  ;;  %1748 = vmatpush.bf16.msrb.mxu2 %v2829_v24 }
 0x652   : > { %v3149_v32 = vpack.c.bf16 %v1377_v30, %v1376_v29  ;;  %v2833_v28 = vor.u32 %v3096_v23, %v2830_v25  ;;  %v2837_v29 = vor.u32 %v3099_v27, %v2836_v26  ;;  %v3097_v30 = vld [vmem:[#allocation18 + $0x8c] sm:$0xf]  ;;  %v2774_v23 = vld [vmem:[#allocation18 + $0x18] sm:$0xf0] }
 0x653   : > { %v2777_v24 = vor.u32 %v3081_v20, %v2774_v23 }
 0x654   : > { %3150 = vst [vmem:[#allocation3] sm:$0xff] %v3149_v32   ;;  %v2838_v32 = vld [vmem:[#allocation18 + $0x98] sm:$0xf0]  ;;  %1762 = vmatpush.bf16.msra.mxu3 %v2833_v28  ;;  %1776 = vmatpush.bf16.msrb.mxu0 %v2837_v29 }
 0x65b   : > { %v3071_v33 = vld [vmem:[#allocation3] sm:$0xff] }
 0x65c   : > { %1472 = vmatmul.bf16.vlgmr.msrb.gmra.mxu1 %v3071_v33  ;;  %v2841_v33 = vor.u32 %v3097_v30, %v2838_v32 }
 0x65e   : > { %1790 = vmatpush.bf16.msra.mxu1 %v2841_v33 }
 0x6d9   : > { %v1473_v19 = vpop.f32.mrf.mxu1 }
 0x6da   : > { %v1474_v35 = vadd.f32 %v3341_v34, %v1473_v19  ;;  %v3094_v19 = vld [vmem:[#allocation18 + $0x6c] sm:$0xf0] }
 0x6dc   : > { %v4255_v18 = vadd.f32 %v1474_v35, %v4138_v0  ;;  %v3092_v35 = vld [vmem:[#allocation18 + $0x64] sm:$0xf] }
 0x6de   : > { %1485 = vadd.xlane.f32.xlu0 %v4255_v18 }
 0x6e1   : > { %v1475_v36 = vpop.f32.mrf.mxu1 }
 0x6e2   : > { %v1476_v37 = vadd.f32 %v3341_v34, %v1475_v36  ;;  %v2812_v34 = vld [vmem:[#allocation18 + $0x60] sm:$0xf] }
 0x6e3   : > { %v2813_v36 = vor.u32 %v3094_v19, %v2812_v34 }
 0x6e4   : > { %v4259_v38 = vadd.f32 %v1476_v37, %v4141_v1  ;;  %v2814_v37 = vld [vmem:[#allocation18 + $0x70] sm:$0xf0] }
 0x6e5   : > { %1749 = vmatpush.bf16.msrb.mxu2 %v2813_v36 }
 0x6e6   : > { %1487 = vadd.xlane.f32.xlu1 %v4259_v38 }
 0x6e9   : > { %1750 = vmatpush.bf16.msrb.mxu2 %v2797_v49 }
 0x6ed   : > { %1751 = vmatpush.bf16.msrb.mxu2 %v2781_v62 }
 0x6f1   : > { %1752 = vmatpush.bf16.msrb.mxu2 %v2765_v14  ;;  %v3140_v14 = vld [vmem:[#allocation19 + $0xe0] sm:$0xff] }
 0x751   : > { %v1486_v39 = vpop.xlane.xlu0 %1485 }
 0x752   : > { %v1496_v40 = vmul.f32 %v1486_v39, %v4144_v8  ;;  %v2820_v39 = vld [vmem:[#allocation18 + $0x68] sm:$0xf] }
 0x754   : > { %v4264_v41 = vsub.f32 %v4255_v18, %v1496_v40  ;;  %v3095_v40 = vld [vmem:[#allocation18 + $0x74] sm:$0xf0] }
 0x756   : > { %v1500_v42 = vmul.f32 %v4264_v41, %v4264_v41 }
 0x758   : > { %1502 = vadd.xlane.f32.xlu2 %v1500_v42  ;;  %v2817_v42 = vor.u32 %v3092_v35, %v2814_v37 }
 0x759   : > { %v1488_v0 = vpop.xlane.xlu1 %1487 }
 0x75a   : > { %v1497_v43 = vmul.f32 %v1488_v0, %v4144_v8  ;;  %v2821_v0 = vor.u32 %v3095_v40, %v2820_v39  ;;  %1763 = vmatpush.bf16.msra.mxu3 %v2817_v42  ;;  %v3342_v42 = vld [vmem:[#allocation16] ss:$0 sm:$0xff] }
 0x75c   : > { %v4270_v44 = vsub.f32 %v4259_v38, %v1497_v43  ;;  %v3093_v43 = vld [vmem:[#allocation18 + $0x6c] sm:$0xf]  ;;  %1777 = vmatpush.bf16.msrb.mxu0 %v2821_v0 }
 0x75e   : > { %v1501_v1 = vmul.f32 %v4270_v44, %v4270_v44  ;;  %1764 = vmatpush.bf16.msra.mxu3 %v2801_v53  ;;  %v3134_v53 = vld [vmem:[#allocation19 + $0xb0] sm:$0xff] }
 0x760   : > { %1504 = vadd.xlane.f32.xlu0 %v1501_v1  ;;  %v2822_v1 = vld [vmem:[#allocation18 + $0x78] sm:$0xf0]  ;;  %1778 = vmatpush.bf16.msrb.mxu0 %v2805_v54  ;;  %v3142_v54 = vld [vmem:[#allocation19 + $0xf0] sm:$0xff] }
 0x761   : > { %v2825_v45 = vor.u32 %v3093_v43, %v2822_v1 }
 0x762   : > { %1765 = vmatpush.bf16.msra.mxu3 %v2785_v63 }
 0x763   : > { %1791 = vmatpush.bf16.msra.mxu1 %v2825_v45 }
 0x764   : > { %1779 = vmatpush.bf16.msrb.mxu0 %v2789_v5 }
 0x766   : > { %1766 = vmatpush.bf16.msra.mxu3 %v2769_v21 }
 0x767   : > { %1792 = vmatpush.bf16.msra.mxu1 %v2809_v11  ;;  %v3119_v11 = vld [vmem:[#allocation19 + $0x38] sm:$0xff] }
 0x768   : > { %1780 = vmatpush.bf16.msrb.mxu0 %v2773_v22  ;;  %2233 = vmatpush.bf16.msra.mxu2 %v3119_v11 }
 0x76a   : > { %2247 = vmatpush.bf16.msrb.mxu3 %v3127_v59 }
 0x76b   : > { %1793 = vmatpush.bf16.msra.mxu1 %v2793_v9  ;;  %v3126_v9 = vld [vmem:[#allocation19 + $0x70] sm:$0xff] }
 0x76c   : > { %2261 = vmatpush.bf16.msra.mxu0 %v3135_v51  ;;  %2234 = vmatpush.bf16.msra.mxu2 %v3118_v7 }
 0x76e   : > { %2248 = vmatpush.bf16.msrb.mxu3 %v3126_v9 }
 0x76f   : > { %1794 = vmatpush.bf16.msra.mxu1 %v2777_v24  ;;  %v3117_v24 = vld [vmem:[#allocation19 + $0x28] sm:$0xff] }
 0x770   : > { %2262 = vmatpush.bf16.msra.mxu0 %v3134_v53  ;;  %2235 = vmatpush.bf16.msra.mxu2 %v3117_v24  ;;  %v3122_v53 = vld [vmem:[#allocation19 + $0x50] sm:$0xff] }
 0x774   : > { %2263 = vmatpush.bf16.msra.mxu0 %v3133_v2 }
 0x778   : > { %2264 = vmatpush.bf16.msra.mxu0 %v3132_v13 }
 0x7cb   : > { %v1503_v52 = vpop.xlane.xlu2 %1502 }
 0x7cc   : > { %v1506_v58 = vmul.f32 %v1503_v52, %v4144_v8 }
 0x7ce   : > { %v1508_v4 = vadd.f32 1e-05, %v1506_v58 }
 0x7d0   : > { %3383 = vrsqrt.f32 %v1508_v4  ;;  %vm1516_vm12 = vweird.f32 %v1508_v4 }
 0x7d3   : > { %v1505_v25 = vpop.xlane.xlu0 %1504 }
 0x7d4   : > { %v1507_v26 = vmul.f32 %v1505_v25, %v4144_v8  ;;  %v3125_v25 = vld [vmem:[#allocation19 + $0x68] sm:$0xff] }
 0x7d5   : > { %2249 = vmatpush.bf16.msrb.mxu3 %v3125_v25 }
 0x7d6   : > { %v3384_v27 = vpop.eup %3383  ;;  %v1509_v28 = vadd.f32 1e-05, %v1507_v26 }
 0x7d7   : > { %v1511_v29 = vmul.f32 %v3384_v27, %v1508_v4  ;;  %vm1517_vm11 = vweird.f32 %v3384_v27 }
 0x7d8   : > { %3385 = vrsqrt.f32 %v1509_v28  ;;  %vm1518_vm13 = vmor %vm1516_vm12, %vm1517_vm11  ;;  %vm1526_vm15 = vweird.f32 %v1509_v28 }
 0x7d9   : > { %v1512_v30 = vmul.f32 %v3384_v27, %v1511_v29 }
 0x7db   : > { %v1513_v32 = vmul.f32 0.5, %v1512_v30  ;;  %v3131_v30 = vld [vmem:[#allocation19 + $0x98] sm:$0xff] }
 0x7dc   : > { %2265 = vmatpush.bf16.msra.mxu0 %v3131_v30 }
 0x7dd   : > { %v1514_v33 = vsub.f32 1.5, %v1513_v32  ;;  %v3139_v32 = vld [vmem:[#allocation19 + $0xd8] sm:$0xff] }
 0x7de   : > { %v3386_v34 = vpop.eup %3385 }
 0x7df   : > { %v1515_v19 = vmul.f32 %v3384_v27, %v1514_v33  ;;  %v1521_v35 = vmul.f32 %v3386_v34, %v1509_v28  ;;  %vm1527_vm14 = vweird.f32 %v3386_v34 }
 0x7e0   : > { %vm1528_vm0 = vmor %vm1526_vm15, %vm1527_vm14 }
 0x7e1   : > { %v1522_v36 = vmul.f32 %v3386_v34, %v1521_v35  ;;  %v1519_v37 = vsel %vm1518_vm13, %v3384_v27, %v1515_v19  ;;  %v3116_v35 = vld [vmem:[#allocation19 + $0x20] sm:$0xff] }
 0x7e2   : > { %v1530_v40 = vmul.f32 %v1519_v37, %v4264_v41  ;;  %v4284_v41 = vld [vmem:[%s4582_s27] sm:$0xf]  ;;  %2236 = vmatpush.bf16.msra.mxu2 %v3116_v35  ;;  %s3739_s27 = scalar_lea.hbm %s4598_s4, 32 }
 0x7e3   : > { %v1523_v8 = vmul.f32 0.5, %v1522_v36  ;;  %v1579_v31 = vperm.slane %v4284_v41, 2  ;;  %v1580_v52 = vperm.slane %v4284_v41, 3  ;;  %v1577_v60 = vperm.slane %v4284_v41, 0  ;;  %v3124_v36 = vld [vmem:[#allocation19 + $0x60] sm:$0xff]  ;;  %p3741_p11 = scmp.lt.s32.totalorder %s3739_s27, %s3735_s14 }
 0x7e4   : > { %v1535_v45 = vmul.f32 %v3342_v42, %v1530_v40  ;;  %v1578_v61 = vperm.slane %v4284_v41, 1  ;;  %2250 = vmatpush.bf16.msrb.mxu3 %v3124_v36 }
 0x7e5   : > { %v1524_v39 = vsub.f32 1.5, %v1523_v8  ;;  %p3742_p12 = por %p3741_p11, %p3740_p10 }
 0x7e6   : > { %v1540_v48 = vadd.f32 %v3343_v46, %v1535_v45  ;;  %v3123_v45 = vld [vmem:[#allocation19 + $0x58] sm:$0xff] }
 0x7e7   : > { %v1525_v0 = vmul.f32 %v3386_v34, %v1524_v39  ;;  %p3743_p13 = pnand %p3742_p12, %p3738_p9 }
 0x7e8   : > { %2251 = vmatpush.bf16.msrb.mxu3 %v3123_v45 }
 0x7e9   : > { %v1529_v43 = vsel %vm1528_vm0, %v3386_v34, %v1525_v0  ;;  %v3130_v0 = vld [vmem:[#allocation19 + $0x90] sm:$0xff] }
 0x7ea   : > { %v1531_v1 = vmul.f32 %v1529_v43, %v4270_v44  ;;  %v3143_v44 = vld [vmem:[#allocation19 + $0xf8] sm:$0xff]  ;;  %v3138_v43 = vld [vmem:[#allocation19 + $0xd0] sm:$0xff]  ;;  %2266 = vmatpush.bf16.msra.mxu0 %v3130_v0 }
 0x7eb   : > { %2275 = vmatpush.bf16.msrb.mxu1 %v3143_v44  ;;  %v3137_v44 = vld [vmem:[#allocation19 + $0xc8] sm:$0xff] }
 0x7ec   : > { %v1536_v47 = vmul.f32 %v3342_v42, %v1531_v1  ;;  %v3115_v1 = vld [vmem:[#allocation19 + $0x18] sm:$0xff]  ;;  %2252 = vmatpush.bf16.msrb.mxu3 %v3122_v53 }
 0x7ed   : > { %2237 = vmatpush.bf16.msra.mxu2 %v3115_v1 }
 0x7ee   : > { %v1541_v49 = vadd.f32 %v3343_v46, %v1536_v47 }
 0x7ef   : > { %2276 = vmatpush.bf16.msrb.mxu1 %v3142_v54 }
 0x7f0   : > { %v1542_v50 = vpack.c.bf16 %v1541_v49, %v1540_v48  ;;  %v3129_v49 = vld [vmem:[#allocation19 + $0x88] sm:$0xff] }
 0x7f1   : > { %2267 = vmatpush.bf16.msra.mxu0 %v3129_v49 }
 0x7f2   : > { %1753 = vmatmul.bf16.vlgmr.msrb.gmra.mxu2 %v1542_v50  ;;  %1767 = vmatmul.bf16.vlgmr.msra.gmra.mxu3 %v1542_v50 }
 0x7f3   : > { %1781 = vmatmul.bf16.vlgmr.msrb.gmra.mxu0 %v1542_v50  ;;  %1795 = vmatmul.bf16.vlgmr.msra.gmra.mxu1 %v1542_v50 }
 0x7f4   : > { %2277 = vmatpush.bf16.msrb.mxu1 %v3141_v15 }
 0x7f8   : > { %2278 = vmatpush.bf16.msrb.mxu1 %v3140_v14 }
 0x7fc   : > { %2279 = vmatpush.bf16.msrb.mxu1 %v3139_v32 }
 0x800   : > { %2280 = vmatpush.bf16.msrb.mxu1 %v3138_v43 }
 0x804   : > { %2281 = vmatpush.bf16.msrb.mxu1 %v3137_v44 }
 0x870   : > { %v1782_v55 = vpop.f32.mrf.mxu0  ;;  %v1796_v56 = vpop.f32.mrf.mxu1 }
 0x871   : > { %v4288_v57 = vadd.f32 %v1782_v55, %v1579_v31  ;;  %v4290_v58 = vadd.f32 %v1796_v56, %v1580_v52 }
 0x873   : > { %v2892_v62 = vmul.f32 -1.702, %v4288_v57  ;;  %v2893_v63 = vmul.f32 -1.702, %v4290_v58 }
 0x875   : > { %v1821_v3 = vmul.f32 1.442695, %v2892_v62  ;;  %v1823_v4 = vmul.f32 1.442695, %v2893_v63  ;;  %v1754_v5 = vpop.f32.mrf.mxu2  ;;  %v1768_v6 = vpop.f32.mrf.mxu3  ;;  %v3136_v62 = vld [vmem:[#allocation19 + $0xc0] sm:$0xff] }
 0x876   : > { %v4296_v10 = vadd.f32 %v1754_v5, %v1577_v60  ;;  %v4300_v12 = vadd.f32 %v1768_v6, %v1578_v61  ;;  %v3113_v5 = vld [vmem:[#allocation19 + $0x8] sm:$0xff]  ;;  %2282 = vmatpush.bf16.msrb.mxu1 %v3136_v62 }
 0x877   : > { %3387 = vpow2.f32 %v1821_v3  ;;  %v3121_v6 = vld [vmem:[#allocation19 + $0x48] sm:$0xff] }
 0x878   : > { %3389 = vpow2.f32 %v1823_v4  ;;  %v2890_v16 = vmul.f32 -1.702, %v4296_v10  ;;  %v2891_v17 = vmul.f32 -1.702, %v4300_v12  ;;  %v1784_v20 = vpop.f32.mrf.mxu0  ;;  %v1798_v21 = vpop.f32.mrf.mxu1  ;;  %2253 = vmatpush.bf16.msrb.mxu3 %v3121_v6 }
 0x879   : > { %v4304_v22 = vadd.f32 %v1784_v20, %v1579_v31  ;;  %v4306_v23 = vadd.f32 %v1798_v21, %v1580_v52  ;;  %v3114_v52 = vld [vmem:[#allocation19 + $0x10] sm:$0xff] }
 0x87a   : > { %v1817_v26 = vmul.f32 1.442695, %v2890_v16  ;;  %v1819_v27 = vmul.f32 1.442695, %v2891_v17  ;;  %2238 = vmatpush.bf16.msra.mxu2 %v3114_v52  ;;  %v3112_v16 = vld [vmem:[#allocation19] sm:$0xff] }
 0x87b   : > { %v2896_v28 = vmul.f32 -1.702, %v4304_v22  ;;  %v2897_v29 = vmul.f32 -1.702, %v4306_v23  ;;  %v3120_v17 = vld [vmem:[#allocation19 + $0x40] sm:$0xff] }
 0x87c   : > { %3391 = vpow2.f32 %v1817_v26  ;;  %2254 = vmatpush.bf16.msrb.mxu3 %v3120_v17 }
 0x87d   : > { %v3388_v33 = vpop.eup %3387  ;;  %v1829_v34 = vmul.f32 1.442695, %v2896_v28  ;;  %v1756_v19 = vpop.f32.mrf.mxu2  ;;  %3393 = vpow2.f32 %v1819_v27  ;;  %v1831_v39 = vmul.f32 1.442695, %v2897_v29 }
 0x87e   : > { %v3390_v37 = vpop.eup %3389  ;;  %v4310_v8 = vadd.f32 1.0, %v3388_v33  ;;  %v4312_v40 = vadd.f32 %v1756_v19, %v1577_v60  ;;  %v1770_v51 = vpop.f32.mrf.mxu3  ;;  %v3128_v60 = vld [vmem:[#allocation19 + $0x80] sm:$0xff]  ;;  %2239 = vmatpush.bf16.msra.mxu2 %v3113_v5 }
 0x87f   : > { %v4314_v42 = vadd.f32 1.0, %v3390_v37  ;;  %3395 = vpow2.f32 %v1829_v34  ;;  %v4330_v59 = vadd.f32 %v1770_v51, %v1578_v61  ;;  %2268 = vmatpush.bf16.msra.mxu0 %v3128_v60 }
 0x880   : > { %3397 = vrcp.f32 %v4310_v8  ;;  %v2894_v47 = vmul.f32 -1.702, %v4312_v40  ;;  %v1880_v14 = vand.u32 2147483647, %v4310_v8  ;;  %v1882_v20 = vand.u32 2147483648, %v4310_v8 }
 0x881   : > { %3399 = vrcp.f32 %v4314_v42  ;;  %v2895_v41 = vmul.f32 -1.702, %v4330_v59  ;;  %v1895_v21 = vand.u32 2147483647, %v4314_v42  ;;  %v1897_v24 = vand.u32 2147483648, %v4314_v42 }
 0x882   : > { %v3392_v46 = vpop.eup %3391  ;;  %3401 = vpow2.f32 %v1831_v39  ;;  %v1825_v55 = vmul.f32 1.442695, %v2894_v47  ;;  %2240 = vmatpush.bf16.msra.mxu2 %v3112_v16  ;;  %vm1876_vm2 = vweird.f32 %v4310_v8  ;;  %vm4357_vm3 = vcmp.eq.f32.partialorder %v1880_v14, 8.507059e+37 }
 0x883   : > { %v4319_v48 = vadd.f32 1.0, %v3392_v46  ;;  %v3394_v50 = vpop.eup %3393  ;;  %v1827_v25 = vmul.f32 1.442695, %v2895_v41  ;;  %vm1891_vm4 = vweird.f32 %v4314_v42  ;;  %v1883_v33 = vor.u32 1.1754944e-38, %v1882_v20 }
 0x884   : > { %v4334_v3 = vadd.f32 1.0, %v3394_v50  ;;  %vm4362_vm5 = vcmp.eq.f32.partialorder %v1895_v21, 8.507059e+37  ;;  %v1898_v19 = vor.u32 1.1754944e-38, %v1897_v24 }
 0x885   : > { %v3396_v31 = vpop.eup %3395  ;;  %3403 = vrcp.f32 %v4319_v48  ;;  %v1852_v47 = vand.u32 2147483648, %v4319_v48  ;;  %v1850_v21 = vand.u32 2147483647, %v4319_v48 }
 0x886   : > { %v4321_v54 = vpop.eup %3397  ;;  %v4336_v4 = vadd.f32 1.0, %v3396_v31  ;;  %3405 = vpow2.f32 %v1825_v55 }
 0x887   : > { %v4323_v56 = vpop.eup %3399  ;;  %v1872_v11 = vmul.f32 %v4321_v54, %v4310_v8  ;;  %vm1877_vm1 = vweird.f32 %v4321_v54 }
 0x888   : > { %v3402_v63 = vpop.eup %3401  ;;  %v1887_v2 = vmul.f32 %v4323_v56, %v4314_v42  ;;  %3407 = vrcp.f32 %v4336_v4  ;;  %vm4369_vm6 = vmor %vm1876_vm2, %vm1877_vm1  ;;  %vm1892_vm7 = vweird.f32 %v4323_v56  ;;  %v1940_v8 = vand.u32 2147483647, %v4336_v4 }
 0x889   : > { %v1873_v15 = vsub.f32 1.0, %v1872_v11  ;;  %v4338_v7 = vadd.f32 1.0, %v3402_v63  ;;  %3409 = vrcp.f32 %v4334_v3  ;;  %vm1936_vm8 = vweird.f32 %v4336_v4  ;;  %vm4394_vm10 = vmor %vm1891_vm4, %vm1892_vm7 }
 0x88a   : > { %v1888_v9 = vsub.f32 1.0, %v1887_v2  ;;  %v1942_v49 = vand.u32 2147483648, %v4336_v4  ;;  %vm4399_vm12 = vcmp.eq.f32.partialorder %v1940_v8, 8.507059e+37  ;;  %vm1846_vm1 = vweird.f32 %v4319_v48 }
 0x88b   : > { %v1874_v61 = vmul.f32 %v4321_v54, %v1873_v15  ;;  %v4343_v13 = vpop.eup %3403  ;;  %3411 = vrcp.f32 %v4338_v7  ;;  %v1957_v42 = vand.u32 2147483648, %v4338_v7  ;;  %v1955_v15 = vand.u32 2147483647, %v4338_v7 }
 0x88c   : > { %v3406_v26 = vpop.eup %3405  ;;  %v1889_v28 = vmul.f32 %v4323_v56, %v1888_v9  ;;  %v1842_v29 = vmul.f32 %v4343_v13, %v4319_v48  ;;  %3413 = vpow2.f32 %v1827_v25  ;;  %vm1847_vm11 = vweird.f32 %v4343_v13 }
 0x88d   : > { %v1875_v27 = vadd.f32 %v4321_v54, %v1874_v61  ;;  %v4375_v39 = vadd.f32 1.0, %v3406_v26  ;;  %v1943_v63 = vor.u32 1.1754944e-38, %v1942_v49  ;;  %vm1951_vm15 = vweird.f32 %v4338_v7 }
 0x88e   : > { %v3408_v30 = vpop.eup %3407  ;;  %v1890_v1 = vadd.f32 %v4323_v56, %v1889_v28  ;;  %v1843_v45 = vsub.f32 1.0, %v1842_v29  ;;  %v1958_v20 = vor.u32 1.1754944e-38, %v1957_v42  ;;  %vm1956_vm2 = vcmp.eq.f32.partialorder %v1955_v15, 8.507059e+37 }
 0x88f   : > { %v1932_v35 = vmul.f32 %v3408_v30, %v4336_v4  ;;  %v4367_v36 = vpop.eup %3409  ;;  %v1879_v43 = vsel %vm4369_vm6, %v4321_v54, %v1875_v27  ;;  %vm1937_vm9 = vweird.f32 %v3408_v30  ;;  %3415 = vrcp.f32 %v4375_v39 }
 0x890   : > { %v1857_v51 = vmul.f32 %v4367_v36, %v4334_v3  ;;  %v1884_v31 = vsel %vm4357_vm3, %v1883_v33, %v1879_v43  ;;  %v1894_v55 = vsel %vm4394_vm10, %v4323_v56, %v1890_v1  ;;  %v1844_v11 = vmul.f32 %v4343_v13, %v1843_v45  ;;  %vm1938_vm13 = vmor %vm1936_vm8, %vm1937_vm9 }
 0x891   : > { %v3412_v0 = vpop.eup %3411  ;;  %v1933_v46 = vsub.f32 1.0, %v1932_v35  ;;  %v1963_v56 = vmul.f32 %v1884_v31, %v4288_v57  ;;  %v1899_v61 = vsel %vm4362_vm5, %v1898_v19, %v1894_v55  ;;  %vm4429_vm3 = vmor %vm1846_vm1, %vm1847_vm11  ;;  %v1853_v48 = vor.u32 1.1754944e-38, %v1852_v47 }
 0x892   : > { %v1947_v50 = vmul.f32 %v3412_v0, %v4338_v7  ;;  %v3414_v62 = vpop.eup %3413  ;;  %vm1952_vm14 = vweird.f32 %v3412_v0  ;;  %v1858_v5 = vsub.f32 1.0, %v1857_v51  ;;  %v1845_v16 = vadd.f32 %v4343_v13, %v1844_v11 }
 0x893   : > { %v1934_v44 = vmul.f32 %v3408_v30, %v1933_v46  ;;  %v4412_v41 = vadd.f32 1.0, %v3414_v62  ;;  %vm1953_vm0 = vmor %vm1951_vm15, %vm1952_vm14  ;;  %v1964_v27 = vmul.f32 %v1899_v61, %v4290_v58  ;;  %v1912_v32 = vand.u32 2147483648, %v4375_v39 }
 0x894   : > { %v1948_v54 = vsub.f32 1.0, %v1947_v50  ;;  %v1859_v24 = vmul.f32 %v4367_v36, %v1858_v5  ;;  %v1910_v58 = vand.u32 2147483647, %v4375_v39  ;;  %vm1851_vm5 = vcmp.eq.f32.partialorder %v1850_v21, 8.507059e+37 }
 0x895   : > { %v1935_v60 = vadd.f32 %v3408_v30, %v1934_v44  ;;  %v3416_v14 = vpop.eup %3415  ;;  %3417 = vrcp.f32 %v4412_v41  ;;  %vm1862_vm6 = vweird.f32 %v4367_v36  ;;  %vm1906_vm7 = vweird.f32 %v4375_v39 }
 0x896   : > { %v1949_v2 = vmul.f32 %v3412_v0, %v1948_v54  ;;  %v1902_v57 = vmul.f32 %v3416_v14, %v4375_v39  ;;  %vm1907_vm4 = vweird.f32 %v3416_v14  ;;  %v1860_v35 = vadd.f32 %v4367_v36, %v1859_v24 }
 0x897   : > { %v1939_v6 = vsel %vm1938_vm13, %v3408_v30, %v1935_v60  ;;  %v1849_v30 = vsel %vm4429_vm3, %v4343_v13, %v1845_v16  ;;  %vm1861_vm8 = vweird.f32 %v4334_v3  ;;  %v1867_v8 = vand.u32 2147483648, %v4334_v3  ;;  %vm1908_vm9 = vmor %vm1906_vm7, %vm1907_vm4 }
 0x898   : > { %v1944_v4 = vsel %vm4399_vm12, %v1943_v63, %v1939_v6  ;;  %v1950_v9 = vadd.f32 %v3412_v0, %v1949_v2  ;;  %v1903_v29 = vsub.f32 1.0, %v1902_v57  ;;  %vm4445_vm10 = vmor %vm1861_vm8, %vm1862_vm6  ;;  %v1865_v1 = vand.u32 2147483647, %v4334_v3 }
 0x899   : > { %v1967_v17 = vmul.f32 %v1944_v4, %v4304_v22  ;;  %vm1911_vm11 = vcmp.eq.f32.partialorder %v1910_v58, 8.507059e+37  ;;  %v1864_v47 = vsel %vm4445_vm10, %v4367_v36, %v1860_v35  ;;  %v1927_v50 = vand.u32 2147483648, %v4412_v41 }
 0x89a   : > { %v1954_v7 = vsel %vm1953_vm0, %v3412_v0, %v1950_v9  ;;  %v1904_v34 = vmul.f32 %v3416_v14, %v1903_v29  ;;  %v1913_v0 = vor.u32 1.1754944e-38, %v1912_v32  ;;  %v1925_v31 = vand.u32 2147483647, %v4412_v41 }
 0x89b   : > { %v1971_v25 = vpack.c.bf16 %v1967_v17, %v1963_v56  ;;  %v1959_v26 = vsel %vm1956_vm2, %v1958_v20, %v1954_v7  ;;  %v3418_v19 = vpop.eup %3417  ;;  %v1868_v52 = vor.u32 1.1754944e-38, %v1867_v8  ;;  %vm1866_vm13 = vcmp.eq.f32.partialorder %v1865_v1, 8.507059e+37 }
 0x89c   : > { %v1968_v28 = vmul.f32 %v1959_v26, %v4306_v23  ;;  %v1854_v23 = vsel %vm1851_vm5, %v1853_v48, %v1849_v30  ;;  %v1905_v37 = vadd.f32 %v3416_v14, %v1904_v34  ;;  %v1917_v13 = vmul.f32 %v3418_v19, %v4412_v41 }
 0x89d   : > { %2269 = vmatmul.bf16.vlgmr.msra.gmra.mxu0 %v1971_v25  ;;  %v1961_v39 = vmul.f32 %v1854_v23, %v4296_v10  ;;  %vm1922_vm12 = vweird.f32 %v3418_v19  ;;  %vm1921_vm14 = vweird.f32 %v4412_v41  ;;  %v1869_v53 = vsel %vm1866_vm13, %v1868_v52, %v1864_v47 }
 0x89e   : > { %v1972_v33 = vpack.c.bf16 %v1968_v28, %v1964_v27  ;;  %v1909_v45 = vsel %vm1908_vm9, %v3416_v14, %v1905_v37  ;;  %v1918_v46 = vsub.f32 1.0, %v1917_v13  ;;  %vm1923_vm15 = vmor %vm1921_vm14, %vm1922_vm12  ;;  %v1928_v36 = vor.u32 1.1754944e-38, %v1927_v50 }
 0x89f   : > { %v1914_v49 = vsel %vm1911_vm11, %v1913_v0, %v1909_v45  ;;  %vm1926_vm0 = vcmp.eq.f32.partialorder %v1925_v31, 8.507059e+37  ;;  %v1962_v55 = vmul.f32 %v1869_v53, %v4300_v12 }
 0x8a0   : > { %2283 = vmatmul.bf16.vlgmr.msrb.gmra.mxu1 %v1972_v33  ;;  %v1965_v51 = vmul.f32 %v1914_v49, %v4312_v40  ;;  %v1919_v44 = vmul.f32 %v3418_v19, %v1918_v46 }
 0x8a2   : > { %v1969_v3 = vpack.c.bf16 %v1965_v51, %v1961_v39  ;;  %v1920_v10 = vadd.f32 %v3418_v19, %v1919_v44 }
 0x8a4   : > { %v1924_v54 = vsel %vm1923_vm15, %v3418_v19, %v1920_v10  ;;  %2241 = vmatmul.bf16.vlgmr.msra.gmra.mxu2 %v1969_v3 }
 0x8a5   : > { %v1929_v40 = vsel %vm1926_vm0, %v1928_v36, %v1924_v54 }
 0x8a6   : > { %v1966_v11 = vmul.f32 %v1929_v40, %v4330_v59 }
 0x8a8   : > { %v1970_v60 = vpack.c.bf16 %v1966_v11, %v1962_v55 }
 0x8aa   : > { %2255 = vmatmul.bf16.vlgmr.msrb.gmra.mxu3 %v1970_v60 }
 0x8ab   : > { %3746 = shalt.err (!%p3743_p13)
}
 0x8ac   : > { %s3876_s1 = smov 128   ;;  %s3877_s11 = smov 8  }
 0x8ad   : > { %3190 = dma.vmem_to_hbm [thread:$0]  (%p4085_p5), %s2333_s29, 256, %s2335_s26, %s2299_s9, %s3876_s1, %s3876_s1, %s3877_s11  }
 0x8ae   : > { %s4599_s6 = sld [smem:[#allocation43_spill]]  ;;  %s673_s0 = scalar_lea.vmem [#allocation21], %s4110_s15 }
 0x8af   : > { %s4600_s26 = sld [smem:[#allocation44_spill]]  ;;  %s2313_s28 = sshll.u32 %s673_s0, 4  ;;  %s2314_s28 = int_to_ptr.vmem [resolvable:$true] %s2313_s28 }
 0x8b0   : > { %s2294_s15 = scalar_lea.sflag [#allocation6], %s4107_s7 }
 0x8b4   : > { %v3344_v12 = vld [vmem:[%s4599_s6] ss:$0 sm:$0xff] }
 0x8b5   : > { %s2312_s9 = scalar_lea.hbm %s4600_s26, %s3144_s16  ;;  %s3767_s2 = scalar_lea.hbm %s4600_s26, 32 }
 0x8b6   : > { %s2315_s14 = sshll.u32 %s2312_s9, 4  ;;  %s2316_s14 = int_to_ptr.hbm [resolvable:$true] %s2315_s14 }
 0x8b7   : > { %s3761_s3 = sshra.s32 %s2316_s14, 4  ;;  %s3762_s3 = int_to_ptr.hbm [resolvable:$true] %s3761_s3 }
 0x8b8   : > { %s3763_s24 = scalar_lea.hbm %s3762_s3, 16  ;;  %p3768_p8 = scmp.lt.s32.totalorder %s3762_s3, %s4600_s26 }
 0x8b9   : > { %p3764_p0 = scmp.ne.s32.totalorder %s3762_s3, %s3763_s24  ;;  %p3769_p1 = scmp.lt.s32.totalorder %s3767_s2, %s3763_s24 }
 0x8bb   : > { %p3765_p2 = pnand %p3764_p0, %p4085_p5  ;;  %p3770_p3 = por %p3769_p1, %p3768_p8 }
 0x8bd   : > { %p3766_p6 = pneg %p3765_p2 }
 0x8bf   : > { %p3771_p9 = pnand %p3770_p3, %p3766_p6 }
 0x91a   : > { %v2270_v62 = vpop.f32.mrf.mxu0 }
 0x91d   : > { %v2284_v15 = vpop.f32.mrf.mxu1 }
 0x922   : > { %v2272_v14 = vpop.f32.mrf.mxu0 }
 0x925   : > { %v2286_v17 = vpop.f32.mrf.mxu1 }
 0x927   : > { %v2242_v59 = vpop.f32.mrf.mxu2 }
 0x928   : > { %v2243_v42 = vadd.f32 %v3344_v12, %v2242_v59 }
 0x92d   : > { %v2256_v63 = vpop.f32.mrf.mxu3 }
 0x92e   : > { %v2257_v2 = vadd.f32 %v2256_v63, %v2243_v42 }
 0x92f   : > { %v2244_v5 = vpop.f32.mrf.mxu2 }
 0x930   : > { %v2271_v6 = vadd.f32 %v2270_v62, %v2257_v2  ;;  %v2245_v56 = vadd.f32 %v3344_v12, %v2244_v5 }
 0x932   : > { %v2285_v41 = vadd.f32 %v2284_v15, %v2271_v6 }
 0x934   : > { %v2289_v61 = vadd.f32 %v2285_v41, %v4255_v18 }
 0x935   : > { %v2258_v4 = vpop.f32.mrf.mxu3 }
 0x936   : > { %2291 = vst [vmem:[%s673_s0] sm:$0xff] %v2289_v61  ;;  %v2259_v9 = vadd.f32 %v2258_v4, %v2245_v56 }
 0x938   : > { %v2273_v16 = vadd.f32 %v2272_v14, %v2259_v9 }
 0x93a   : > { %v2287_v20 = vadd.f32 %v2286_v17, %v2273_v16 }
 0x93c   : > { %v2290_v7 = vadd.f32 %v2287_v20, %v4259_v38 }
 0x93e   : > { %2292 = vst [vmem:[%s673_s0 + $0x8] sm:$0xff] %v2290_v7 }
 0x93f   : > { %3774 = shalt.err (!%p3771_p9)
}
 0x940   : > { %3189 = dma.vmem_to_hbm [thread:$0]  (%p4085_p5), %s2314_s28, 256, %s2316_s14, %s2294_s15, %s3876_s1, %s3876_s1, %s3877_s11  }
 0x941 PF: > { %s2349_s7 = sand.u32 1, %s3833_s18   ;;  %p3226_p10 = pnand %p2557_p4, %p4093_p7 }
 0x942   : > { %s2350_s0 = scalar_lea.sflag [#allocation6], %s2349_s7 }
 0x943   : > { %p3227_p11 = pneg %p3226_p10 }
 0x945   : > { %3824 = dma.done.wait (%p3227_p11), %s2350_s0, 256  }
 0x946   : > { %3826 = vsyncadd (%p3227_p11), %s2350_s0, 4294967040  ;;  %s2360_s5 = scalar_lea.sflag [#allocation23], %s2349_s7 }
 0x947   : > { %3828 = dma.done.wait (%p3227_p11), %s2360_s5, 256  }
 0x948   : > { %3830 = vsyncadd (%p3227_p11), %s2360_s5, 4294967040  ;;  %s40_s23 = sadd.s32 1, %s3853_s23   ;;  %s4601_s30 = smov %s4608_s21 }
 0x949   : > { %p37_p12 = scmp.ge.s32.totalorder %s40_s23, 4   ;;  %s4602_s18 = smov %s3837_s19 }
 0x94a   : > { %s4603_s19 = smov %s3841_s20  ;;  %s4604_s20 = smov %s4091_s13 }
 0x94b   : > { %s4605_s21 = smov %s3849_s22  ;;  %s4606_s22 = smov %s4601_s30 }
 0x94c   :  { %39 = sbr.rel (!%p37_p12) target bundleno = 27 (0x1b), region = 180 }
 0x951   :  { %2366 = vsyncpa [#allocation5], 1 }
 0x952   :  { %2368 = vsyncpa [#allocation5 + $0x1], 1 }
 0x953   :  { %2369 = vsyncpa [#allocation8], 1 }
 0x954   :  { %2370 = vsyncpa [#allocation11], 1 }
 0x955   :  { %2371 = vsyncpa [#allocation14], 1 }
 0x956   :  { %2372 = vsyncpa [#allocation17], 1 }
 0x957   :  { %2373 = vsyncpa [#allocation20], 1 }
 0x958   :  { %2374 = vsyncpa [#allocation6], 1 }
 0x959   :  { %2376 = vsyncpa [#allocation6 + $0x1], 1 }
 0x95a   :  { %2377 = vsyncpa [#allocation23], 1 }
 0x95b   :  { %2379 = vsyncpa [#allocation23 + $0x1], 1 }

// kernel: tpu_custom_call.1
= control target key start
LH: loop header
LB: loop body
LE: loop exit
PB: predicated region body
PF: predicated region fallthrough
CT: control target
= control target key end

     0   :  { %s4529_s0 = inlined_call_operand.hbm [shape: f32[2,16,128], index: 0, kind: input, shape index: {}]   ;;  %s4530_s1 = inlined_call_operand.hbm [shape: f32[1,16], index: 1, kind: input, shape index: {}]   ;;  %s4531_s2 = inlined_call_operand.hbm [shape: f32[1,128], index: 2, kind: input, shape index: {}]   ;;  %s4532_s3 = inlined_call_operand.hbm [shape: f32[1,128], index: 3, kind: input, shape index: {}]   ;;  %s4533_s4 = inlined_call_operand.hbm [shape: bf16[128,384], index: 4, kind: input, shape index: {}]   ;;  %s4534_s5 = inlined_call_operand.vmem [shape: f32[1,384], index: 5, kind: input, shape index: {}]   ;;  %s4535_s6 = inlined_call_operand.hbm [shape: bf16[128,128], index: 6, kind: input, shape index: {}]   ;;  %s4536_s7 = inlined_call_operand.hbm [shape: f32[1,128], index: 7, kind: input, shape index: {}]   ;;  %s4537_s8 = inlined_call_operand.hbm [shape: f32[1,128], index: 8, kind: input, shape index: {}]   ;;  %s4538_s9 = inlined_call_operand.vmem [shape: f32[1,128], index: 9, kind: input, shape index: {}]   ;;  %s4539_s10 = inlined_call_operand.hbm [shape: bf16[128,512], index: 10, kind: input, shape index: {}]   ;;  %s4540_s11 = inlined_call_operand.vmem [shape: f32[1,512], index: 11, kind: input, shape index: {}]   ;;  %s4541_s12 = inlined_call_operand.hbm [shape: bf16[512,128], index: 12, kind: input, shape index: {}]   ;;  %s4542_s13 = inlined_call_operand.vmem [shape: f32[1,128], index: 13, kind: input, shape index: {}]   ;;  %s4543_s14 = inlined_call_operand.hbm [shape: f32[2,16,128], index: 14, kind: output, shape index: {0}]   ;;  %s4544_s15 = inlined_call_operand.hbm [shape: f32[2,16,16], index: 15, kind: output, shape index: {1}]  }
   0x1   :  { %4550 = sst [smem:[#allocation33_spill]] %s4529_s0 }
   0x2   :  { %4551 = sst [smem:[#allocation34_spill]] %s4530_s1 }
   0x3   :  { %4552 = sst [smem:[#allocation35_spill]] %s4531_s2 }
   0x4   :  { %4553 = sst [smem:[#allocation36_spill]] %s4532_s3 }
   0x5   :  { %4554 = sst [smem:[#allocation37_spill]] %s4533_s4 }
   0x6   :  { %4555 = sst [smem:[#allocation38_spill]] %s4534_s5 }
   0x7   :  { %4556 = sst [smem:[#allocation39_spill]] %s4535_s6 }
   0x8   :  { %4557 = sst [smem:[#allocation40_spill]] %s4536_s7 }
   0x9   :  { %4558 = sst [smem:[#allocation41_spill]] %s4538_s9 }
   0xa   :  { %4559 = sst [smem:[#allocation42_spill]] %s4540_s11 }
   0xb   :  { %4560 = sst [smem:[#allocation43_spill]] %s4542_s13 }
   0xc   :  { %4561 = sst [smem:[#allocation44_spill]] %s4543_s14 }
   0xd   :  { %4562 = sst [smem:[#allocation45_spill]] %s4544_s15 }
   0xe   :  { %21 = vsyncpa [#allocation5], 0 }
   0xf   :  { %23 = vsyncpa [#allocation5 + $0x1], 0 }
  0x10   :  { %24 = vsyncpa [#allocation8], 0 }
  0x11   :  { %25 = vsyncpa [#allocation11], 0 }
  0x12   :  { %26 = vsyncpa [#allocation14], 0 }
  0x13   :  { %27 = vsyncpa [#allocation17], 0 }
  0x14   :  { %28 = vsyncpa [#allocation20], 0 }
  0x15   :  { %29 = vsyncpa [#allocation6], 0 }
  0x16   :  { %31 = vsyncpa [#allocation6 + $0x1], 0 }
  0x17   :  { %32 = vsyncpa [#allocation23], 0 }
  0x18   :  { %34 = vsyncpa [#allocation23 + $0x1], 0  ;;  %s3958_s18 = smov 0   ;;  %s3960_s19 = smov 0  }
  0x19   :  { %s3962_s20 = smov 0   ;;  %s3964_s21 = smov 0  }
  0x1a   :  { %s3966_s22 = smov 0   ;;  %s3968_s23 = smov 0  }
  0x1b LB: > { %4563 = sst [smem:[#allocation32_spill]] %s3845_s21  ;;  %s4545_s24 = sadd.s32 4294967295, %s3853_s23   ;;  %s3853_s23 = sphi %s3968_s23, %s40_s23   ;;  %s3849_s22 = sphi %s3966_s22, %s4606_s22   ;;  %s3845_s21 = sphi %s3964_s21, %s4605_s21   ;;  %s3841_s20 = sphi %s3962_s20, %s4604_s20   ;;  %s3837_s19 = sphi %s3960_s19, %s4603_s19   ;;  %s3833_s18 = sphi %s3958_s18, %s4602_s18  }
  0x1c   : > { %p2547_p0 = scmp.ge.s32.totalorder %s3853_s23, 1  ;;  %p3992_p1 = scmp.eq.s32.totalorder %s4545_s24, 0 }
  0x1d   : > { %p412_p2 = scmp.lt.s32.totalorder %s3853_s23, 3  ;;  %s4565_s1 = sld [smem:[#allocation34_spill]] }
  0x1e   : > { %p2557_p4 = scmp.ge.s32.totalorder %s3853_s23, 2  ;;  %s3855_s30 = smov [#allocation7]  }
  0x1f   : > { %p4000_p3 = pnand %p2547_p0, %p412_p2  ;;  %s426_s16 = sshll.u32 %s3855_s30, 4  ;;  %s427_s16 = int_to_ptr.vmem [resolvable:$true] %s426_s16 }
  0x20   : > { %s4567_s3 = sld [smem:[#allocation36_spill]]  ;;  %s3856_s15 = smov [#allocation10]  }
  0x21   : > { %p3193_p5 = pneg %p4000_p3  ;;  %s4569_s6 = sld [smem:[#allocation39_spill]] }
  0x22   : > { %s450_s30 = sshll.u32 %s3856_s15, 4  ;;  %s3857_s24 = smov [#allocation13]   ;;  %s451_s30 = int_to_ptr.vmem [resolvable:$true] %s450_s30 }
  0x23   : > { %s424_s28 = sshll.u32 %s4565_s1, 4  ;;  %p4012_p6 = pnand %p3193_p5, %p3992_p1  ;;  %s425_s28 = int_to_ptr.hbm [resolvable:$true] %s424_s28 }
  0x24   : > { %s478_s17 = sshll.u32 %s3857_s24, 4  ;;  %s503_s11 = sshll.u32 %s4537_s8, 4  ;;  %s479_s17 = int_to_ptr.vmem [resolvable:$true] %s478_s17  ;;  %s504_s11 = int_to_ptr.hbm [resolvable:$true] %s503_s11 }
  0x25   : > { %3196 = dma.hbm_to_vmem [thread:$0]  (!%p4012_p6), %s425_s28, 16, %s427_s16, [#allocation8]  }
  0x26   : > { %s448_s14 = sshll.u32 %s4567_s3, 4  ;;  %s4549_s9 = smov 64   ;;  %s449_s14 = int_to_ptr.hbm [resolvable:$true] %s448_s14 }
  0x27   : > { %s476_s13 = sshll.u32 %s4569_s6, 4  ;;  %s3859_s1 = smov 4   ;;  %s477_s13 = int_to_ptr.hbm [resolvable:$true] %s476_s13 }
  0x28   : > { %3202 = dma.hbm_to_vmem [thread:$0]  (!%p4012_p6), %s449_s14, 16, %s451_s30, [#allocation11]  }
  0x29   : > { %3208 = dma.hbm_to_vmem [thread:$0]  (!%p4012_p6), %s477_s13, 1024, %s479_s17, [#allocation14], %s4549_s9, %s4549_s9, %s3859_s1  }
  0x2a   : > { %s3860_s15 = smov [#allocation16]   ;;  %s4570_s2 = sld [smem:[#allocation35_spill]] }
  0x2b   : > { %s505_s28 = sshll.u32 %s3860_s15, 4  ;;  %s4571_s4 = sld [smem:[#allocation37_spill]]  ;;  %s506_s28 = int_to_ptr.vmem [resolvable:$true] %s505_s28 }
  0x2c   : > { %3214 = dma.hbm_to_vmem [thread:$0]  (!%p4012_p6), %s504_s11, 16, %s506_s28, [#allocation17]  }
  0x2d   : > { %s3861_s24 = smov [#allocation9]   ;;  %s3862_s13 = smov [#allocation12]  }
  0x2e   : > { %s438_s6 = sshll.u32 %s3861_s24, 4  ;;  %s461_s17 = sshll.u32 %s3862_s13, 4  ;;  %s439_s6 = int_to_ptr.vmem [resolvable:$true] %s438_s6  ;;  %s462_s17 = int_to_ptr.vmem [resolvable:$true] %s461_s17 }
  0x2f   : > { %s3863_s15 = smov 192   ;;  %s3864_s16 = smov 12  }
  0x30   : > { %s436_s27 = sshll.u32 %s4570_s2, 4  ;;  %s4572_s7 = sld [smem:[#allocation40_spill]]  ;;  %s437_s27 = int_to_ptr.hbm [resolvable:$true] %s436_s27 }
  0x31   : > { %s459_s30 = sshll.u32 %s4571_s4, 4  ;;  %s3865_s3 = smov [#allocation15]   ;;  %s460_s30 = int_to_ptr.hbm [resolvable:$true] %s459_s30 }
  0x32   : > { %3199 = dma.hbm_to_vmem [thread:$0]  (!%p4012_p6), %s437_s27, 16, %s439_s6, [#allocation8]  }
  0x33   : > { %3205 = dma.hbm_to_vmem [thread:$0]  (!%p4012_p6), %s460_s30, 3072, %s462_s17, [#allocation11], %s3863_s15, %s3863_s15, %s3864_s16  }
  0x34   : > { %s493_s21 = sshll.u32 %s3865_s3, 4  ;;  %s517_s6 = sshll.u32 %s4539_s10, 4  ;;  %s494_s21 = int_to_ptr.vmem [resolvable:$true] %s493_s21  ;;  %s518_s6 = int_to_ptr.hbm [resolvable:$true] %s517_s6 }
  0x35   : > { %s3866_s27 = smov [#allocation18]   ;;  %s3867_s13 = smov 256  }
  0x36   : > { %s491_s14 = sshll.u32 %s4572_s7, 4  ;;  %s519_s30 = sshll.u32 %s3866_s27, 4  ;;  %s492_s14 = int_to_ptr.hbm [resolvable:$true] %s491_s14  ;;  %s520_s30 = int_to_ptr.vmem [resolvable:$true] %s519_s30 }
  0x37   : > { %3211 = dma.hbm_to_vmem [thread:$0]  (!%p4012_p6), %s492_s14, 16, %s494_s21, [#allocation14]  }
  0x38   : > { %s3868_s17 = smov 16   ;;  %s534_s16 = sshll.u32 %s4541_s12, 4  ;;  %s535_s16 = int_to_ptr.hbm [resolvable:$true] %s534_s16 }
  0x39   : > { %3217 = dma.hbm_to_vmem [thread:$0]  (!%p4012_p6), %s518_s6, 4096, %s520_s30, [#allocation17], %s3867_s13, %s3867_s13, %s3868_s17  }
  0x3a   : > { %s3869_s11 = smov [#allocation19]   ;;  %s4573_s14 = smov 64  }
  0x3b   : > { %s536_s28 = sshll.u32 %s3869_s11, 4  ;;  %s2546_s3 = sadd.s32 4294967294, %s3853_s23   ;;  %s537_s28 = int_to_ptr.vmem [resolvable:$true] %s536_s28 }
  0x3c   : > { %3220 = dma.hbm_to_vmem [thread:$0]  (!%p4012_p6), %s535_s16, 4096, %s537_s28, [#allocation20], %s4573_s14, %s4573_s14, %s3859_s1  }
  0x3d   : > { %s52_s21 = sadd.s32 1, %s3849_s22  ;;  %s59_s24 = sadd.s32 1, %s3841_s20 }
  0x3e   : > { %p54_p7 = scmp.ge.s32.totalorder %s52_s21, 2  ;;  %p66_p8 = scmp.ne.s32.totalorder %s3841_s20, %s3837_s19 }
  0x3f   : > { %p67_p9 = scmp.eq.s32.totalorder %s3853_s23, 0  ;;  %p72_p10 = scmp.ne.s32.totalorder %s3837_s19, %s3833_s18 }
  0x40   : > { %s4608_s21 = smov (%p54_p7, %s52_s21), 0  ;;  %s4576_s27 = sadd.s32 4294967295, %s3853_s23  }
  0x41   : > { %p4071_p11 = por %p67_p9, %p66_p8  ;;  %p4077_p12 = por %p3992_p1, %p72_p10 }
  0x42   : > { %s56_s6 = ssub.s32 %s3849_s22, %s4608_s21  ;;  %p371_p13 = scmp.eq.s32.totalorder %s4576_s27, 1 }
  0x43   : > { %p57_p0 = scmp.eq.s32.totalorder %s56_s6, 0  ;;  %p377_p2 = scmp.eq.s32.totalorder %s2546_s3, 1 }
  0x44   : > { %p4085_p5 = por %p371_p13, %p66_p8  ;;  %p3241_p6 = scmp.lt.s32.totalorder %s3853_s23, 2 }
  0x45   : > { %s4091_s13 = scalar_select %p57_p0, %s3841_s20, %s59_s24  }
  0x46   : > { %p4093_p7 = por %p377_p2, %p72_p10  ;;  %s553_s9 = sand.u32 1, %s3841_s20  }
  0x47   : > { %s2558_s15 = sshll.u32 %s553_s9, 4  ;;  %s3034_s16 = sshll.u32 %s3849_s22, 4 }
  0x48   : > { %s4579_s0 = sld [smem:[#allocation33_spill]]  ;;  %s557_s6 = scalar_lea.vmem [#allocation4], %s2558_s15 }
  0x49   : > { %s565_s3 = sshll.u32 %s557_s6, 4  ;;  %p3222_p8 = pnand %p3241_p6, %p4071_p11  ;;  %s566_s3 = int_to_ptr.vmem [resolvable:$true] %s565_s3 }
  0x4a   : > { %s554_s24 = scalar_lea.sflag [#allocation5], %s553_s9  ;;  %s3870_s2 = smov 128  }
  0x4b   : > { %s3871_s4 = smov 8   ;;  %s4107_s7 = sand.u32 (!%p4000_p3), 1, %s3837_s19  }
  0x4c   : > { %577 = sbr.rel (%p4000_p3) target bundleno = 2369 (0x941), region = 76  ;;  %s4110_s15 = sshll.u32 (!%p4000_p3), %s4107_s7, 4 }
  0x4d   : > { %s583_s11 = scalar_lea.vmem (!%p4000_p3), [#allocation4], %s4110_s15 }
  0x4e   : > { %s562_s14 = scalar_lea.hbm %s4579_s0, %s3034_s16  ;;  %s580_s16 = scalar_lea.sflag (!%p4000_p3), [#allocation5], %s4107_s7 }
  0x4f   : > { %s563_s27 = sshll.u32 %s562_s14, 4  ;;  %s564_s27 = int_to_ptr.hbm [resolvable:$true] %s563_s27 }
  0x50   : > { %3224 = dma.hbm_to_vmem [thread:$0]  (!%p3222_p8), %s564_s27, 256, %s566_s3, %s554_s24, %s3870_s2, %s3870_s2, %s3871_s4  }
  0x51   : > { %3800 = dma.done.wait (%p4077_p12), %s580_s16, 256  }
  0x52   : > { %3802 = vsyncadd (%p4077_p12), %s580_s16, 4294967040 }
  0x53   : > { %3804 = dma.done.wait (%p3992_p1), [#allocation8], 32  }
  0x54   : > { %3806 = vsyncadd (%p3992_p1), [#allocation8], 4294967264 }
  0x55   : > { %3808 = dma.done.wait (%p3992_p1), [#allocation11], 3088  }
  0x56   : > { %3810 = vsyncadd (%p3992_p1), [#allocation11], 4294964208 }
  0x57   : > { %3812 = dma.done.wait (%p3992_p1), [#allocation14], 1040  }
  0x58   : > { %3814 = vsyncadd (%p3992_p1), [#allocation14], 4294966256 }
  0x59   : > { %3816 = dma.done.wait (%p3992_p1), [#allocation17], 4112  }
  0x5a   : > { %3818 = vsyncadd (%p3992_p1), [#allocation17], 4294963184 }
  0x5b   : > { %3820 = dma.done.wait (%p3992_p1), [#allocation20], 4096  }
  0x5c   : > { %3822 = vsyncadd (%p3992_p1), [#allocation20], 4294963200  ;;  %v4138_v0 = vld [vmem:[%s583_s11] sm:$0xff]  ;;  %v4141_v1 = vld [vmem:[%s583_s11 + $0x8] sm:$0xff]  ;;  %v3872_v2 = vmov 128.0   ;;  %s4580_s5 = sld [smem:[#allocation38_spill]] }
  0x5d   : > { %693 = vadd.xlane.f32.xlu0 %v4138_v0  ;;  %3345 = vrcp.f32 %v3872_v2  ;;  %v2660_v17 = vld [vmem:[#allocation12 + $0xa8] sm:$0xf]  ;;  %v3057_v18 = vld [vmem:[#allocation12 + $0xb0] sm:$0xf0]  ;;  %v3056_v19 = vld [vmem:[#allocation12 + $0xac] sm:$0xf] }
  0x5e   : > { %v2661_v20 = vor.u32 %v3057_v18, %v2660_v17  ;;  %v2662_v21 = vld [vmem:[#allocation12 + $0xb4] sm:$0xf0]  ;;  %v2668_v22 = vld [vmem:[#allocation12 + $0xb0] sm:$0xf]  ;;  %v3058_v23 = vld [vmem:[#allocation12 + $0xb8] sm:$0xf0] }
  0x5f   : > { %v2665_v24 = vor.u32 %v3056_v19, %v2662_v21  ;;  %v2669_v25 = vor.u32 %v3058_v23, %v2668_v22  ;;  %v2648_v26 = vld [vmem:[#allocation12 + $0x90] sm:$0xf]  ;;  %v3054_v27 = vld [vmem:[#allocation12 + $0x98] sm:$0xf0]  ;;  %v3053_v28 = vld [vmem:[#allocation12 + $0x94] sm:$0xf] }
  0x60   : > { %919 = vmatpush.bf16.msra.mxu0 %v2661_v20  ;;  %v2649_v29 = vor.u32 %v3054_v27, %v2648_v26  ;;  %v2650_v30 = vld [vmem:[#allocation12 + $0x9c] sm:$0xf0]  ;;  %v2656_v31 = vld [vmem:[#allocation12 + $0x98] sm:$0xf]  ;;  %v3055_v32 = vld [vmem:[#allocation12 + $0xa0] sm:$0xf0] }
  0x61   : > { %933 = vmatpush.bf16.msra.mxu1 %v2665_v24  ;;  %947 = vmatpush.bf16.msra.mxu2 %v2669_v25  ;;  %v2653_v33 = vor.u32 %v3053_v28, %v2650_v30  ;;  %v2657_v34 = vor.u32 %v3055_v32, %v2656_v31  ;;  %v2636_v35 = vld [vmem:[#allocation12 + $0x78] sm:$0xf]  ;;  %v3051_v36 = vld [vmem:[#allocation12 + $0x80] sm:$0xf0]  ;;  %v3050_v37 = vld [vmem:[#allocation12 + $0x7c] sm:$0xf] }
  0x62   : > { %v2637_v38 = vor.u32 %v3051_v36, %v2636_v35  ;;  %v2638_v39 = vld [vmem:[#allocation12 + $0x84] sm:$0xf0]  ;;  %v2644_v40 = vld [vmem:[#allocation12 + $0x80] sm:$0xf]  ;;  %v3052_v41 = vld [vmem:[#allocation12 + $0x88] sm:$0xf0] }
  0x63   : > { %v3346_v3 = vpop.eup %3345  ;;  %v2641_v42 = vor.u32 %v3050_v37, %v2638_v39  ;;  %v2645_v43 = vor.u32 %v3052_v41, %v2644_v40  ;;  %v2624_v44 = vld [vmem:[#allocation12 + $0x60] sm:$0xf]  ;;  %v3048_v45 = vld [vmem:[#allocation12 + $0x68] sm:$0xf0]  ;;  %v3047_v46 = vld [vmem:[#allocation12 + $0x64] sm:$0xf] }
  0x64   : > { %v698_v4 = vmul.f32 128.0, %v3346_v3  ;;  %vm702_vm0 = vweird.f32 %v3346_v3  ;;  %920 = vmatpush.bf16.msra.mxu0 %v2649_v29  ;;  %v2625_v47 = vor.u32 %v3048_v45, %v2624_v44  ;;  %v2626_v48 = vld [vmem:[#allocation12 + $0x6c] sm:$0xf0]  ;;  %v2632_v49 = vld [vmem:[#allocation12 + $0x68] sm:$0xf]  ;;  %vm994_vm7 = vcmask 261120  }
  0x65   : > { %695 = vadd.xlane.f32.xlu0 %v4141_v1  ;;  %934 = vmatpush.bf16.msra.mxu1 %v2653_v33  ;;  %v3049_v50 = vld [vmem:[#allocation12 + $0x70] sm:$0xf0]  ;;  %v2629_v51 = vor.u32 %v3047_v46, %v2626_v48  ;;  %v2612_v53 = vld [vmem:[#allocation12 + $0x48] sm:$0xf]  ;;  %v3044_v55 = vld [vmem:[#allocation12 + $0x4c] sm:$0xf] }
  0x66   : > { %v699_v5 = vsub.f32 1.0, %v698_v4  ;;  %948 = vmatpush.bf16.msra.mxu2 %v2657_v34  ;;  %v2633_v52 = vor.u32 %v3049_v50, %v2632_v49  ;;  %v3045_v54 = vld [vmem:[#allocation12 + $0x50] sm:$0xf0]  ;;  %v2614_v57 = vld [vmem:[#allocation12 + $0x54] sm:$0xf0]  ;;  %s3873_s25 = smov 96  }
  0x67   : > { %v2613_v56 = vor.u32 %v3045_v54, %v2612_v53  ;;  %v2620_v58 = vld [vmem:[#allocation12 + $0x50] sm:$0xf]  ;;  %v3046_v59 = vld [vmem:[#allocation12 + $0x58] sm:$0xf0]  ;;  %v2617_v60 = vor.u32 %v3044_v55, %v2614_v57  ;;  %v3041_v2 = vld [vmem:[#allocation12 + $0x34] sm:$0xf] }
  0x68   : > { %v700_v6 = vmul.f32 %v3346_v3, %v699_v5  ;;  %921 = vmatpush.bf16.msra.mxu0 %v2637_v38  ;;  %v2621_v61 = vor.u32 %v3046_v59, %v2620_v58  ;;  %v2600_v62 = vld [vmem:[#allocation12 + $0x30] sm:$0xf]  ;;  %v3042_v63 = vld [vmem:[#allocation12 + $0x38] sm:$0xf0]  ;;  %v2602_v4 = vld [vmem:[#allocation12 + $0x3c] sm:$0xf0] }
  0x69   : > { %935 = vmatpush.bf16.msra.mxu1 %v2641_v42  ;;  %v2608_v5 = vld [vmem:[#allocation12 + $0x38] sm:$0xf]  ;;  %v2596_v17 = vld [vmem:[#allocation12 + $0x20] sm:$0xf]  ;;  %v3040_v18 = vld [vmem:[#allocation12 + $0x28] sm:$0xf0] }
  0x6a   : > { %v701_v7 = vadd.f32 %v3346_v3, %v700_v6  ;;  %949 = vmatpush.bf16.msra.mxu2 %v2645_v43  ;;  %v3043_v6 = vld [vmem:[#allocation12 + $0x40] sm:$0xf0]  ;;  %v2597_v20 = vor.u32 %v3040_v18, %v2596_v17  ;;  %v2576_v21 = vld [vmem:[#allocation12] sm:$0xf]  ;;  %v3036_v22 = vld [vmem:[#allocation12 + $0x8] sm:$0xf0] }
  0x6b   : > { %v3035_v23 = vld [vmem:[#allocation12 + $0x4] sm:$0xf]  ;;  %v2577_v25 = vor.u32 %v3036_v22, %v2576_v21  ;;  %v2578_v26 = vld [vmem:[#allocation12 + $0xc] sm:$0xf0]  ;;  %v2584_v27 = vld [vmem:[#allocation12 + $0x8] sm:$0xf] }
  0x6c   : > { %v4144_v8 = vsel %vm702_vm0, %v3346_v3, %v701_v7  ;;  %922 = vmatpush.bf16.msra.mxu0 %v2625_v47  ;;  %v2601_v3 = vor.u32 %v3042_v63, %v2600_v62  ;;  %v2605_v7 = vor.u32 %v3041_v2, %v2602_v4  ;;  %v3037_v28 = vld [vmem:[#allocation12 + $0x10] sm:$0xf0]  ;;  %v2581_v30 = vor.u32 %v3035_v23, %v2578_v26  ;;  %v3338_v49 = vld [vmem:[#allocation9] ss:$0 sm:$0xff]  ;;  %v3339_v54 = vld [vmem:[#allocation10] ss:$0 sm:$0xff] }
  0x6d   : > { %936 = vmatpush.bf16.msra.mxu1 %v2629_v51  ;;  %v2585_v31 = vor.u32 %v3037_v28, %v2584_v27  ;;  %vm1015_vm8 = vcmask 130048   ;;  %s3874_s29 = smov 32   ;;  %s3875_s26 = smov 64   ;;  %vm1372_vm9 = vcmask 523264   ;;  %vm1375_vm10 = vcmask 785408  }
  0x6e   : > { %950 = vmatpush.bf16.msra.mxu2 %v2633_v52  ;;  %s4183_s1 = scalar_lea.vmem [#allocation22], %s4110_s15  ;;  %s4581_s14 = sld [smem:[#allocation41_spill]] }
  0x6f   : > { %s4582_s27 = sld [smem:[#allocation42_spill]]  ;;  %s2299_s9 = scalar_lea.sflag [#allocation23], %s4107_s7 }
  0x70   : > { %923 = vmatpush.bf16.msra.mxu0 %v2613_v56  ;;  %s4597_s24 = sld [smem:[#allocation32_spill]] }
  0x71   : > { %937 = vmatpush.bf16.msra.mxu1 %v2617_v60  ;;  %s4598_s4 = sld [smem:[#allocation45_spill]] }
  0x72   : > { %951 = vmatpush.bf16.msra.mxu2 %v2621_v61 }
  0x74   : > { %924 = vmatpush.bf16.msra.mxu0 %v2601_v3 }
  0x75   : > { %938 = vmatpush.bf16.msra.mxu1 %v2605_v7 }
  0x76   : > { %s3144_s16 = sshll.u32 %s4597_s24, 4 }
  0xd0   : > { %v694_v9 = vpop.xlane.xlu0 %693 }
  0xd1   : > { %v704_v10 = vmul.f32 %v4144_v8, %v694_v9  ;;  %v2609_v9 = vor.u32 %v3043_v6, %v2608_v5 }
  0xd3   : > { %v4148_v11 = vsub.f32 %v4138_v0, %v704_v10  ;;  %952 = vmatpush.bf16.msra.mxu2 %v2609_v9  ;;  %v2588_v10 = vld [vmem:[#allocation12 + $0x18] sm:$0xf] }
  0xd5   : > { %v708_v12 = vmul.f32 %v4148_v11, %v4148_v11 }
  0xd7   : > { %710 = vadd.xlane.f32.xlu1 %v708_v12  ;;  %v3039_v12 = vld [vmem:[#allocation12 + $0x20] sm:$0xf0]  ;;  %953 = vmatpush.bf16.msra.mxu2 %v2597_v20 }
  0xd8   : > { %v696_v13 = vpop.xlane.xlu0 %695 }
  0xd9   : > { %v705_v14 = vmul.f32 %v4144_v8, %v696_v13  ;;  %v3038_v13 = vld [vmem:[#allocation12 + $0x1c] sm:$0xf] }
  0xdb   : > { %v4154_v15 = vsub.f32 %v4141_v1, %v705_v14  ;;  %v2589_v14 = vor.u32 %v3039_v12, %v2588_v10  ;;  %954 = vmatpush.bf16.msra.mxu2 %v2585_v31  ;;  %v4168_v31 = vld [vmem:[#allocation7] ss:$0 sm:$0xff] }
  0xdd   : > { %v709_v16 = vmul.f32 %v4154_v15, %v4154_v15  ;;  %925 = vmatpush.bf16.msra.mxu0 %v2589_v14 }
  0xdf   : > { %712 = vadd.xlane.f32.xlu1 %v709_v16  ;;  %v2590_v16 = vld [vmem:[#allocation12 + $0x24] sm:$0xf0] }
  0xe0   : > { %v2593_v19 = vor.u32 %v3038_v13, %v2590_v16 }
  0xe1   : > { %926 = vmatpush.bf16.msra.mxu0 %v2577_v25 }
  0xe2   : > { %939 = vmatpush.bf16.msra.mxu1 %v2593_v19 }
  0xe6   : > { %940 = vmatpush.bf16.msra.mxu1 %v2581_v30 }
 0x14a   : > { %v711_v24 = vpop.xlane.xlu1 %710 }
 0x14b   : > { %v714_v29 = vmul.f32 %v711_v24, %v4144_v8 }
 0x14d   : > { %v716_v32 = vadd.f32 1e-05, %v714_v29 }
 0x14f   : > { %3347 = vrsqrt.f32 %v716_v32  ;;  %vm724_vm2 = vweird.f32 %v716_v32 }
 0x152   : > { %v713_v33 = vpop.xlane.xlu1 %712 }
 0x153   : > { %v715_v34 = vmul.f32 %v713_v33, %v4144_v8 }
 0x155   : > { %v3348_v35 = vpop.eup %3347  ;;  %v717_v36 = vadd.f32 1e-05, %v715_v34 }
 0x156   : > { %v719_v37 = vmul.f32 %v3348_v35, %v716_v32  ;;  %vm725_vm1 = vweird.f32 %v3348_v35 }
 0x157   : > { %3349 = vrsqrt.f32 %v717_v36  ;;  %vm726_vm3 = vmor %vm724_vm2, %vm725_vm1  ;;  %vm734_vm5 = vweird.f32 %v717_v36 }
 0x158   : > { %v720_v38 = vmul.f32 %v3348_v35, %v719_v37 }
 0x15a   : > { %v721_v39 = vmul.f32 0.5, %v720_v38 }
 0x15c   : > { %v722_v40 = vsub.f32 1.5, %v721_v39 }
 0x15d   : > { %v3350_v41 = vpop.eup %3349 }
 0x15e   : > { %v723_v42 = vmul.f32 %v3348_v35, %v722_v40  ;;  %v729_v43 = vmul.f32 %v3350_v41, %v717_v36  ;;  %vm735_vm4 = vweird.f32 %v3350_v41 }
 0x15f   : > { %vm736_vm6 = vmor %vm734_vm5, %vm735_vm4 }
 0x160   : > { %v730_v44 = vmul.f32 %v3350_v41, %v729_v43  ;;  %v727_v45 = vsel %vm726_vm3, %v3348_v35, %v723_v42 }
 0x161   : > { %v738_v48 = vmul.f32 %v727_v45, %v4148_v11  ;;  %v783_v11 = vld [vmem:[%s4580_s5] sm:$0x7] }
 0x162   : > { %v731_v46 = vmul.f32 0.5, %v730_v44  ;;  %v785_v59 = vperm.slane %v783_v11, 0  ;;  %v786_v60 = vperm.slane %v783_v11, 1  ;;  %v787_v3 = vperm.slane %v783_v11, 2 }
 0x163   : > { %v743_v53 = vmul.f32 %v3338_v49, %v738_v48 }
 0x164   : > { %v732_v47 = vsub.f32 1.5, %v731_v46 }
 0x165   : > { %v748_v56 = vadd.f32 %v3339_v54, %v743_v53 }
 0x166   : > { %v733_v50 = vmul.f32 %v3350_v41, %v732_v47 }
 0x168   : > { %v737_v51 = vsel %vm736_vm6, %v3350_v41, %v733_v50 }
 0x169   : > { %v739_v52 = vmul.f32 %v737_v51, %v4154_v15 }
 0x16b   : > { %v744_v55 = vmul.f32 %v3338_v49, %v739_v52 }
 0x16d   : > { %v749_v57 = vadd.f32 %v3339_v54, %v744_v55 }
 0x16f   : > { %v750_v58 = vpack.c.bf16 %v749_v57, %v748_v56 }
 0x171   : > { %927 = vmatmul.bf16.vlgmr.msra.gmra.mxu0 %v750_v58  ;;  %941 = vmatmul.bf16.vlgmr.msra.gmra.mxu1 %v750_v58 }
 0x172   : > { %955 = vmatmul.bf16.vlgmr.msra.gmra.mxu2 %v750_v58 }
 0x1ee   : > { %v928_v61 = vpop.f32.mrf.mxu0  ;;  %v942_v62 = vpop.f32.mrf.mxu1 }
 0x1ef   : > { %v929_v63 = vadd.f32 %v928_v61, %v785_v59  ;;  %v943_v2 = vadd.f32 %v942_v62, %v786_v60 }
 0x1f1   : > { %v961_v15 = vpack.c.bf16 %v943_v2, %v929_v63 }
 0x1f3   : > { %965 = vst [vmem:[#allocation2] sm:$0xff] %v961_v15 }
 0x1f5   : > { %v956_v4 = vpop.f32.mrf.mxu2 }
 0x1f6   : > { %v957_v5 = vadd.f32 %v956_v4, %v787_v3  ;;  %v930_v6 = vpop.f32.mrf.mxu0  ;;  %v944_v7 = vpop.f32.mrf.mxu1 }
 0x1f7   : > { %v931_v9 = vadd.f32 %v930_v6, %v785_v59  ;;  %v945_v10 = vadd.f32 %v944_v7, %v786_v60 }
 0x1f8   : > { %v962_v12 = vpack.c.bf16 %v957_v5, %v957_v5 }
 0x1f9   : > { %v963_v13 = vpack.c.bf16 %v945_v10, %v931_v9 }
 0x1fa   : > { %966 = vst [vmem:[#allocation2 + $0x8] sm:$0xf] %v962_v12  ;;  %v2686_v18 = vld [vmem:[#allocation2] sm:$0xf]  ;;  %v2676_v19 = vld [vmem:[#allocation2 + $0x4] sm:$0xf] }
 0x1fb   : > { %967 = vst [vmem:[#allocation2 + $0xc] sm:$0xff] %v963_v13  ;;  %v2672_v29 = vld [vmem:[#allocation2] sm:$0xf]  ;;  %v2690_v39 = vld [vmem:[#allocation2 + $0x4] sm:$0xf] }
 0x1fc   : > { %v2718_v42 = vld [vmem:[#allocation2 + $0x4] sm:$0xf]  ;;  %v2714_v45 = vld [vmem:[#allocation2] sm:$0xf] }
 0x1fd   : > { %v958_v14 = vpop.f32.mrf.mxu2  ;;  %v2700_v59 = vld [vmem:[#allocation2] sm:$0xf]  ;;  %v2704_v62 = vld [vmem:[#allocation2 + $0x4] sm:$0xf] }
 0x1fe   : > { %v959_v16 = vadd.f32 %v958_v14, %v787_v3 }
 0x200   : > { %v964_v17 = vpack.c.bf16 %v959_v16, %v959_v16 }
 0x201   : > { %v2681_v26 = vld [vmem:[#allocation2 + $0x8] sm:$0xf] }
 0x202   : > { %968 = vst [vmem:[#allocation2 + $0x14] sm:$0xf] %v964_v17  ;;  %v3062_v20 = vld [vmem:[#allocation2 + $0x8] sm:$0xf0]  ;;  %v3060_v21 = vld [vmem:[#allocation2 + $0xc] sm:$0xf0] }
 0x203   : > { %v2687_v22 = vor.u32 %v3062_v20, %v2686_v18  ;;  %v2677_v23 = vor.u32 %v3060_v21, %v2676_v19  ;;  %v3059_v25 = vld [vmem:[#allocation2 + $0x8] sm:$0xf0]  ;;  %v3063_v38 = vld [vmem:[#allocation2 + $0xc] sm:$0xf0] }
 0x204   : > { %v2673_v30 = vor.u32 %v3059_v25, %v2672_v29  ;;  %v2691_v40 = vor.u32 %v3063_v38, %v2690_v39  ;;  %v3069_v41 = vld [vmem:[#allocation2 + $0xc] sm:$0xf0]  ;;  %v3068_v44 = vld [vmem:[#allocation2 + $0x8] sm:$0xf0] }
 0x205   : > { %1075 = vrot.lane.b32.xlu0 %v2687_v22, %s3873_s25  ;;  %v999_v24 = vsel %vm994_vm7, %v2677_v23, 0  ;;  %v2719_v43 = vor.u32 %v3069_v41, %v2718_v42  ;;  %v2715_v46 = vor.u32 %v3068_v44, %v2714_v45  ;;  %v3065_v11 = vld [vmem:[#allocation2 + $0x8] sm:$0xf0]  ;;  %v3066_v61 = vld [vmem:[#allocation2 + $0xc] sm:$0xf0] }
 0x206   : > { %1008 = vmatpush.bf16.xpose.msra.mxu3 %v999_v24  ;;  %v2701_v60 = vor.u32 %v3065_v11, %v2700_v59  ;;  %v2705_v63 = vor.u32 %v3066_v61, %v2704_v62 }
 0x209   : > { %v3061_v27 = vld [vmem:[#allocation2 + $0x10] sm:$0xf0] }
 0x20a   : > { %v2682_v28 = vor.u32 %v3061_v27, %v2681_v26  ;;  %v3064_v39 = vld [vmem:[#allocation2 + $0x10] sm:$0xf0] }
 0x20d   : > { %2678 = vmatmul.msk.bf16.vlgmr.msra.gmra.mxu3 %vm994_vm7, %v2673_v30 }
 0x20e   : > { %1057 = vmatpush.bf16.msrb.mxu3 %v2682_v28 }
 0x277   : > { %v1076_v2 = vpop.permute.xlu0 %1075 }
 0x290   : > { %v1010_v32 = vpop.f32.mrf.mxu3 }
 0x291   : > { %v1011_v33 = vadd.f32 %v4168_v31, %v1010_v32 }
 0x293   : > { %v1016_v34 = vsel %vm1015_vm8, %v1011_v33, -inf }
 0x294   : > { %1017 = vmax.xlane.f32.xlu2 %v1016_v34 }
 0x298   : > { %v1012_v35 = vpop.f32.mrf.mxu3 }
 0x299   : > { %v1013_v36 = vadd.f32 %v4168_v31, %v1012_v35 }
 0x29b   : > { %v1019_v37 = vsel %vm1015_vm8, %v1013_v36, -inf }
 0x29c   : > { %1020 = vmax.xlane.f32.xlu2 %v1019_v37 }
 0x2b4   : > { %1082 = vrot.lane.b32.xlu2 %v2691_v40, %s3873_s25  ;;  %v2695_v40 = vld [vmem:[#allocation2 + $0x8] sm:$0xf] }
 0x2b5   : > { %v2696_v41 = vor.u32 %v3064_v39, %v2695_v40 }
 0x2bc   : > { %1270 = vrot.lane.b32.xlu2 %v2719_v43, %s3874_s29 }
 0x2c4   : > { %1263 = vrot.lane.b32.xlu2 %v2715_v46, %s3874_s29 }
 0x307   : > { %v1018_v47 = vpop.xlane.xlu2 %1017 }
 0x308   : > { %v1022_v48 = vsub.f32 %v1011_v33, %v1018_v47 }
 0x30a   : > { %v1024_v49 = vmul.f32 1.442695, %v1022_v48 }
 0x30c   : > { %3351 = vpow2.f32 %v1024_v49 }
 0x30f   : > { %v1021_v50 = vpop.xlane.xlu2 %1020 }
 0x310   : > { %v1023_v51 = vsub.f32 %v1013_v36, %v1021_v50 }
 0x312   : > { %v3352_v52 = vpop.eup %3351  ;;  %v1026_v53 = vmul.f32 1.442695, %v1023_v51 }
 0x313   : > { %v1028_v54 = vsel %vm1015_vm8, %v3352_v52, 0.0 }
 0x314   : > { %3353 = vpow2.f32 %v1026_v53  ;;  %1029 = vadd.xlane.f32.xlu0 %v1028_v54 }
 0x317   : > { %v1083_v55 = vpop.permute.xlu2 %1082 }
 0x318   : > { %v1088_v56 = vsel %vm994_vm7, %v1083_v55, 0 }
 0x319   : > { %1097 = vmatpush.bf16.xpose.msra.mxu3 %v1088_v56 }
 0x31a   : > { %v3354_v57 = vpop.eup %3353 }
 0x31b   : > { %v1031_v58 = vsel %vm1015_vm8, %v3354_v57, 0.0 }
 0x31c   : > { %1032 = vadd.xlane.f32.xlu1 %v1031_v58 }
 0x31f   : > { %v1271_v9 = vpop.permute.xlu2 %1270 }
 0x320   : > { %v1276_v12 = vsel %vm994_vm7, %v1271_v9, 0  ;;  %v3067_v9 = vld [vmem:[#allocation2 + $0x10] sm:$0xf0] }
 0x327   : > { %v1264_v17 = vpop.permute.xlu2 %1263 }
 0x328   : > { %1169 = vrot.lane.b32.xlu0 %v2701_v60, %s3875_s26 }
 0x335   : > { %1176 = vrot.lane.b32.xlu1 %v2705_v63, %s3875_s26 }
 0x387   : > { %v1030_v15 = vpop.xlane.xlu0 %1029 }
 0x388   : > { %3355 = vrcp.f32 %v1030_v15 }
 0x38e   : > { %v3356_v3 = vpop.eup %3355 }
 0x38f   : > { %v1036_v4 = vmul.f32 %v3356_v3, %v3352_v52  ;;  %v1033_v5 = vpop.xlane.xlu1 %1032 }
 0x390   : > { %3357 = vrcp.f32 %v1033_v5 }
 0x391   : > { %1038 = vst.msk [vmem:[%s4183_s1] sm:$0xff] %vm1015_vm8, %v1036_v4 }
 0x396   : > { %v3358_v6 = vpop.eup %3357 }
 0x397   : > { %v1037_v7 = vmul.f32 %v3358_v6, %v3354_v57 }
 0x399   : > { %1039 = vst.msk [vmem:[%s4183_s1 + $0x8] sm:$0xff] %vm1015_vm8, %v1037_v7  ;;  %v1040_v10 = vpack.c.bf16 %v1037_v7, %v1036_v4 }
 0x39a   : > { %v1170_v16 = vpop.permute.xlu0 %1169 }
 0x39b   : > { %2683 = vmatmul.msk.bf16.vlgmr.msrb.gmra.mxu3 %vm1015_vm8, %v1040_v10  ;;  %v2709_v10 = vld [vmem:[#allocation2 + $0x8] sm:$0xf] }
 0x39c   : > { %1285 = vmatpush.bf16.xpose.msrb.mxu3 %v1276_v12  ;;  %v2710_v12 = vor.u32 %v3067_v9, %v2709_v10  ;;  %v3074_v9 = vld [vmem:[#allocation13 + $0x10] sm:$0xff]  ;;  %v3073_v10 = vld [vmem:[#allocation13 + $0x8] sm:$0xff] }
 0x3a7   : > { %v1177_v13 = vpop.permute.xlu1 %1176 }
 0x3a8   : > { %v1182_v14 = vsel %vm994_vm7, %v1177_v13, 0  ;;  %v3070_v13 = vld [vmem:[#allocation2 + $0x10] sm:$0xf0] }
 0x3a9   : > { %1191 = vmatpush.bf16.xpose.msrb.mxu2 %v1182_v14  ;;  %v2723_v14 = vld [vmem:[#allocation2 + $0x8] sm:$0xf] }
 0x3ab   : > { %2692 = vmatmul.msk.bf16.vlgmr.msra.gmra.mxu3 %vm994_vm7, %v1076_v2 }
 0x3b0   : > { %2706 = vmatmul.msk.bf16.vlgmr.msrb.gmra.mxu2 %vm994_vm7, %v1170_v16  ;;  %v2724_v16 = vor.u32 %v3070_v13, %v2723_v14 }
 0x3bb   : > { %2720 = vmatmul.msk.bf16.vlgmr.msrb.gmra.mxu3 %vm994_vm7, %v1264_v17 }
 0x41e   : > { %v4195_v18 = vpop.f32.mrf.mxu3 }
 0x426   : > { %v4197_v19 = vpop.f32.mrf.mxu3 }
 0x42e   : > { %v1099_v20 = vpop.f32.mrf.mxu3 }
 0x42f   : > { %v1100_v21 = vadd.f32 %v4168_v31, %v1099_v20 }
 0x431   : > { %v1104_v22 = vsel %vm1015_vm8, %v1100_v21, -inf }
 0x432   : > { %1105 = vmax.xlane.f32.xlu1 %v1104_v22 }
 0x433   : > { %v1193_v23 = vpop.f32.mrf.mxu2 }
 0x434   : > { %v1194_v24 = vadd.f32 %v4168_v31, %v1193_v23 }
 0x436   : > { %v1101_v25 = vpop.f32.mrf.mxu3  ;;  %v1198_v26 = vsel %vm1015_vm8, %v1194_v24, -inf }
 0x437   : > { %v1102_v27 = vadd.f32 %v4168_v31, %v1101_v25  ;;  %1199 = vmax.xlane.f32.xlu2 %v1198_v26  ;;  %v1126_v25 = vld [vmem:[%s4183_s1] sm:$0xff] }
 0x439   : > { %v1107_v28 = vsel %vm1015_vm8, %v1102_v27, -inf }
 0x43a   : > { %1108 = vmax.xlane.f32.xlu0 %v1107_v28 }
 0x43b   : > { %v1195_v29 = vpop.f32.mrf.mxu2 }
 0x43c   : > { %v1196_v30 = vadd.f32 %v4168_v31, %v1195_v29 }
 0x43e   : > { %v1287_v32 = vpop.f32.mrf.mxu3  ;;  %v1201_v33 = vsel %vm1015_vm8, %v1196_v30, -inf }
 0x43f   : > { %v1288_v34 = vadd.f32 %v4168_v31, %v1287_v32  ;;  %1202 = vmax.xlane.f32.xlu1 %v1201_v33 }
 0x441   : > { %v1292_v35 = vsel %vm1015_vm8, %v1288_v34, -inf }
 0x442   : > { %1293 = vmax.xlane.f32.xlu0 %v1292_v35 }
 0x446   : > { %v1289_v36 = vpop.f32.mrf.mxu3 }
 0x447   : > { %v1290_v37 = vadd.f32 %v4168_v31, %v1289_v36 }
 0x449   : > { %v1295_v38 = vsel %vm1015_vm8, %v1290_v37, -inf }
 0x44a   : > { %1296 = vmax.xlane.f32.xlu2 %v1295_v38 }
 0x462   : > { %1138 = vrot.lane.b32.xlu2 %v2696_v41, %s3873_s25 }
 0x4a5   : > { %v1106_v42 = vpop.xlane.xlu1 %1105 }
 0x4a6   : > { %v1110_v45 = vsub.f32 %v1100_v21, %v1106_v42 }
 0x4a8   : > { %v1112_v48 = vmul.f32 1.442695, %v1110_v45 }
 0x4aa   : > { %v1200_v43 = vpop.xlane.xlu2 %1199 }
 0x4ab   : > { %v1204_v44 = vsub.f32 %v1194_v24, %v1200_v43 }
 0x4ad   : > { %v1206_v46 = vmul.f32 1.442695, %v1204_v44  ;;  %v1109_v47 = vpop.xlane.xlu0 %1108 }
 0x4ae   : > { %v1111_v51 = vsub.f32 %v1102_v27, %v1109_v47 }
 0x4af   : > { %3359 = vpow2.f32 %v1206_v46 }
 0x4b0   : > { %3361 = vpow2.f32 %v1112_v48  ;;  %v1114_v56 = vmul.f32 1.442695, %v1111_v51 }
 0x4b2   : > { %v1203_v49 = vpop.xlane.xlu1 %1202 }
 0x4b3   : > { %v1205_v50 = vsub.f32 %v1196_v30, %v1203_v49  ;;  %v1127_v30 = vld [vmem:[%s4183_s1 + $0x8] sm:$0xff] }
 0x4b5   : > { %v3360_v31 = vpop.eup %3359  ;;  %v1208_v52 = vmul.f32 1.442695, %v1205_v50  ;;  %v1294_v53 = vpop.xlane.xlu0 %1293 }
 0x4b6   : > { %v1298_v54 = vsub.f32 %v1288_v34, %v1294_v53  ;;  %v1210_v55 = vsel %vm1015_vm8, %v3360_v31, 0.0  ;;  %v3362_v58 = vpop.eup %3361 }
 0x4b7   : > { %3363 = vpow2.f32 %v1208_v52  ;;  %1211 = vadd.xlane.f32.xlu1 %v1210_v55  ;;  %v1116_v62 = vsel %vm1015_vm8, %v3362_v58, 0.0 }
 0x4b8   : > { %v1300_v57 = vmul.f32 1.442695, %v1298_v54  ;;  %3365 = vpow2.f32 %v1114_v56 }
 0x4ba   : > { %3367 = vpow2.f32 %v1300_v57 }
 0x4bd   : > { %v3364_v11 = vpop.eup %3363  ;;  %v1297_v59 = vpop.xlane.xlu2 %1296 }
 0x4be   : > { %v1299_v60 = vsub.f32 %v1290_v37, %v1297_v59  ;;  %v1213_v61 = vsel %vm1015_vm8, %v3364_v11, 0.0  ;;  %v3366_v2 = vpop.eup %3365 }
 0x4bf   : > { %1214 = vadd.xlane.f32.xlu0 %v1213_v61  ;;  %1117 = vadd.xlane.f32.xlu1 %v1116_v62  ;;  %v1119_v4 = vsel %vm1015_vm8, %v3366_v2, 0.0 }
 0x4c0   : > { %v1302_v63 = vmul.f32 1.442695, %v1299_v60  ;;  %v3368_v15 = vpop.eup %3367 }
 0x4c1   : > { %v1304_v5 = vsel %vm1015_vm8, %v3368_v15, 0.0 }
 0x4c2   : > { %3369 = vpow2.f32 %v1302_v63 }
 0x4c5   : > { %v1139_v3 = vpop.permute.xlu2 %1138 }
 0x4c6   : > { %1151 = vmatpush.bf16.msrb.mxu0 %v1139_v3  ;;  %v3079_v3 = vld [vmem:[#allocation13 + $0x38] sm:$0xff] }
 0x4c7   : > { %1120 = vadd.xlane.f32.xlu0 %v1119_v4  ;;  %1305 = vadd.xlane.f32.xlu1 %v1304_v5  ;;  %v3078_v4 = vld [vmem:[#allocation13 + $0x30] sm:$0xff]  ;;  %v3077_v5 = vld [vmem:[#allocation13 + $0x28] sm:$0xff] }
 0x4c8   : > { %v3370_v6 = vpop.eup %3369  ;;  %1464 = vmatpush.bf16.msrb.mxu1 %v3079_v3 }
 0x4c9   : > { %v1307_v7 = vsel %vm1015_vm8, %v3370_v6, 0.0 }
 0x4cc   : > { %1465 = vmatpush.bf16.msrb.mxu1 %v3078_v4  ;;  %v2844_v4 = vld [vmem:[#allocation18 + $0xa0] sm:$0xf] }
 0x4cf   : > { %1308 = vadd.xlane.f32.xlu0 %v1307_v7  ;;  %v3075_v7 = vld [vmem:[#allocation13 + $0x18] sm:$0xff] }
 0x4d0   : > { %1466 = vmatpush.bf16.msrb.mxu1 %v3077_v5  ;;  %v3102_v5 = vld [vmem:[#allocation18 + $0xac] sm:$0xf0] }
 0x4e0   : > { %1232 = vrot.lane.b32.xlu1 %v2710_v12, %s3875_s26  ;;  %v3072_v12 = vld [vmem:[#allocation13] sm:$0xff] }
 0x4e3   : > { %1326 = vrot.lane.b32.xlu0 %v2724_v16, %s3874_s29 }
 0x52a   : > { %v1212_v17 = vpop.xlane.xlu1 %1211 }
 0x532   : > { %v1215_v20 = vpop.xlane.xlu0 %1214  ;;  %v1118_v21 = vpop.xlane.xlu1 %1117 }
 0x533   : > { %3371 = vrcp.f32 %v1118_v21 }
 0x539   : > { %v3372_v22 = vpop.eup %3371 }
 0x53a   : > { %v1121_v23 = vpop.xlane.xlu0 %1120  ;;  %v1124_v24 = vmul.f32 %v3372_v22, %v3362_v58  ;;  %v1306_v32 = vpop.xlane.xlu1 %1305 }
 0x53b   : > { %3373 = vrcp.f32 %v1121_v23 }
 0x53c   : > { %3375 = vrcp.f32 %v1212_v17  ;;  %v1128_v26 = vadd.f32 %v1126_v25, %v1124_v24 }
 0x53d   : > { %3377 = vrcp.f32 %v1215_v20 }
 0x53e   : > { %1130 = vst.msk [vmem:[%s4183_s1] sm:$0xff] %vm1015_vm8, %v1128_v26  ;;  %3379 = vrcp.f32 %v1306_v32 }
 0x541   : > { %v3374_v27 = vpop.eup %3373 }
 0x542   : > { %v3376_v28 = vpop.eup %3375  ;;  %v1125_v29 = vmul.f32 %v3374_v27, %v3366_v2  ;;  %v1309_v38 = vpop.xlane.xlu0 %1308 }
 0x543   : > { %v1218_v35 = vmul.f32 %v3376_v28, %v3360_v31  ;;  %v3378_v39 = vpop.eup %3377  ;;  %3381 = vrcp.f32 %v1309_v38 }
 0x544   : > { %v1129_v33 = vadd.f32 %v1127_v30, %v1125_v29  ;;  %v1132_v34 = vpack.c.bf16 %v1125_v29, %v1124_v24  ;;  %v3380_v40 = vpop.eup %3379  ;;  %v1219_v41 = vmul.f32 %v3378_v39, %v3364_v11 }
 0x545   : > { %v1220_v36 = vld [vmem:[%s4183_s1] sm:$0xff]  ;;  %v1312_v44 = vmul.f32 %v3380_v40, %v3368_v15 }
 0x546   : > { %1131 = vst.msk [vmem:[%s4183_s1 + $0x8] sm:$0xff] %vm1015_vm8, %v1129_v33  ;;  %2697 = vmatmul.msk.bf16.vlgmr.msrb.gmra.mxu0 %vm1015_vm8, %v1132_v34  ;;  %v1222_v37 = vadd.f32 %v1220_v36, %v1218_v35  ;;  %v1226_v50 = vpack.c.bf16 %v1219_v41, %v1218_v35  ;;  %v3341_v34 = vld [vmem:[#allocation15] ss:$0 sm:$0xff] }
 0x548   : > { %1224 = vst.msk [vmem:[%s4183_s1] sm:$0xff] %vm1015_vm8, %v1222_v37 }
 0x549   : > { %v3382_v45 = vpop.eup %3381 }
 0x54a   : > { %v1313_v49 = vmul.f32 %v3382_v45, %v3370_v6  ;;  %v3076_v6 = vld [vmem:[#allocation13 + $0x20] sm:$0xff] }
 0x54b   : > { %1467 = vmatpush.bf16.msrb.mxu1 %v3076_v6  ;;  %v2876_v45 = vld [vmem:[#allocation18 + $0xe0] sm:$0xf]  ;;  %v3100_v6 = vld [vmem:[#allocation18 + $0xa4] sm:$0xf] }
 0x54c   : > { %v1320_v52 = vpack.c.bf16 %v1313_v49, %v1312_v44 }
 0x54d   : > { %v1221_v42 = vld [vmem:[%s4183_s1 + $0x8] sm:$0xff] }
 0x54e   : > { %v1223_v43 = vadd.f32 %v1221_v42, %v1219_v41 }
 0x54f   : > { %v1314_v46 = vld [vmem:[%s4183_s1] sm:$0xff]  ;;  %1468 = vmatpush.bf16.msrb.mxu1 %v3075_v7  ;;  %v2845_v7 = vor.u32 %v3102_v5, %v2844_v4 }
 0x550   : > { %1225 = vst.msk [vmem:[%s4183_s1 + $0x8] sm:$0xff] %vm1015_vm8, %v1223_v43  ;;  %v1316_v47 = vadd.f32 %v1314_v46, %v1312_v44  ;;  %v3110_v46 = vld [vmem:[#allocation18 + $0xec] sm:$0xf0] }
 0x552   : > { %v1233_v48 = vpop.permute.xlu1 %1232  ;;  %1318 = vst.msk [vmem:[%s4183_s1] sm:$0xff] %vm1015_vm8, %v1316_v47  ;;  %v3108_v47 = vld [vmem:[#allocation18 + $0xe4] sm:$0xf] }
 0x553   : > { %1245 = vmatpush.bf16.msra.mxu2 %v1233_v48  ;;  %1469 = vmatpush.bf16.msrb.mxu1 %v3074_v9  ;;  %v2877_v48 = vor.u32 %v3110_v46, %v2876_v45  ;;  %v2846_v9 = vld [vmem:[#allocation18 + $0xb0] sm:$0xf0]  ;;  %v2796_v46 = vld [vmem:[#allocation18 + $0x40] sm:$0xf] }
 0x555   : > { %v1327_v51 = vpop.permute.xlu0 %1326 }
 0x556   : > { %2711 = vmatmul.msk.bf16.vlgmr.msra.gmra.mxu2 %vm1015_vm8, %v1226_v50  ;;  %1339 = vmatpush.bf16.msra.mxu0 %v1327_v51  ;;  %v2884_v50 = vld [vmem:[#allocation18 + $0xe8] sm:$0xf]  ;;  %v3111_v51 = vld [vmem:[#allocation18 + $0xf4] sm:$0xf0] }
 0x557   : > { %v1315_v31 = vld [vmem:[%s4183_s1 + $0x8] sm:$0xff]  ;;  %1470 = vmatpush.bf16.msrb.mxu1 %v3073_v10  ;;  %1745 = vmatpush.bf16.msrb.mxu2 %v2877_v48  ;;  %v3088_v48 = vld [vmem:[#allocation18 + $0x44] sm:$0xf] }
 0x558   : > { %v1317_v53 = vadd.f32 %v1315_v31, %v1313_v49  ;;  %v2878_v49 = vld [vmem:[#allocation18 + $0xf0] sm:$0xf0]  ;;  %v2852_v10 = vld [vmem:[#allocation18 + $0xa8] sm:$0xf] }
 0x559   : > { %2725 = vmatmul.msk.bf16.vlgmr.msra.gmra.mxu0 %vm1015_vm8, %v1320_v52  ;;  %v1382_v54 = vld [vmem:[%s4183_s1] sm:$0xff]  ;;  %v2881_v31 = vor.u32 %v3108_v47, %v2878_v49  ;;  %v2885_v52 = vor.u32 %v3111_v51, %v2884_v50  ;;  %v2804_v51 = vld [vmem:[#allocation18 + $0x48] sm:$0xf] }
 0x55a   : > { %1319 = vst.msk [vmem:[%s4183_s1 + $0x8] sm:$0xff] %vm1015_vm8, %v1317_v53  ;;  %v1384_v55 = vmul.f32 0.25, %v1382_v54  ;;  %v3109_v53 = vld [vmem:[#allocation18 + $0xec] sm:$0xf]  ;;  %v2886_v54 = vld [vmem:[#allocation18 + $0xf8] sm:$0xf0] }
 0x55b   : > { %1471 = vmatpush.bf16.msrb.mxu1 %v3072_v12  ;;  %1759 = vmatpush.bf16.msra.mxu3 %v2881_v31  ;;  %v3103_v12 = vld [vmem:[#allocation18 + $0xb4] sm:$0xf0]  ;;  %v3090_v47 = vld [vmem:[#allocation18 + $0x4c] sm:$0xf0]  ;;  %v2798_v50 = vld [vmem:[#allocation18 + $0x50] sm:$0xf0] }
 0x55c   : > { %1386 = vst.msk [vmem:[%s4183_s1] sm:$0xff] %vm1015_vm8, %v1384_v55  ;;  %v2889_v55 = vor.u32 %v3109_v53, %v2886_v54  ;;  %1773 = vmatpush.bf16.msrb.mxu0 %v2885_v52  ;;  %v2797_v49 = vor.u32 %v3090_v47, %v2796_v46  ;;  %v3091_v31 = vld [vmem:[#allocation18 + $0x54] sm:$0xf0]  ;;  %v2801_v53 = vor.u32 %v3088_v48, %v2798_v50  ;;  %v3343_v46 = vld [vmem:[%s4581_s14] ss:$0 sm:$0xff] }
 0x55d   : > { %v2805_v54 = vor.u32 %v3091_v31, %v2804_v51  ;;  %v3135_v51 = vld [vmem:[#allocation19 + $0xb8] sm:$0xff] }
 0x55f   : > { %1787 = vmatpush.bf16.msra.mxu1 %v2889_v55  ;;  %v3089_v55 = vld [vmem:[#allocation18 + $0x4c] sm:$0xf] }
 0x561   : > { %v1383_v56 = vld [vmem:[%s4183_s1 + $0x8] sm:$0xff] }
 0x562   : > { %v1385_v57 = vmul.f32 0.25, %v1383_v56  ;;  %v2860_v56 = vld [vmem:[#allocation18 + $0xc0] sm:$0xf] }
 0x564   : > { %1387 = vst.msk [vmem:[%s4183_s1 + $0x8] sm:$0xff] %vm1015_vm8, %v1385_v57  ;;  %v3106_v57 = vld [vmem:[#allocation18 + $0xcc] sm:$0xf0] }
 0x5c3   : > { %v1153_v58 = vpop.f32.mrf.mxu0 }
 0x5cb   : > { %v1155_v59 = vpop.f32.mrf.mxu0 }
 0x5cc   : > { %v3328_v63 = vpack.i.bf16 %v1155_v59, %v1153_v58  ;;  %v3104_v58 = vld [vmem:[#allocation18 + $0xc4] sm:$0xf]  ;;  %v2862_v59 = vld [vmem:[#allocation18 + $0xd0] sm:$0xf0] }
 0x5d6   : > { %v1341_v62 = vpop.f32.mrf.mxu0 }
 0x5d9   : > { %v1247_v11 = vpop.f32.mrf.mxu2 }
 0x5de   : > { %v1343_v2 = vpop.f32.mrf.mxu0 }
 0x5df   : > { %v3333_v15 = vpack.i.bf16 %v1343_v2, %v1341_v62  ;;  %v2865_v62 = vor.u32 %v3104_v58, %v2862_v59  ;;  %v3105_v2 = vld [vmem:[#allocation18 + $0xcc] sm:$0xf]  ;;  %v3086_v59 = vld [vmem:[#allocation18 + $0x2c] sm:$0xf0] }
 0x5e1   : > { %v1249_v60 = vpop.f32.mrf.mxu2  ;;  %1760 = vmatpush.bf16.msra.mxu3 %v2865_v62 }
 0x5e2   : > { %v3323_v61 = vpack.i.bf16 %v1249_v60, %v1247_v11  ;;  %v2861_v11 = vor.u32 %v3106_v57, %v2860_v56  ;;  %v2868_v60 = vld [vmem:[#allocation18 + $0xc8] sm:$0xf]  ;;  %v2806_v56 = vld [vmem:[#allocation18 + $0x58] sm:$0xf0]  ;;  %v2780_v57 = vld [vmem:[#allocation18 + $0x20] sm:$0xf] }
 0x5e3   : > { %v2781_v62 = vor.u32 %v3086_v59, %v2780_v57  ;;  %v3127_v59 = vld [vmem:[#allocation19 + $0x78] sm:$0xff] }
 0x5e4   : > { %3324 = vrot.lane.b32.xlu2 %v3323_v61, %s3875_s26  ;;  %v3107_v61 = vld [vmem:[#allocation18 + $0xd4] sm:$0xf0]  ;;  %1746 = vmatpush.bf16.msrb.mxu2 %v2861_v11  ;;  %v2809_v11 = vor.u32 %v3089_v55, %v2806_v56 }
 0x5e8   : > { %1747 = vmatpush.bf16.msrb.mxu2 %v2845_v7  ;;  %v2764_v7 = vld [vmem:[#allocation18] sm:$0xf] }
 0x5ec   : > { %3329 = vrot.lane.b32.xlu2 %v3328_v63, %s3874_s29  ;;  %v2869_v63 = vor.u32 %v3107_v61, %v2868_v60  ;;  %v3084_v60 = vld [vmem:[#allocation18 + $0x24] sm:$0xf]  ;;  %v2782_v61 = vld [vmem:[#allocation18 + $0x30] sm:$0xf0]  ;;  %s2332_s29 = sshll.u32 %s4183_s1, 4  ;;  %s2333_s29 = int_to_ptr.vmem [resolvable:$true] %s2332_s29 }
 0x5ee   : > { %1774 = vmatpush.bf16.msrb.mxu0 %v2869_v63  ;;  %v2785_v63 = vor.u32 %v3084_v60, %v2782_v61 }
 0x5f4   : > { %3334 = vrot.lane.b32.xlu2 %v3333_v15, %s3873_s25  ;;  %v2870_v15 = vld [vmem:[#allocation18 + $0xd8] sm:$0xf0]  ;;  %s2331_s25 = scalar_lea.hbm %s4598_s4, %s3144_s16 }
 0x5f5   : > { %v2873_v3 = vor.u32 %v3105_v2, %v2870_v15  ;;  %v2788_v2 = vld [vmem:[#allocation18 + $0x28] sm:$0xf]  ;;  %v3087_v15 = vld [vmem:[#allocation18 + $0x34] sm:$0xf0]  ;;  %s2334_s26 = sshll.u32 %s2331_s25, 4  ;;  %s2335_s26 = int_to_ptr.hbm [resolvable:$true] %s2334_s26 }
 0x5f6   : > { %v2789_v5 = vor.u32 %v3087_v15, %v2788_v2  ;;  %v3133_v2 = vld [vmem:[#allocation19 + $0xa8] sm:$0xff]  ;;  %s3733_s28 = sshra.s32 %s2335_s26, 4  ;;  %s3734_s28 = int_to_ptr.hbm [resolvable:$true] %s3733_s28 }
 0x5f7   : > { %1788 = vmatpush.bf16.msra.mxu1 %v2873_v3  ;;  %v3085_v3 = vld [vmem:[#allocation18 + $0x2c] sm:$0xf]  ;;  %s3735_s14 = scalar_lea.hbm %s3734_s28, 16  ;;  %p3740_p10 = scmp.lt.s32.totalorder %s3734_s28, %s4598_s4 }
 0x5f8   : > { %v3141_v15 = vld [vmem:[#allocation19 + $0xe8] sm:$0xff]  ;;  %p3736_p1 = scmp.ne.s32.totalorder %s3734_s28, %s3735_s14 }
 0x5fa   : > { %p3737_p3 = pnand %p3736_p1, %p4085_p5 }
 0x5fc   : > { %p3738_p9 = pneg %p3737_p3 }
 0x63e   : > { %v3325_v13 = vpop.permute.xlu2 %3324 }
 0x63f   : > { %v3327_v22 = vunpack.i.h.bf16 %v3325_v13  ;;  %v3326_v23 = vunpack.i.l.bf16 %v3325_v13  ;;  %v2849_v13 = vor.u32 %v3100_v6, %v2846_v9  ;;  %v2790_v6 = vld [vmem:[#allocation18 + $0x38] sm:$0xf0] }
 0x640   : > { %v2793_v9 = vor.u32 %v3085_v3, %v2790_v6 }
 0x641   : > { %1761 = vmatpush.bf16.msra.mxu3 %v2849_v13  ;;  %v2766_v13 = vld [vmem:[#allocation18 + $0x10] sm:$0xf0] }
 0x646   : > { %v3330_v14 = vpop.permute.xlu2 %3329 }
 0x647   : > { %v3332_v16 = vunpack.i.h.bf16 %v3330_v14  ;;  %v3331_v17 = vunpack.i.l.bf16 %v3330_v14  ;;  %v2853_v14 = vor.u32 %v3103_v12, %v2852_v10  ;;  %v3082_v10 = vld [vmem:[#allocation18 + $0xc] sm:$0xf0]  ;;  %v3080_v12 = vld [vmem:[#allocation18 + $0x4] sm:$0xf] }
 0x649   : > { %v1371_v20 = vsel %vm994_vm7, %v4197_v19, %v3332_v16  ;;  %v1370_v21 = vsel %vm994_vm7, %v4195_v18, %v3331_v17  ;;  %v3101_v16 = vld [vmem:[#allocation18 + $0xac] sm:$0xf]  ;;  %v2854_v17 = vld [vmem:[#allocation18 + $0xb8] sm:$0xf0]  ;;  %1775 = vmatpush.bf16.msrb.mxu0 %v2853_v14  ;;  %v2765_v14 = vor.u32 %v3082_v10, %v2764_v7  ;;  %v3118_v7 = vld [vmem:[#allocation19 + $0x30] sm:$0xff] }
 0x64a   : > { %v1373_v27 = vsel %vm1372_vm9, %v1370_v21, %v3326_v23  ;;  %v1374_v28 = vsel %vm1372_vm9, %v1371_v20, %v3327_v22  ;;  %v2857_v20 = vor.u32 %v3101_v16, %v2854_v17  ;;  %v2828_v21 = vld [vmem:[#allocation18 + $0x80] sm:$0xf]  ;;  %v3098_v22 = vld [vmem:[#allocation18 + $0x8c] sm:$0xf0]  ;;  %v3096_v23 = vld [vmem:[#allocation18 + $0x84] sm:$0xf] }
 0x64b   : > { %v2772_v16 = vld [vmem:[#allocation18 + $0x8] sm:$0xf]  ;;  %v3083_v17 = vld [vmem:[#allocation18 + $0x14] sm:$0xf0] }
 0x64c   : > { %1789 = vmatpush.bf16.msra.mxu1 %v2857_v20  ;;  %v3081_v20 = vld [vmem:[#allocation18 + $0xc] sm:$0xf] }
 0x64e   : > { %v3335_v24 = vpop.permute.xlu2 %3334 }
 0x64f   : > { %v3337_v25 = vunpack.i.h.bf16 %v3335_v24  ;;  %v3336_v26 = vunpack.i.l.bf16 %v3335_v24  ;;  %v2829_v24 = vor.u32 %v3098_v22, %v2828_v21  ;;  %v2769_v21 = vor.u32 %v3080_v12, %v2766_v13  ;;  %v3132_v13 = vld [vmem:[#allocation19 + $0xa0] sm:$0xff] }
 0x650   : > { %v2773_v22 = vor.u32 %v3083_v17, %v2772_v16 }
 0x651   : > { %v1376_v29 = vsel %vm1375_vm10, %v1373_v27, %v3336_v26  ;;  %v1377_v30 = vsel %vm1375_vm10, %v1374_v28, %v3337_v25  ;;  %v2830_v25 = vld [vmem:[#allocation18 + $0x90] sm:$0xf0]  ;;  %v2836_v26 = vld [vmem:[#allocation18 + $0x88] sm:$0xf]  ;;  %v3099_v27 = vld [vmem:[#allocation18 + $0x94] sm:$0xf0]  ;;  %1748 = vmatpush.bf16.msrb.mxu2 %v2829_v24 }
 0x652   : > { %v3149_v32 = vpack.c.bf16 %v1377_v30, %v1376_v29  ;;  %v2833_v28 = vor.u32 %v3096_v23, %v2830_v25  ;;  %v2837_v29 = vor.u32 %v3099_v27, %v2836_v26  ;;  %v3097_v30 = vld [vmem:[#allocation18 + $0x8c] sm:$0xf]  ;;  %v2774_v23 = vld [vmem:[#allocation18 + $0x18] sm:$0xf0] }
 0x653   : > { %v2777_v24 = vor.u32 %v3081_v20, %v2774_v23 }
 0x654   : > { %3150 = vst [vmem:[#allocation3] sm:$0xff] %v3149_v32   ;;  %v2838_v32 = vld [vmem:[#allocation18 + $0x98] sm:$0xf0]  ;;  %1762 = vmatpush.bf16.msra.mxu3 %v2833_v28  ;;  %1776 = vmatpush.bf16.msrb.mxu0 %v2837_v29 }
 0x65b   : > { %v3071_v33 = vld [vmem:[#allocation3] sm:$0xff] }
 0x65c   : > { %1472 = vmatmul.bf16.vlgmr.msrb.gmra.mxu1 %v3071_v33  ;;  %v2841_v33 = vor.u32 %v3097_v30, %v2838_v32 }
 0x65e   : > { %1790 = vmatpush.bf16.msra.mxu1 %v2841_v33 }
 0x6d9   : > { %v1473_v19 = vpop.f32.mrf.mxu1 }
 0x6da   : > { %v1474_v35 = vadd.f32 %v3341_v34, %v1473_v19  ;;  %v3094_v19 = vld [vmem:[#allocation18 + $0x6c] sm:$0xf0] }
 0x6dc   : > { %v4255_v18 = vadd.f32 %v1474_v35, %v4138_v0  ;;  %v3092_v35 = vld [vmem:[#allocation18 + $0x64] sm:$0xf] }
 0x6de   : > { %1485 = vadd.xlane.f32.xlu0 %v4255_v18 }
 0x6e1   : > { %v1475_v36 = vpop.f32.mrf.mxu1 }
 0x6e2   : > { %v1476_v37 = vadd.f32 %v3341_v34, %v1475_v36  ;;  %v2812_v34 = vld [vmem:[#allocation18 + $0x60] sm:$0xf] }
 0x6e3   : > { %v2813_v36 = vor.u32 %v3094_v19, %v2812_v34 }
 0x6e4   : > { %v4259_v38 = vadd.f32 %v1476_v37, %v4141_v1  ;;  %v2814_v37 = vld [vmem:[#allocation18 + $0x70] sm:$0xf0] }
 0x6e5   : > { %1749 = vmatpush.bf16.msrb.mxu2 %v2813_v36 }
 0x6e6   : > { %1487 = vadd.xlane.f32.xlu1 %v4259_v38 }
 0x6e9   : > { %1750 = vmatpush.bf16.msrb.mxu2 %v2797_v49 }
 0x6ed   : > { %1751 = vmatpush.bf16.msrb.mxu2 %v2781_v62 }
 0x6f1   : > { %1752 = vmatpush.bf16.msrb.mxu2 %v2765_v14  ;;  %v3140_v14 = vld [vmem:[#allocation19 + $0xe0] sm:$0xff] }
 0x751   : > { %v1486_v39 = vpop.xlane.xlu0 %1485 }
 0x752   : > { %v1496_v40 = vmul.f32 %v1486_v39, %v4144_v8  ;;  %v2820_v39 = vld [vmem:[#allocation18 + $0x68] sm:$0xf] }
 0x754   : > { %v4264_v41 = vsub.f32 %v4255_v18, %v1496_v40  ;;  %v3095_v40 = vld [vmem:[#allocation18 + $0x74] sm:$0xf0] }
 0x756   : > { %v1500_v42 = vmul.f32 %v4264_v41, %v4264_v41 }
 0x758   : > { %1502 = vadd.xlane.f32.xlu2 %v1500_v42  ;;  %v2817_v42 = vor.u32 %v3092_v35, %v2814_v37 }
 0x759   : > { %v1488_v0 = vpop.xlane.xlu1 %1487 }
 0x75a   : > { %v1497_v43 = vmul.f32 %v1488_v0, %v4144_v8  ;;  %v2821_v0 = vor.u32 %v3095_v40, %v2820_v39  ;;  %1763 = vmatpush.bf16.msra.mxu3 %v2817_v42  ;;  %v3342_v42 = vld [vmem:[#allocation16] ss:$0 sm:$0xff] }
 0x75c   : > { %v4270_v44 = vsub.f32 %v4259_v38, %v1497_v43  ;;  %v3093_v43 = vld [vmem:[#allocation18 + $0x6c] sm:$0xf]  ;;  %1777 = vmatpush.bf16.msrb.mxu0 %v2821_v0 }
 0x75e   : > { %v1501_v1 = vmul.f32 %v4270_v44, %v4270_v44  ;;  %1764 = vmatpush.bf16.msra.mxu3 %v2801_v53  ;;  %v3134_v53 = vld [vmem:[#allocation19 + $0xb0] sm:$0xff] }
 0x760   : > { %1504 = vadd.xlane.f32.xlu0 %v1501_v1  ;;  %v2822_v1 = vld [vmem:[#allocation18 + $0x78] sm:$0xf0]  ;;  %1778 = vmatpush.bf16.msrb.mxu0 %v2805_v54  ;;  %v3142_v54 = vld [vmem:[#allocation19 + $0xf0] sm:$0xff] }
 0x761   : > { %v2825_v45 = vor.u32 %v3093_v43, %v2822_v1 }
 0x762   : > { %1765 = vmatpush.bf16.msra.mxu3 %v2785_v63 }
 0x763   : > { %1791 = vmatpush.bf16.msra.mxu1 %v2825_v45 }
 0x764   : > { %1779 = vmatpush.bf16.msrb.mxu0 %v2789_v5 }
 0x766   : > { %1766 = vmatpush.bf16.msra.mxu3 %v2769_v21 }
 0x767   : > { %1792 = vmatpush.bf16.msra.mxu1 %v2809_v11  ;;  %v3119_v11 = vld [vmem:[#allocation19 + $0x38] sm:$0xff] }
 0x768   : > { %1780 = vmatpush.bf16.msrb.mxu0 %v2773_v22  ;;  %2233 = vmatpush.bf16.msra.mxu2 %v3119_v11 }
 0x76a   : > { %2247 = vmatpush.bf16.msrb.mxu3 %v3127_v59 }
 0x76b   : > { %1793 = vmatpush.bf16.msra.mxu1 %v2793_v9  ;;  %v3126_v9 = vld [vmem:[#allocation19 + $0x70] sm:$0xff] }
 0x76c   : > { %2261 = vmatpush.bf16.msra.mxu0 %v3135_v51  ;;  %2234 = vmatpush.bf16.msra.mxu2 %v3118_v7 }
 0x76e   : > { %2248 = vmatpush.bf16.msrb.mxu3 %v3126_v9 }
 0x76f   : > { %1794 = vmatpush.bf16.msra.mxu1 %v2777_v24  ;;  %v3117_v24 = vld [vmem:[#allocation19 + $0x28] sm:$0xff] }
 0x770   : > { %2262 = vmatpush.bf16.msra.mxu0 %v3134_v53  ;;  %2235 = vmatpush.bf16.msra.mxu2 %v3117_v24  ;;  %v3122_v53 = vld [vmem:[#allocation19 + $0x50] sm:$0xff] }
 0x774   : > { %2263 = vmatpush.bf16.msra.mxu0 %v3133_v2 }
 0x778   : > { %2264 = vmatpush.bf16.msra.mxu0 %v3132_v13 }
 0x7cb   : > { %v1503_v52 = vpop.xlane.xlu2 %1502 }
 0x7cc   : > { %v1506_v58 = vmul.f32 %v1503_v52, %v4144_v8 }
 0x7ce   : > { %v1508_v4 = vadd.f32 1e-05, %v1506_v58 }
 0x7d0   : > { %3383 = vrsqrt.f32 %v1508_v4  ;;  %vm1516_vm12 = vweird.f32 %v1508_v4 }
 0x7d3   : > { %v1505_v25 = vpop.xlane.xlu0 %1504 }
 0x7d4   : > { %v1507_v26 = vmul.f32 %v1505_v25, %v4144_v8  ;;  %v3125_v25 = vld [vmem:[#allocation19 + $0x68] sm:$0xff] }
 0x7d5   : > { %2249 = vmatpush.bf16.msrb.mxu3 %v3125_v25 }
 0x7d6   : > { %v3384_v27 = vpop.eup %3383  ;;  %v1509_v28 = vadd.f32 1e-05, %v1507_v26 }
 0x7d7   : > { %v1511_v29 = vmul.f32 %v3384_v27, %v1508_v4  ;;  %vm1517_vm11 = vweird.f32 %v3384_v27 }
 0x7d8   : > { %3385 = vrsqrt.f32 %v1509_v28  ;;  %vm1518_vm13 = vmor %vm1516_vm12, %vm1517_vm11  ;;  %vm1526_vm15 = vweird.f32 %v1509_v28 }
 0x7d9   : > { %v1512_v30 = vmul.f32 %v3384_v27, %v1511_v29 }
 0x7db   : > { %v1513_v32 = vmul.f32 0.5, %v1512_v30  ;;  %v3131_v30 = vld [vmem:[#allocation19 + $0x98] sm:$0xff] }
 0x7dc   : > { %2265 = vmatpush.bf16.msra.mxu0 %v3131_v30 }
 0x7dd   : > { %v1514_v33 = vsub.f32 1.5, %v1513_v32  ;;  %v3139_v32 = vld [vmem:[#allocation19 + $0xd8] sm:$0xff] }
 0x7de   : > { %v3386_v34 = vpop.eup %3385 }
 0x7df   : > { %v1515_v19 = vmul.f32 %v3384_v27, %v1514_v33  ;;  %v1521_v35 = vmul.f32 %v3386_v34, %v1509_v28  ;;  %vm1527_vm14 = vweird.f32 %v3386_v34 }
 0x7e0   : > { %vm1528_vm0 = vmor %vm1526_vm15, %vm1527_vm14 }
 0x7e1   : > { %v1522_v36 = vmul.f32 %v3386_v34, %v1521_v35  ;;  %v1519_v37 = vsel %vm1518_vm13, %v3384_v27, %v1515_v19  ;;  %v3116_v35 = vld [vmem:[#allocation19 + $0x20] sm:$0xff] }
 0x7e2   : > { %v1530_v40 = vmul.f32 %v1519_v37, %v4264_v41  ;;  %v4284_v41 = vld [vmem:[%s4582_s27] sm:$0xf]  ;;  %2236 = vmatpush.bf16.msra.mxu2 %v3116_v35  ;;  %s3739_s27 = scalar_lea.hbm %s4598_s4, 32 }
 0x7e3   : > { %v1523_v8 = vmul.f32 0.5, %v1522_v36  ;;  %v1579_v31 = vperm.slane %v4284_v41, 2  ;;  %v1580_v52 = vperm.slane %v4284_v41, 3  ;;  %v1577_v60 = vperm.slane %v4284_v41, 0  ;;  %v3124_v36 = vld [vmem:[#allocation19 + $0x60] sm:$0xff]  ;;  %p3741_p11 = scmp.lt.s32.totalorder %s3739_s27, %s3735_s14 }
 0x7e4   : > { %v1535_v45 = vmul.f32 %v3342_v42, %v1530_v40  ;;  %v1578_v61 = vperm.slane %v4284_v41, 1  ;;  %2250 = vmatpush.bf16.msrb.mxu3 %v3124_v36 }
 0x7e5   : > { %v1524_v39 = vsub.f32 1.5, %v1523_v8  ;;  %p3742_p12 = por %p3741_p11, %p3740_p10 }
 0x7e6   : > { %v1540_v48 = vadd.f32 %v3343_v46, %v1535_v45  ;;  %v3123_v45 = vld [vmem:[#allocation19 + $0x58] sm:$0xff] }
 0x7e7   : > { %v1525_v0 = vmul.f32 %v3386_v34, %v1524_v39  ;;  %p3743_p13 = pnand %p3742_p12, %p3738_p9 }
 0x7e8   : > { %2251 = vmatpush.bf16.msrb.mxu3 %v3123_v45 }
 0x7e9   : > { %v1529_v43 = vsel %vm1528_vm0, %v3386_v34, %v1525_v0  ;;  %v3130_v0 = vld [vmem:[#allocation19 + $0x90] sm:$0xff] }
 0x7ea   : > { %v1531_v1 = vmul.f32 %v1529_v43, %v4270_v44  ;;  %v3143_v44 = vld [vmem:[#allocation19 + $0xf8] sm:$0xff]  ;;  %v3138_v43 = vld [vmem:[#allocation19 + $0xd0] sm:$0xff]  ;;  %2266 = vmatpush.bf16.msra.mxu0 %v3130_v0 }
 0x7eb   : > { %2275 = vmatpush.bf16.msrb.mxu1 %v3143_v44  ;;  %v3137_v44 = vld [vmem:[#allocation19 + $0xc8] sm:$0xff] }
 0x7ec   : > { %v1536_v47 = vmul.f32 %v3342_v42, %v1531_v1  ;;  %v3115_v1 = vld [vmem:[#allocation19 + $0x18] sm:$0xff]  ;;  %2252 = vmatpush.bf16.msrb.mxu3 %v3122_v53 }
 0x7ed   : > { %2237 = vmatpush.bf16.msra.mxu2 %v3115_v1 }
 0x7ee   : > { %v1541_v49 = vadd.f32 %v3343_v46, %v1536_v47 }
 0x7ef   : > { %2276 = vmatpush.bf16.msrb.mxu1 %v3142_v54 }
 0x7f0   : > { %v1542_v50 = vpack.c.bf16 %v1541_v49, %v1540_v48  ;;  %v3129_v49 = vld [vmem:[#allocation19 + $0x88] sm:$0xff] }
 0x7f1   : > { %2267 = vmatpush.bf16.msra.mxu0 %v3129_v49 }
 0x7f2   : > { %1753 = vmatmul.bf16.vlgmr.msrb.gmra.mxu2 %v1542_v50  ;;  %1767 = vmatmul.bf16.vlgmr.msra.gmra.mxu3 %v1542_v50 }
 0x7f3   : > { %1781 = vmatmul.bf16.vlgmr.msrb.gmra.mxu0 %v1542_v50  ;;  %1795 = vmatmul.bf16.vlgmr.msra.gmra.mxu1 %v1542_v50 }
 0x7f4   : > { %2277 = vmatpush.bf16.msrb.mxu1 %v3141_v15 }
 0x7f8   : > { %2278 = vmatpush.bf16.msrb.mxu1 %v3140_v14 }
 0x7fc   : > { %2279 = vmatpush.bf16.msrb.mxu1 %v3139_v32 }
 0x800   : > { %2280 = vmatpush.bf16.msrb.mxu1 %v3138_v43 }
 0x804   : > { %2281 = vmatpush.bf16.msrb.mxu1 %v3137_v44 }
 0x870   : > { %v1782_v55 = vpop.f32.mrf.mxu0  ;;  %v1796_v56 = vpop.f32.mrf.mxu1 }
 0x871   : > { %v4288_v57 = vadd.f32 %v1782_v55, %v1579_v31  ;;  %v4290_v58 = vadd.f32 %v1796_v56, %v1580_v52 }
 0x873   : > { %v2892_v62 = vmul.f32 -1.702, %v4288_v57  ;;  %v2893_v63 = vmul.f32 -1.702, %v4290_v58 }
 0x875   : > { %v1821_v3 = vmul.f32 1.442695, %v2892_v62  ;;  %v1823_v4 = vmul.f32 1.442695, %v2893_v63  ;;  %v1754_v5 = vpop.f32.mrf.mxu2  ;;  %v1768_v6 = vpop.f32.mrf.mxu3  ;;  %v3136_v62 = vld [vmem:[#allocation19 + $0xc0] sm:$0xff] }
 0x876   : > { %v4296_v10 = vadd.f32 %v1754_v5, %v1577_v60  ;;  %v4300_v12 = vadd.f32 %v1768_v6, %v1578_v61  ;;  %v3113_v5 = vld [vmem:[#allocation19 + $0x8] sm:$0xff]  ;;  %2282 = vmatpush.bf16.msrb.mxu1 %v3136_v62 }
 0x877   : > { %3387 = vpow2.f32 %v1821_v3  ;;  %v3121_v6 = vld [vmem:[#allocation19 + $0x48] sm:$0xff] }
 0x878   : > { %3389 = vpow2.f32 %v1823_v4  ;;  %v2890_v16 = vmul.f32 -1.702, %v4296_v10  ;;  %v2891_v17 = vmul.f32 -1.702, %v4300_v12  ;;  %v1784_v20 = vpop.f32.mrf.mxu0  ;;  %v1798_v21 = vpop.f32.mrf.mxu1  ;;  %2253 = vmatpush.bf16.msrb.mxu3 %v3121_v6 }
 0x879   : > { %v4304_v22 = vadd.f32 %v1784_v20, %v1579_v31  ;;  %v4306_v23 = vadd.f32 %v1798_v21, %v1580_v52  ;;  %v3114_v52 = vld [vmem:[#allocation19 + $0x10] sm:$0xff] }
 0x87a   : > { %v1817_v26 = vmul.f32 1.442695, %v2890_v16  ;;  %v1819_v27 = vmul.f32 1.442695, %v2891_v17  ;;  %2238 = vmatpush.bf16.msra.mxu2 %v3114_v52  ;;  %v3112_v16 = vld [vmem:[#allocation19] sm:$0xff] }
 0x87b   : > { %v2896_v28 = vmul.f32 -1.702, %v4304_v22  ;;  %v2897_v29 = vmul.f32 -1.702, %v4306_v23  ;;  %v3120_v17 = vld [vmem:[#allocation19 + $0x40] sm:$0xff] }
 0x87c   : > { %3391 = vpow2.f32 %v1817_v26  ;;  %2254 = vmatpush.bf16.msrb.mxu3 %v3120_v17 }
 0x87d   : > { %v3388_v33 = vpop.eup %3387  ;;  %v1829_v34 = vmul.f32 1.442695, %v2896_v28  ;;  %v1756_v19 = vpop.f32.mrf.mxu2  ;;  %3393 = vpow2.f32 %v1819_v27  ;;  %v1831_v39 = vmul.f32 1.442695, %v2897_v29 }
 0x87e   : > { %v3390_v37 = vpop.eup %3389  ;;  %v4310_v8 = vadd.f32 1.0, %v3388_v33  ;;  %v4312_v40 = vadd.f32 %v1756_v19, %v1577_v60  ;;  %v1770_v51 = vpop.f32.mrf.mxu3  ;;  %v3128_v60 = vld [vmem:[#allocation19 + $0x80] sm:$0xff]  ;;  %2239 = vmatpush.bf16.msra.mxu2 %v3113_v5 }
 0x87f   : > { %v4314_v42 = vadd.f32 1.0, %v3390_v37  ;;  %3395 = vpow2.f32 %v1829_v34  ;;  %v4330_v59 = vadd.f32 %v1770_v51, %v1578_v61  ;;  %2268 = vmatpush.bf16.msra.mxu0 %v3128_v60 }
 0x880   : > { %3397 = vrcp.f32 %v4310_v8  ;;  %v2894_v47 = vmul.f32 -1.702, %v4312_v40  ;;  %v1880_v14 = vand.u32 2147483647, %v4310_v8  ;;  %v1882_v20 = vand.u32 2147483648, %v4310_v8 }
 0x881   : > { %3399 = vrcp.f32 %v4314_v42  ;;  %v2895_v41 = vmul.f32 -1.702, %v4330_v59  ;;  %v1895_v21 = vand.u32 2147483647, %v4314_v42  ;;  %v1897_v24 = vand.u32 2147483648, %v4314_v42 }
 0x882   : > { %v3392_v46 = vpop.eup %3391  ;;  %3401 = vpow2.f32 %v1831_v39  ;;  %v1825_v55 = vmul.f32 1.442695, %v2894_v47  ;;  %2240 = vmatpush.bf16.msra.mxu2 %v3112_v16  ;;  %vm1876_vm2 = vweird.f32 %v4310_v8  ;;  %vm4357_vm3 = vcmp.eq.f32.partialorder %v1880_v14, 8.507059e+37 }
 0x883   : > { %v4319_v48 = vadd.f32 1.0, %v3392_v46  ;;  %v3394_v50 = vpop.eup %3393  ;;  %v1827_v25 = vmul.f32 1.442695, %v2895_v41  ;;  %vm1891_vm4 = vweird.f32 %v4314_v42  ;;  %v1883_v33 = vor.u32 1.1754944e-38, %v1882_v20 }
 0x884   : > { %v4334_v3 = vadd.f32 1.0, %v3394_v50  ;;  %vm4362_vm5 = vcmp.eq.f32.partialorder %v1895_v21, 8.507059e+37  ;;  %v1898_v19 = vor.u32 1.1754944e-38, %v1897_v24 }
 0x885   : > { %v3396_v31 = vpop.eup %3395  ;;  %3403 = vrcp.f32 %v4319_v48  ;;  %v1852_v47 = vand.u32 2147483648, %v4319_v48  ;;  %v1850_v21 = vand.u32 2147483647, %v4319_v48 }
 0x886   : > { %v4321_v54 = vpop.eup %3397  ;;  %v4336_v4 = vadd.f32 1.0, %v3396_v31  ;;  %3405 = vpow2.f32 %v1825_v55 }
 0x887   : > { %v4323_v56 = vpop.eup %3399  ;;  %v1872_v11 = vmul.f32 %v4321_v54, %v4310_v8  ;;  %vm1877_vm1 = vweird.f32 %v4321_v54 }
 0x888   : > { %v3402_v63 = vpop.eup %3401  ;;  %v1887_v2 = vmul.f32 %v4323_v56, %v4314_v42  ;;  %3407 = vrcp.f32 %v4336_v4  ;;  %vm4369_vm6 = vmor %vm1876_vm2, %vm1877_vm1  ;;  %vm1892_vm7 = vweird.f32 %v4323_v56  ;;  %v1940_v8 = vand.u32 2147483647, %v4336_v4 }
 0x889   : > { %v1873_v15 = vsub.f32 1.0, %v1872_v11  ;;  %v4338_v7 = vadd.f32 1.0, %v3402_v63  ;;  %3409 = vrcp.f32 %v4334_v3  ;;  %vm1936_vm8 = vweird.f32 %v4336_v4  ;;  %vm4394_vm10 = vmor %vm1891_vm4, %vm1892_vm7 }
 0x88a   : > { %v1888_v9 = vsub.f32 1.0, %v1887_v2  ;;  %v1942_v49 = vand.u32 2147483648, %v4336_v4  ;;  %vm4399_vm12 = vcmp.eq.f32.partialorder %v1940_v8, 8.507059e+37  ;;  %vm1846_vm1 = vweird.f32 %v4319_v48 }
 0x88b   : > { %v1874_v61 = vmul.f32 %v4321_v54, %v1873_v15  ;;  %v4343_v13 = vpop.eup %3403  ;;  %3411 = vrcp.f32 %v4338_v7  ;;  %v1957_v42 = vand.u32 2147483648, %v4338_v7  ;;  %v1955_v15 = vand.u32 2147483647, %v4338_v7 }
 0x88c   : > { %v3406_v26 = vpop.eup %3405  ;;  %v1889_v28 = vmul.f32 %v4323_v56, %v1888_v9  ;;  %v1842_v29 = vmul.f32 %v4343_v13, %v4319_v48  ;;  %3413 = vpow2.f32 %v1827_v25  ;;  %vm1847_vm11 = vweird.f32 %v4343_v13 }
 0x88d   : > { %v1875_v27 = vadd.f32 %v4321_v54, %v1874_v61  ;;  %v4375_v39 = vadd.f32 1.0, %v3406_v26  ;;  %v1943_v63 = vor.u32 1.1754944e-38, %v1942_v49  ;;  %vm1951_vm15 = vweird.f32 %v4338_v7 }
 0x88e   : > { %v3408_v30 = vpop.eup %3407  ;;  %v1890_v1 = vadd.f32 %v4323_v56, %v1889_v28  ;;  %v1843_v45 = vsub.f32 1.0, %v1842_v29  ;;  %v1958_v20 = vor.u32 1.1754944e-38, %v1957_v42  ;;  %vm1956_vm2 = vcmp.eq.f32.partialorder %v1955_v15, 8.507059e+37 }
 0x88f   : > { %v1932_v35 = vmul.f32 %v3408_v30, %v4336_v4  ;;  %v4367_v36 = vpop.eup %3409  ;;  %v1879_v43 = vsel %vm4369_vm6, %v4321_v54, %v1875_v27  ;;  %vm1937_vm9 = vweird.f32 %v3408_v30  ;;  %3415 = vrcp.f32 %v4375_v39 }
 0x890   : > { %v1857_v51 = vmul.f32 %v4367_v36, %v4334_v3  ;;  %v1884_v31 = vsel %vm4357_vm3, %v1883_v33, %v1879_v43  ;;  %v1894_v55 = vsel %vm4394_vm10, %v4323_v56, %v1890_v1  ;;  %v1844_v11 = vmul.f32 %v4343_v13, %v1843_v45  ;;  %vm1938_vm13 = vmor %vm1936_vm8, %vm1937_vm9 }
 0x891   : > { %v3412_v0 = vpop.eup %3411  ;;  %v1933_v46 = vsub.f32 1.0, %v1932_v35  ;;  %v1963_v56 = vmul.f32 %v1884_v31, %v4288_v57  ;;  %v1899_v61 = vsel %vm4362_vm5, %v1898_v19, %v1894_v55  ;;  %vm4429_vm3 = vmor %vm1846_vm1, %vm1847_vm11  ;;  %v1853_v48 = vor.u32 1.1754944e-38, %v1852_v47 }
 0x892   : > { %v1947_v50 = vmul.f32 %v3412_v0, %v4338_v7  ;;  %v3414_v62 = vpop.eup %3413  ;;  %vm1952_vm14 = vweird.f32 %v3412_v0  ;;  %v1858_v5 = vsub.f32 1.0, %v1857_v51  ;;  %v1845_v16 = vadd.f32 %v4343_v13, %v1844_v11 }
 0x893   : > { %v1934_v44 = vmul.f32 %v3408_v30, %v1933_v46  ;;  %v4412_v41 = vadd.f32 1.0, %v3414_v62  ;;  %vm1953_vm0 = vmor %vm1951_vm15, %vm1952_vm14  ;;  %v1964_v27 = vmul.f32 %v1899_v61, %v4290_v58  ;;  %v1912_v32 = vand.u32 2147483648, %v4375_v39 }
 0x894   : > { %v1948_v54 = vsub.f32 1.0, %v1947_v50  ;;  %v1859_v24 = vmul.f32 %v4367_v36, %v1858_v5  ;;  %v1910_v58 = vand.u32 2147483647, %v4375_v39  ;;  %vm1851_vm5 = vcmp.eq.f32.partialorder %v1850_v21, 8.507059e+37 }
 0x895   : > { %v1935_v60 = vadd.f32 %v3408_v30, %v1934_v44  ;;  %v3416_v14 = vpop.eup %3415  ;;  %3417 = vrcp.f32 %v4412_v41  ;;  %vm1862_vm6 = vweird.f32 %v4367_v36  ;;  %vm1906_vm7 = vweird.f32 %v4375_v39 }
 0x896   : > { %v1949_v2 = vmul.f32 %v3412_v0, %v1948_v54  ;;  %v1902_v57 = vmul.f32 %v3416_v14, %v4375_v39  ;;  %vm1907_vm4 = vweird.f32 %v3416_v14  ;;  %v1860_v35 = vadd.f32 %v4367_v36, %v1859_v24 }
 0x897   : > { %v1939_v6 = vsel %vm1938_vm13, %v3408_v30, %v1935_v60  ;;  %v1849_v30 = vsel %vm4429_vm3, %v4343_v13, %v1845_v16  ;;  %vm1861_vm8 = vweird.f32 %v4334_v3  ;;  %v1867_v8 = vand.u32 2147483648, %v4334_v3  ;;  %vm1908_vm9 = vmor %vm1906_vm7, %vm1907_vm4 }
 0x898   : > { %v1944_v4 = vsel %vm4399_vm12, %v1943_v63, %v1939_v6  ;;  %v1950_v9 = vadd.f32 %v3412_v0, %v1949_v2  ;;  %v1903_v29 = vsub.f32 1.0, %v1902_v57  ;;  %vm4445_vm10 = vmor %vm1861_vm8, %vm1862_vm6  ;;  %v1865_v1 = vand.u32 2147483647, %v4334_v3 }
 0x899   : > { %v1967_v17 = vmul.f32 %v1944_v4, %v4304_v22  ;;  %vm1911_vm11 = vcmp.eq.f32.partialorder %v1910_v58, 8.507059e+37  ;;  %v1864_v47 = vsel %vm4445_vm10, %v4367_v36, %v1860_v35  ;;  %v1927_v50 = vand.u32 2147483648, %v4412_v41 }
 0x89a   : > { %v1954_v7 = vsel %vm1953_vm0, %v3412_v0, %v1950_v9  ;;  %v1904_v34 = vmul.f32 %v3416_v14, %v1903_v29  ;;  %v1913_v0 = vor.u32 1.1754944e-38, %v1912_v32  ;;  %v1925_v31 = vand.u32 2147483647, %v4412_v41 }
 0x89b   : > { %v1971_v25 = vpack.c.bf16 %v1967_v17, %v1963_v56  ;;  %v1959_v26 = vsel %vm1956_vm2, %v1958_v20, %v1954_v7  ;;  %v3418_v19 = vpop.eup %3417  ;;  %v1868_v52 = vor.u32 1.1754944e-38, %v1867_v8  ;;  %vm1866_vm13 = vcmp.eq.f32.partialorder %v1865_v1, 8.507059e+37 }
 0x89c   : > { %v1968_v28 = vmul.f32 %v1959_v26, %v4306_v23  ;;  %v1854_v23 = vsel %vm1851_vm5, %v1853_v48, %v1849_v30  ;;  %v1905_v37 = vadd.f32 %v3416_v14, %v1904_v34  ;;  %v1917_v13 = vmul.f32 %v3418_v19, %v4412_v41 }
 0x89d   : > { %2269 = vmatmul.bf16.vlgmr.msra.gmra.mxu0 %v1971_v25  ;;  %v1961_v39 = vmul.f32 %v1854_v23, %v4296_v10  ;;  %vm1922_vm12 = vweird.f32 %v3418_v19  ;;  %vm1921_vm14 = vweird.f32 %v4412_v41  ;;  %v1869_v53 = vsel %vm1866_vm13, %v1868_v52, %v1864_v47 }
 0x89e   : > { %v1972_v33 = vpack.c.bf16 %v1968_v28, %v1964_v27  ;;  %v1909_v45 = vsel %vm1908_vm9, %v3416_v14, %v1905_v37  ;;  %v1918_v46 = vsub.f32 1.0, %v1917_v13  ;;  %vm1923_vm15 = vmor %vm1921_vm14, %vm1922_vm12  ;;  %v1928_v36 = vor.u32 1.1754944e-38, %v1927_v50 }
 0x89f   : > { %v1914_v49 = vsel %vm1911_vm11, %v1913_v0, %v1909_v45  ;;  %vm1926_vm0 = vcmp.eq.f32.partialorder %v1925_v31, 8.507059e+37  ;;  %v1962_v55 = vmul.f32 %v1869_v53, %v4300_v12 }
 0x8a0   : > { %2283 = vmatmul.bf16.vlgmr.msrb.gmra.mxu1 %v1972_v33  ;;  %v1965_v51 = vmul.f32 %v1914_v49, %v4312_v40  ;;  %v1919_v44 = vmul.f32 %v3418_v19, %v1918_v46 }
 0x8a2   : > { %v1969_v3 = vpack.c.bf16 %v1965_v51, %v1961_v39  ;;  %v1920_v10 = vadd.f32 %v3418_v19, %v1919_v44 }
 0x8a4   : > { %v1924_v54 = vsel %vm1923_vm15, %v3418_v19, %v1920_v10  ;;  %2241 = vmatmul.bf16.vlgmr.msra.gmra.mxu2 %v1969_v3 }
 0x8a5   : > { %v1929_v40 = vsel %vm1926_vm0, %v1928_v36, %v1924_v54 }
 0x8a6   : > { %v1966_v11 = vmul.f32 %v1929_v40, %v4330_v59 }
 0x8a8   : > { %v1970_v60 = vpack.c.bf16 %v1966_v11, %v1962_v55 }
 0x8aa   : > { %2255 = vmatmul.bf16.vlgmr.msrb.gmra.mxu3 %v1970_v60 }
 0x8ab   : > { %3746 = shalt.err (!%p3743_p13)
}
 0x8ac   : > { %s3876_s1 = smov 128   ;;  %s3877_s11 = smov 8  }
 0x8ad   : > { %3190 = dma.vmem_to_hbm [thread:$0]  (%p4085_p5), %s2333_s29, 256, %s2335_s26, %s2299_s9, %s3876_s1, %s3876_s1, %s3877_s11  }
 0x8ae   : > { %s4599_s6 = sld [smem:[#allocation43_spill]]  ;;  %s673_s0 = scalar_lea.vmem [#allocation21], %s4110_s15 }
 0x8af   : > { %s4600_s26 = sld [smem:[#allocation44_spill]]  ;;  %s2313_s28 = sshll.u32 %s673_s0, 4  ;;  %s2314_s28 = int_to_ptr.vmem [resolvable:$true] %s2313_s28 }
 0x8b0   : > { %s2294_s15 = scalar_lea.sflag [#allocation6], %s4107_s7 }
 0x8b4   : > { %v3344_v12 = vld [vmem:[%s4599_s6] ss:$0 sm:$0xff] }
 0x8b5   : > { %s2312_s9 = scalar_lea.hbm %s4600_s26, %s3144_s16  ;;  %s3767_s2 = scalar_lea.hbm %s4600_s26, 32 }
 0x8b6   : > { %s2315_s14 = sshll.u32 %s2312_s9, 4  ;;  %s2316_s14 = int_to_ptr.hbm [resolvable:$true] %s2315_s14 }
 0x8b7   : > { %s3761_s3 = sshra.s32 %s2316_s14, 4  ;;  %s3762_s3 = int_to_ptr.hbm [resolvable:$true] %s3761_s3 }
 0x8b8   : > { %s3763_s24 = scalar_lea.hbm %s3762_s3, 16  ;;  %p3768_p8 = scmp.lt.s32.totalorder %s3762_s3, %s4600_s26 }
 0x8b9   : > { %p3764_p0 = scmp.ne.s32.totalorder %s3762_s3, %s3763_s24  ;;  %p3769_p1 = scmp.lt.s32.totalorder %s3767_s2, %s3763_s24 }
 0x8bb   : > { %p3765_p2 = pnand %p3764_p0, %p4085_p5  ;;  %p3770_p3 = por %p3769_p1, %p3768_p8 }
 0x8bd   : > { %p3766_p6 = pneg %p3765_p2 }
 0x8bf   : > { %p3771_p9 = pnand %p3770_p3, %p3766_p6 }
 0x91a   : > { %v2270_v62 = vpop.f32.mrf.mxu0 }
 0x91d   : > { %v2284_v15 = vpop.f32.mrf.mxu1 }
 0x922   : > { %v2272_v14 = vpop.f32.mrf.mxu0 }
 0x925   : > { %v2286_v17 = vpop.f32.mrf.mxu1 }
 0x927   : > { %v2242_v59 = vpop.f32.mrf.mxu2 }
 0x928   : > { %v2243_v42 = vadd.f32 %v3344_v12, %v2242_v59 }
 0x92d   : > { %v2256_v63 = vpop.f32.mrf.mxu3 }
 0x92e   : > { %v2257_v2 = vadd.f32 %v2256_v63, %v2243_v42 }
 0x92f   : > { %v2244_v5 = vpop.f32.mrf.mxu2 }
 0x930   : > { %v2271_v6 = vadd.f32 %v2270_v62, %v2257_v2  ;;  %v2245_v56 = vadd.f32 %v3344_v12, %v2244_v5 }
 0x932   : > { %v2285_v41 = vadd.f32 %v2284_v15, %v2271_v6 }
 0x934   : > { %v2289_v61 = vadd.f32 %v2285_v41, %v4255_v18 }
 0x935   : > { %v2258_v4 = vpop.f32.mrf.mxu3 }
 0x936   : > { %2291 = vst [vmem:[%s673_s0] sm:$0xff] %v2289_v61  ;;  %v2259_v9 = vadd.f32 %v2258_v4, %v2245_v56 }
 0x938   : > { %v2273_v16 = vadd.f32 %v2272_v14, %v2259_v9 }
 0x93a   : > { %v2287_v20 = vadd.f32 %v2286_v17, %v2273_v16 }
 0x93c   : > { %v2290_v7 = vadd.f32 %v2287_v20, %v4259_v38 }
 0x93e   : > { %2292 = vst [vmem:[%s673_s0 + $0x8] sm:$0xff] %v2290_v7 }
 0x93f   : > { %3774 = shalt.err (!%p3771_p9)
}
 0x940   : > { %3189 = dma.vmem_to_hbm [thread:$0]  (%p4085_p5), %s2314_s28, 256, %s2316_s14, %s2294_s15, %s3876_s1, %s3876_s1, %s3877_s11  }
 0x941 PF: > { %s2349_s7 = sand.u32 1, %s3833_s18   ;;  %p3226_p10 = pnand %p2557_p4, %p4093_p7 }
 0x942   : > { %s2350_s0 = scalar_lea.sflag [#allocation6], %s2349_s7 }
 0x943   : > { %p3227_p11 = pneg %p3226_p10 }
 0x945   : > { %3824 = dma.done.wait (%p3227_p11), %s2350_s0, 256  }
 0x946   : > { %3826 = vsyncadd (%p3227_p11), %s2350_s0, 4294967040  ;;  %s2360_s5 = scalar_lea.sflag [#allocation23], %s2349_s7 }
 0x947   : > { %3828 = dma.done.wait (%p3227_p11), %s2360_s5, 256  }
 0x948   : > { %3830 = vsyncadd (%p3227_p11), %s2360_s5, 4294967040  ;;  %s40_s23 = sadd.s32 1, %s3853_s23   ;;  %s4601_s30 = smov %s4608_s21 }
 0x949   : > { %p37_p12 = scmp.ge.s32.totalorder %s40_s23, 4   ;;  %s4602_s18 = smov %s3837_s19 }
 0x94a   : > { %s4603_s19 = smov %s3841_s20  ;;  %s4604_s20 = smov %s4091_s13 }
 0x94b   : > { %s4605_s21 = smov %s3849_s22  ;;  %s4606_s22 = smov %s4601_s30 }
 0x94c   :  { %39 = sbr.rel (!%p37_p12) target bundleno = 27 (0x1b), region = 180 }
 0x951   :  { %2366 = vsyncpa [#allocation5], 1 }
 0x952   :  { %2368 = vsyncpa [#allocation5 + $0x1], 1 }
 0x953   :  { %2369 = vsyncpa [#allocation8], 1 }
 0x954   :  { %2370 = vsyncpa [#allocation11], 1 }
 0x955   :  { %2371 = vsyncpa [#allocation14], 1 }
 0x956   :  { %2372 = vsyncpa [#allocation17], 1 }
 0x957   :  { %2373 = vsyncpa [#allocation20], 1 }
 0x958   :  { %2374 = vsyncpa [#allocation6], 1 }
 0x959   :  { %2376 = vsyncpa [#allocation6 + $0x1], 1 }
 0x95a   :  { %2377 = vsyncpa [#allocation23], 1 }
 0x95b   :  { %2379 = vsyncpa [#allocation23 + $0x1], 1 }

</bundles_post_ra>
